<compile_context>
chip_gen: v7x
topology: tpu7x:2x2x1
jax: 0.10.0
libtpu: 0.0.40
codegen_flags: <defaults>
</compile_context>

<pallas_src>
import functools

import jax
import jax.numpy as jnp
from jax.experimental import pallas as pl
from jax.experimental.pallas import tpu as pltpu

_LANE = 128


# --------------------------------------------------------------------------- kernels


def _conv_acc(xpad_ref, w_ref, *, H, W, Cin, Cout_p):
    """3x3 'same' conv of one padded image tile as 9 accumulating bf16 MXU dots.

    xpad_ref: (H+2, W+2, Cin)  bf16 zero-padded NHWC image tile
    w_ref   : (9, Cin, Cout_p) bf16 per-tap weight slabs (output channels lane-padded)
    returns : (H*W, Cout_p)    f32 accumulator
    """
    acc = None
    for t in range(9):
        dy, dx = divmod(t, 3)
        tap = xpad_ref[dy:dy + H, dx:dx + W, :].reshape(H * W, Cin)          # bf16
        part = jnp.dot(tap, w_ref[t], preferred_element_type=jnp.float32)    # (H*W, Cout_p)
        acc = part if acc is None else acc + part
    return acc


def _stats_kernel(xpad_ref, w_ref, stats_ref, *, H, W, Cin, Cout_p):
    """Pass 1: per-image partial BN statistics only (no conv output written to HBM)."""
    acc = _conv_acc(xpad_ref, w_ref, H=H, W=W, Cin=Cin, Cout_p=Cout_p)
    s = jnp.sum(acc, axis=0, keepdims=True)                                  # (1, Cout_p)
    sq = jnp.sum(acc * acc, axis=0, keepdims=True)                           # (1, Cout_p)
    stats_ref[...] = jnp.concatenate([s, sq], axis=0)                        # (2, Cout_p)


def _fused_conv_bn_relu_kernel(xpad_ref, w_ref, scale_ref, shift_ref, out_ref,
                               *, H, W, Cin, Cout, Cout_p):
    """Pass 2: recompute conv, then fused BN apply + ReLU; store unpadded channels."""
    acc = _conv_acc(xpad_ref, w_ref, H=H, W=W, Cin=Cin, Cout_p=Cout_p)       # (H*W, Cout_p)
    y = jnp.maximum(acc * scale_ref[...] + shift_ref[...], 0.0)              # f32 FMA + max
    out_ref[...] = y.reshape(H, W, Cout_p)[:, :, :Cout]                      # drop lane pad


# --------------------------------------------------------------------------- wrapper


def _vmem_limit_bytes(estimate_bytes):
    """Generation-aware VMEM budget: ~75% of physical capacity, floor 8 MiB."""
    try:
        info = pltpu.get_tpu_info()
        cap = int(getattr(info, "vmem_capacity_bytes", 0)) or 64 * 1024 * 1024
    except Exception:  # interpret mode / unknown target
        cap = 64 * 1024 * 1024
    return int(min(int(cap * 0.75), max(8 * 1024 * 1024, int(estimate_bytes))))


def _pass_vmem_estimate(Hp, Wp, H, W, Cin, Cout_p, out_tile_bytes):
    """Double-buffered BlockSpec tiles + in-kernel temporaries (taps + f32 acc)."""
    io = (2 * Hp * Wp * Cin * 2          # padded image tile, bf16, double-buffered
          + 2 * 9 * Cin * Cout_p * 2     # weight slabs, bf16, double-buffered
          + 2 * out_tile_bytes)          # output tile, double-buffered
    temps = (9 * H * W * Cin * 2         # tap slices
             + 3 * H * W * Cout_p * 4)   # accumulator + partial products (f32)
    return int(1.5 * (io + temps))       # headroom for compiler temporaries / spills


def res_small_block(x_nchw, conv_w_oihw, bn_gamma, bn_beta, eps=1e-5):
    """ResSmallBlock forward. x: (B, Cin, H, W) NCHW; conv_w: (Cout, Cin, 3, 3) OIHW."""
    B, Cin, H, W = x_nchw.shape
    Cout = conv_w_oihw.shape[0]
    Cout_p = max(_LANE, ((Cout + _LANE - 1) // _LANE) * _LANE)   # lane-dense matmul N
    Hp, Wp = H + 2, W + 2

    # NCHW -> NHWC in bf16 (MXU-native), zero pad of 1 in H/W (halo for the 3x3 taps).
    x_nhwc = jnp.transpose(x_nchw, (0, 2, 3, 1)).astype(jnp.bfloat16)
    x_pad = jnp.pad(x_nhwc, ((0, 0), (1, 1), (1, 1), (0, 0)))

    # OIHW -> per-tap weight slabs (9, Cin, Cout_p), bf16, zero-padded output channels.
    w_hwio = jnp.transpose(conv_w_oihw, (2, 3, 1, 0)).reshape(9, Cin, Cout)
    w3d = jnp.zeros((9, Cin, Cout_p), jnp.bfloat16).at[:, :, :Cout].set(
        w_hwio.astype(jnp.bfloat16))

    img_spec = pl.BlockSpec((None, Hp, Wp, Cin), lambda b: (b, 0, 0, 0))
    w_spec = pl.BlockSpec((9, Cin, Cout_p), lambda b: (0, 0, 0))

    # ---- Pass 1: per-image partial BN stats only (grid over batch, "parallel"). ----
    est1 = _pass_vmem_estimate(Hp, Wp, H, W, Cin, Cout_p, 2 * Cout_p * 4)
    stats = pl.pallas_call(
        functools.partial(_stats_kernel, H=H, W=W, Cin=Cin, Cout_p=Cout_p),
        grid=(B,),
        in_specs=[img_spec, w_spec],
        out_specs=pl.BlockSpec((None, 2, Cout_p), lambda b: (b, 0, 0)),
        out_shape=jax.ShapeDtypeStruct((B, 2, Cout_p), jnp.float32),
        compiler_params=pltpu.CompilerParams(
            dimension_semantics=("parallel",),
            vmem_limit_bytes=_vmem_limit_bytes(est1)),
    )(x_pad, w3d)

    # ---- Tiny cross-batch reduction + fused scale/shift (train-mode BN). ----
    n = float(B * H * W)
    total = jnp.sum(stats, axis=0)                        # (2, Cout_p)
    mean = total[0] / n
    var = jnp.maximum(total[1] / n - mean * mean, 0.0)    # biased variance (PyTorch norm)
    inv_std = jax.lax.rsqrt(var + eps)
    gamma_p = jnp.zeros((Cout_p,), jnp.float32).at[:Cout].set(bn_gamma.astype(jnp.float32))
    beta_p = jnp.zeros((Cout_p,), jnp.float32).at[:Cout].set(bn_beta.astype(jnp.float32))
    scale = (gamma_p * inv_std).reshape(1, Cout_p)
    shift = (beta_p - mean * gamma_p * inv_std).reshape(1, Cout_p)

    # ---- Pass 2: recompute conv + BN apply + ReLU, fused; unpadded output. ----
    est2 = _pass_vmem_estimate(Hp, Wp, H, W, Cin, Cout_p, H * W * Cout * 4)
    out_nhwc = pl.pallas_call(
        functools.partial(_fused_conv_bn_relu_kernel,
                          H=H, W=W, Cin=Cin, Cout=Cout, Cout_p=Cout_p),
        grid=(B,),
        in_specs=[
            img_spec,
            w_spec,
            pl.BlockSpec((1, Cout_p), lambda b: (0, 0)),
            pl.BlockSpec((1, Cout_p), lambda b: (0, 0)),
        ],
        out_specs=pl.BlockSpec((None, H, W, Cout), lambda b: (b, 0, 0, 0)),
        out_shape=jax.ShapeDtypeStruct((B, H, W, Cout), jnp.float32),
        compiler_params=pltpu.CompilerParams(
            dimension_semantics=("parallel",),
            vmem_limit_bytes=_vmem_limit_bytes(est2)),
    )(x_pad, w3d, scale, shift)

    # NHWC -> NCHW to match the PyTorch convention.
    return jnp.transpose(out_nhwc, (0, 3, 1, 2))


# --------------------------------------------------------------------------- reference


def _reference(x_nchw, conv_w_oihw, bn_gamma, bn_beta, eps=1e-5, cast_bf16=False):
    """Pure-JAX reference with PyTorch train-mode BN semantics."""
    x = x_nchw.astype(jnp.float32)
    w = conv_w_oihw.astype(jnp.float32)
    if cast_bf16:  # mirror the kernel's deliberate bf16 MXU-input cast
        x = x.astype(jnp.bfloat16).astype(jnp.float32)
        w = w.astype(jnp.bfloat16).astype(jnp.float32)
    y = jax.lax.conv_general_dilated(
        x, w, window_strides=(1, 1), padding=((1, 1), (1, 1)),
        dimension_numbers=("NCHW", "OIHW", "NCHW"))
    mean = jnp.mean(y, axis=(0, 2, 3), keepdims=True)
    var = jnp.mean((y - mean) ** 2, axis=(0, 2, 3), keepdims=True)
    y = (y - mean) * jax.lax.rsqrt(var + eps)
    y = y * bn_gamma.reshape(1, -1, 1, 1) + bn_beta.reshape(1, -1, 1, 1)
    return jnp.maximum(y, 0.0)


if __name__ == "__main__":
    B, Cin, H, W = 2, 4, 16, 16
    Cout = 8

    key = jax.random.PRNGKey(0)
    kx, kw = jax.random.split(key)

    x = jax.random.normal(kx, (B, Cin, H, W), dtype=jnp.float32)
    # Conv2d(in, out, 3, padding=1, bias=False)-style synthetic weight.
    conv_w = 0.1 * jax.random.normal(kw, (Cout, Cin, 3, 3), dtype=jnp.float32)
    # BatchNorm2d default init: weight=1, bias=0.
    bn_gamma = jnp.ones((Cout,), dtype=jnp.float32)
    bn_beta = jnp.zeros((Cout,), dtype=jnp.float32)

    out = jax.block_until_ready(res_small_block(x, conv_w, bn_gamma, bn_beta))
    assert out.shape == (B, Cout, H, W)

    # Tight check vs a reference whose conv inputs are bf16-rounded (isolates the
    # deliberate bf16 MXU cast); loose check vs the pure-f32 reference.
    ref_bf16 = _reference(x, conv_w, bn_gamma, bn_beta, cast_bf16=True)
    ref_f32 = _reference(x, conv_w, bn_gamma, bn_beta, cast_bf16=False)
    assert jnp.allclose(out, ref_bf16, atol=2e-3, rtol=2e-3), "mismatch vs bf16-cast ref"
    assert jnp.allclose(out, ref_f32, atol=5e-2, rtol=5e-2), "mismatch vs f32 reference"

    print("KERNEL_OK")
</pallas_src>

<mosaic_0001>
module attributes {stable_mosaic.version = 11 : i64} {
  func.func @_stats_kernel(%arg0: i32, %arg1: memref<1x18x18x4xbf16, #tpu.memory_space<vmem>>, %arg2: memref<9x4x128xbf16, #tpu.memory_space<vmem>>, %arg3: memref<1x2x128xf32, #tpu.memory_space<vmem>>) attributes {dimension_semantics = [#tpu.dimension_semantics<parallel>], iteration_bounds = array<i64: 2>, scalar_prefetch = 0 : i64, scratch_operands = 0 : i64, tpu.core_type = #tpu.core_type<tc>, window_params = [{transform_indices = @transform_0, window_bounds = array<i64: 1, 18, 18, 4>}, {pipeline_mode = #tpu.pipeline_mode<synchronous>, transform_indices = @transform_1, window_bounds = array<i64: 9, 4, 128>}, {transform_indices = @transform_2, window_bounds = array<i64: 1, 2, 128>}]} {
    %c0 = arith.constant 0 : index
    %c0_0 = arith.constant 0 : index
    %c0_1 = arith.constant 0 : index
    %c0_2 = arith.constant 0 : index
    %0 = vector.load %arg1[%c0, %c0_0, %c0_1, %c0_2] : memref<1x18x18x4xbf16, #tpu.memory_space<vmem>>, vector<1x16x16x4xbf16>
    %1 = vector.shape_cast %0 : vector<1x16x16x4xbf16> to vector<16x16x4xbf16>
    %2 = vector.shape_cast %1 : vector<16x16x4xbf16> to vector<256x4xbf16>
    %c0_3 = arith.constant 0 : index
    %c0_4 = arith.constant 0 : index
    %c0_5 = arith.constant 0 : index
    %3 = vector.load %arg2[%c0_3, %c0_4, %c0_5] : memref<9x4x128xbf16, #tpu.memory_space<vmem>>, vector<1x4x128xbf16>
    %4 = vector.shape_cast %3 : vector<1x4x128xbf16> to vector<4x128xbf16>
    %cst = arith.constant dense<0.000000e+00> : vector<256x128xf32>
    %5 = tpu.matmul %2, %4, %cst {dimension_numbers = #tpu.dot_dimension_numbers<[1], [0], [0], [1], [0, 0, 1, 1], [], []>} : vector<256x4xbf16>, vector<4x128xbf16>, vector<256x128xf32> -> vector<256x128xf32>
    %c0_6 = arith.constant 0 : index
    %c0_7 = arith.constant 0 : index
    %c1 = arith.constant 1 : index
    %c0_8 = arith.constant 0 : index
    %6 = vector.load %arg1[%c0_6, %c0_7, %c1, %c0_8] : memref<1x18x18x4xbf16, #tpu.memory_space<vmem>>, vector<1x16x16x4xbf16>
    %7 = vector.shape_cast %6 : vector<1x16x16x4xbf16> to vector<16x16x4xbf16>
    %8 = vector.shape_cast %7 : vector<16x16x4xbf16> to vector<256x4xbf16>
    %c1_9 = arith.constant 1 : index
    %c0_10 = arith.constant 0 : index
    %c0_11 = arith.constant 0 : index
    %9 = vector.load %arg2[%c1_9, %c0_10, %c0_11] : memref<9x4x128xbf16, #tpu.memory_space<vmem>>, vector<1x4x128xbf16>
    %10 = vector.shape_cast %9 : vector<1x4x128xbf16> to vector<4x128xbf16>
    %cst_12 = arith.constant dense<0.000000e+00> : vector<256x128xf32>
    %11 = tpu.matmul %8, %10, %cst_12 {dimension_numbers = #tpu.dot_dimension_numbers<[1], [0], [0], [1], [0, 0, 1, 1], [], []>} : vector<256x4xbf16>, vector<4x128xbf16>, vector<256x128xf32> -> vector<256x128xf32>
    %12 = arith.addf %5, %11 : vector<256x128xf32>
    %c0_13 = arith.constant 0 : index
    %c0_14 = arith.constant 0 : index
    %c2 = arith.constant 2 : index
    %c0_15 = arith.constant 0 : index
    %13 = vector.load %arg1[%c0_13, %c0_14, %c2, %c0_15] : memref<1x18x18x4xbf16, #tpu.memory_space<vmem>>, vector<1x16x16x4xbf16>
    %14 = vector.shape_cast %13 : vector<1x16x16x4xbf16> to vector<16x16x4xbf16>
    %15 = vector.shape_cast %14 : vector<16x16x4xbf16> to vector<256x4xbf16>
    %c2_16 = arith.constant 2 : index
    %c0_17 = arith.constant 0 : index
    %c0_18 = arith.constant 0 : index
    %16 = vector.load %arg2[%c2_16, %c0_17, %c0_18] : memref<9x4x128xbf16, #tpu.memory_space<vmem>>, vector<1x4x128xbf16>
    %17 = vector.shape_cast %16 : vector<1x4x128xbf16> to vector<4x128xbf16>
    %cst_19 = arith.constant dense<0.000000e+00> : vector<256x128xf32>
    %18 = tpu.matmul %15, %17, %cst_19 {dimension_numbers = #tpu.dot_dimension_numbers<[1], [0], [0], [1], [0, 0, 1, 1], [], []>} : vector<256x4xbf16>, vector<4x128xbf16>, vector<256x128xf32> -> vector<256x128xf32>
    %19 = arith.addf %12, %18 : vector<256x128xf32>
    %c0_20 = arith.constant 0 : index
    %c1_21 = arith.constant 1 : index
    %c0_22 = arith.constant 0 : index
    %c0_23 = arith.constant 0 : index
    %20 = vector.load %arg1[%c0_20, %c1_21, %c0_22, %c0_23] : memref<1x18x18x4xbf16, #tpu.memory_space<vmem>>, vector<1x16x16x4xbf16>
    %21 = vector.shape_cast %20 : vector<1x16x16x4xbf16> to vector<16x16x4xbf16>
    %22 = vector.shape_cast %21 : vector<16x16x4xbf16> to vector<256x4xbf16>
    %c3 = arith.constant 3 : index
    %c0_24 = arith.constant 0 : index
    %c0_25 = arith.constant 0 : index
    %23 = vector.load %arg2[%c3, %c0_24, %c0_25] : memref<9x4x128xbf16, #tpu.memory_space<vmem>>, vector<1x4x128xbf16>
    %24 = vector.shape_cast %23 : vector<1x4x128xbf16> to vector<4x128xbf16>
    %cst_26 = arith.constant dense<0.000000e+00> : vector<256x128xf32>
    %25 = tpu.matmul %22, %24, %cst_26 {dimension_numbers = #tpu.dot_dimension_numbers<[1], [0], [0], [1], [0, 0, 1, 1], [], []>} : vector<256x4xbf16>, vector<4x128xbf16>, vector<256x128xf32> -> vector<256x128xf32>
    %26 = arith.addf %19, %25 : vector<256x128xf32>
    %c0_27 = arith.constant 0 : index
    %c1_28 = arith.constant 1 : index
    %c1_29 = arith.constant 1 : index
    %c0_30 = arith.constant 0 : index
    %27 = vector.load %arg1[%c0_27, %c1_28, %c1_29, %c0_30] : memref<1x18x18x4xbf16, #tpu.memory_space<vmem>>, vector<1x16x16x4xbf16>
    %28 = vector.shape_cast %27 : vector<1x16x16x4xbf16> to vector<16x16x4xbf16>
    %29 = vector.shape_cast %28 : vector<16x16x4xbf16> to vector<256x4xbf16>
    %c4 = arith.constant 4 : index
    %c0_31 = arith.constant 0 : index
    %c0_32 = arith.constant 0 : index
    %30 = vector.load %arg2[%c4, %c0_31, %c0_32] : memref<9x4x128xbf16, #tpu.memory_space<vmem>>, vector<1x4x128xbf16>
    %31 = vector.shape_cast %30 : vector<1x4x128xbf16> to vector<4x128xbf16>
    %cst_33 = arith.constant dense<0.000000e+00> : vector<256x128xf32>
    %32 = tpu.matmul %29, %31, %cst_33 {dimension_numbers = #tpu.dot_dimension_numbers<[1], [0], [0], [1], [0, 0, 1, 1], [], []>} : vector<256x4xbf16>, vector<4x128xbf16>, vector<256x128xf32> -> vector<256x128xf32>
    %33 = arith.addf %26, %32 : vector<256x128xf32>
    %c0_34 = arith.constant 0 : index
    %c1_35 = arith.constant 1 : index
    %c2_36 = arith.constant 2 : index
    %c0_37 = arith.constant 0 : index
    %34 = vector.load %arg1[%c0_34, %c1_35, %c2_36, %c0_37] : memref<1x18x18x4xbf16, #tpu.memory_space<vmem>>, vector<1x16x16x4xbf16>
    %35 = vector.shape_cast %34 : vector<1x16x16x4xbf16> to vector<16x16x4xbf16>
    %36 = vector.shape_cast %35 : vector<16x16x4xbf16> to vector<256x4xbf16>
    %c5 = arith.constant 5 : index
    %c0_38 = arith.constant 0 : index
    %c0_39 = arith.constant 0 : index
    %37 = vector.load %arg2[%c5, %c0_38, %c0_39] : memref<9x4x128xbf16, #tpu.memory_space<vmem>>, vector<1x4x128xbf16>
    %38 = vector.shape_cast %37 : vector<1x4x128xbf16> to vector<4x128xbf16>
    %cst_40 = arith.constant dense<0.000000e+00> : vector<256x128xf32>
    %39 = tpu.matmul %36, %38, %cst_40 {dimension_numbers = #tpu.dot_dimension_numbers<[1], [0], [0], [1], [0, 0, 1, 1], [], []>} : vector<256x4xbf16>, vector<4x128xbf16>, vector<256x128xf32> -> vector<256x128xf32>
    %40 = arith.addf %33, %39 : vector<256x128xf32>
    %c0_41 = arith.constant 0 : index
    %c2_42 = arith.constant 2 : index
    %c0_43 = arith.constant 0 : index
    %c0_44 = arith.constant 0 : index
    %41 = vector.load %arg1[%c0_41, %c2_42, %c0_43, %c0_44] : memref<1x18x18x4xbf16, #tpu.memory_space<vmem>>, vector<1x16x16x4xbf16>
    %42 = vector.shape_cast %41 : vector<1x16x16x4xbf16> to vector<16x16x4xbf16>
    %43 = vector.shape_cast %42 : vector<16x16x4xbf16> to vector<256x4xbf16>
    %c6 = arith.constant 6 : index
    %c0_45 = arith.constant 0 : index
    %c0_46 = arith.constant 0 : index
    %44 = vector.load %arg2[%c6, %c0_45, %c0_46] : memref<9x4x128xbf16, #tpu.memory_space<vmem>>, vector<1x4x128xbf16>
    %45 = vector.shape_cast %44 : vector<1x4x128xbf16> to vector<4x128xbf16>
    %cst_47 = arith.constant dense<0.000000e+00> : vector<256x128xf32>
    %46 = tpu.matmul %43, %45, %cst_47 {dimension_numbers = #tpu.dot_dimension_numbers<[1], [0], [0], [1], [0, 0, 1, 1], [], []>} : vector<256x4xbf16>, vector<4x128xbf16>, vector<256x128xf32> -> vector<256x128xf32>
    %47 = arith.addf %40, %46 : vector<256x128xf32>
    %c0_48 = arith.constant 0 : index
    %c2_49 = arith.constant 2 : index
    %c1_50 = arith.constant 1 : index
    %c0_51 = arith.constant 0 : index
    %48 = vector.load %arg1[%c0_48, %c2_49, %c1_50, %c0_51] : memref<1x18x18x4xbf16, #tpu.memory_space<vmem>>, vector<1x16x16x4xbf16>
    %49 = vector.shape_cast %48 : vector<1x16x16x4xbf16> to vector<16x16x4xbf16>
    %50 = vector.shape_cast %49 : vector<16x16x4xbf16> to vector<256x4xbf16>
    %c7 = arith.constant 7 : index
    %c0_52 = arith.constant 0 : index
    %c0_53 = arith.constant 0 : index
    %51 = vector.load %arg2[%c7, %c0_52, %c0_53] : memref<9x4x128xbf16, #tpu.memory_space<vmem>>, vector<1x4x128xbf16>
    %52 = vector.shape_cast %51 : vector<1x4x128xbf16> to vector<4x128xbf16>
    %cst_54 = arith.constant dense<0.000000e+00> : vector<256x128xf32>
    %53 = tpu.matmul %50, %52, %cst_54 {dimension_numbers = #tpu.dot_dimension_numbers<[1], [0], [0], [1], [0, 0, 1, 1], [], []>} : vector<256x4xbf16>, vector<4x128xbf16>, vector<256x128xf32> -> vector<256x128xf32>
    %54 = arith.addf %47, %53 : vector<256x128xf32>
    %c0_55 = arith.constant 0 : index
    %c2_56 = arith.constant 2 : index
    %c2_57 = arith.constant 2 : index
    %c0_58 = arith.constant 0 : index
    %55 = vector.load %arg1[%c0_55, %c2_56, %c2_57, %c0_58] : memref<1x18x18x4xbf16, #tpu.memory_space<vmem>>, vector<1x16x16x4xbf16>
    %56 = vector.shape_cast %55 : vector<1x16x16x4xbf16> to vector<16x16x4xbf16>
    %57 = vector.shape_cast %56 : vector<16x16x4xbf16> to vector<256x4xbf16>
    %c8 = arith.constant 8 : index
    %c0_59 = arith.constant 0 : index
    %c0_60 = arith.constant 0 : index
    %58 = vector.load %arg2[%c8, %c0_59, %c0_60] : memref<9x4x128xbf16, #tpu.memory_space<vmem>>, vector<1x4x128xbf16>
    %59 = vector.shape_cast %58 : vector<1x4x128xbf16> to vector<4x128xbf16>
    %cst_61 = arith.constant dense<0.000000e+00> : vector<256x128xf32>
    %60 = tpu.matmul %57, %59, %cst_61 {dimension_numbers = #tpu.dot_dimension_numbers<[1], [0], [0], [1], [0, 0, 1, 1], [], []>} : vector<256x4xbf16>, vector<4x128xbf16>, vector<256x128xf32> -> vector<256x128xf32>
    %61 = arith.addf %54, %60 : vector<256x128xf32>
    %cst_62 = arith.constant dense<0.000000e+00> : vector<128xf32>
    %62 = vector.multi_reduction <add>, %61, %cst_62 [0] : vector<256x128xf32> to vector<128xf32>
    %63 = vector.shape_cast %62 : vector<128xf32> to vector<1x128xf32>
    %64 = arith.mulf %61, %61 : vector<256x128xf32>
    %cst_63 = arith.constant dense<0.000000e+00> : vector<128xf32>
    %65 = vector.multi_reduction <add>, %64, %cst_63 [0] : vector<256x128xf32> to vector<128xf32>
    %66 = vector.shape_cast %65 : vector<128xf32> to vector<1x128xf32>
    %67 = tpu.concatenate %63, %66 in 0 : vector<1x128xf32>, vector<1x128xf32> -> vector<2x128xf32>
    %c0_64 = arith.constant 0 : index
    %c0_65 = arith.constant 0 : index
    %c0_66 = arith.constant 0 : index
    %68 = vector.load %arg3[%c0_64, %c0_65, %c0_66] : memref<1x2x128xf32, #tpu.memory_space<vmem>>, vector<1x2x128xf32>
    %69 = vector.shape_cast %68 : vector<1x2x128xf32> to vector<2x128xf32>
    %70 = vector.shape_cast %67 : vector<2x128xf32> to vector<1x2x128xf32>
    tpu.vector_store %arg3[%c0_64, %c0_65, %c0_66], %70 {strides = array<i32>} : memref<1x2x128xf32, #tpu.memory_space<vmem>>, vector<1x2x128xf32>,
    return
  }
  func.func @transform_0(%arg0: i32) -> (i32, i32, i32, i32) {
    %c0_i32 = arith.constant 0 : i32
    %c0_i32_0 = arith.constant 0 : i32
    %c0_i32_1 = arith.constant 0 : i32
    %c0_i32_2 = arith.constant 0 : i32
    return %arg0, %c0_i32, %c0_i32_0, %c0_i32_1 : i32, i32, i32, i32
  }
  func.func @transform_1(%arg0: i32) -> (i32, i32, i32) {
    %c0_i32 = arith.constant 0 : i32
    %c0_i32_0 = arith.constant 0 : i32
    %c0_i32_1 = arith.constant 0 : i32
    %c0_i32_2 = arith.constant 0 : i32
    return %c0_i32, %c0_i32_0, %c0_i32_1 : i32, i32, i32
  }
  func.func @transform_2(%arg0: i32) -> (i32, i32, i32) {
    %c0_i32 = arith.constant 0 : i32
    %c0_i32_0 = arith.constant 0 : i32
    %c0_i32_1 = arith.constant 0 : i32
    return %arg0, %c0_i32, %c0_i32_0 : i32, i32, i32
  }
}

</mosaic_0001>

<bundles_post_ra>
// kernel: tpu_custom_call.1
= control target key start
LH: loop header
LB: loop body
LE: loop exit
PB: predicated region body
PF: predicated region fallthrough
CT: control target
= control target key end

     0   :  { %7 = vsyncpa [#allocation3], 0  ;;  %s8185_s0 = inlined_call_operand.vmem [shape: bf16[2,18,18,4], index: 0, kind: input, shape index: {}]   ;;  %s8186_s1 = inlined_call_operand.vmem [shape: bf16[9,4,128], index: 1, kind: input, shape index: {}]   ;;  %s8187_s2 = inlined_call_operand.hbm [shape: f32[2,2,128], index: 2, kind: output, shape index: {}]  }
   0x1   :  { %9 = vsyncpa [#allocation3 + $0x1], 0  ;;  %s6382_s9 = smov 0   ;;  %s6384_s10 = smov 0  }
   0x2   :  { %s6386_s11 = smov 0   ;;  %s6388_s12 = smov 0  }
   0x3 LB: > { %s6403_s13 = sadd.s32 4294967295, %s6364_s12   ;;  %s4884_s14 = sadd.s32 4294967294, %s6364_s12   ;;  %s6364_s12 = sphi %s6388_s12, %s8260_s12   ;;  %s6360_s11 = sphi %s6386_s11, %s8259_s11   ;;  %s6356_s10 = sphi %s6384_s10, %s8258_s10   ;;  %s6352_s9 = sphi %s6382_s9, %s8257_s9  }
   0x4   : > { %s6407_s15 = sadd.s32 1, %s6364_s12   ;;  %s69_s16 = sadd.s32 1, %s6360_s11 }
   0x5   : > { %s66_s17 = ssub.s32 %s6364_s12, %s6407_s15  ;;  %p79_p0 = scmp.ne.s32.totalorder %s6360_s11, %s6356_s10 }
   0x6   : > { %p67_p1 = scmp.eq.s32.totalorder %s66_s17, 0  ;;  %p80_p2 = scmp.eq.s32.totalorder %s6403_s13, 1 }
   0x7   : > { %p85_p3 = scmp.ne.s32.totalorder %s6356_s10, %s6352_s9  ;;  %p86_p4 = scmp.eq.s32.totalorder %s4884_s14, 1 }
   0x8   : > { %s6418_s18 = scalar_select %p67_p1, %s6360_s11, %s69_s16  }
   0x9   : > { %p6420_p5 = por %p80_p2, %p79_p0  ;;  %p6424_p6 = por %p86_p4, %p85_p3 }
   0xa   : > { %p4887_p7 = scmp.ge.s32.totalorder %s6364_s12, 1  ;;  %p115_p8 = scmp.lt.s32.totalorder %s6364_s12, 3 }
   0xc   : > { %p116_p9 = pnand %p4887_p7, %p115_p8 }
   0xe   : > { %119 = sbr.rel (%p116_p9) target bundleno = 626 (0x272), region = 28 }
  0x15   : > { %v4890_v0 = vld [vmem:[%s8186_s1 + $0x2] sm:$0x3]  ;;  %vm678_vm0 = vcmask 1041408   ;;  %v5117_v1 = vld [vmem:[%s8186_s1 + $0x8] sm:$0x3]  ;;  %p137_p10 = scmp.lt.s32.totalorder %s6403_s13, 1 }
  0x16   : > { %6147 = vmatprep.subr.msk.bf16.mxu1 %vm678_vm0, %v4890_v0  ;;  %6151 = vmatprep.subr.msk.bf16.mxu0 %vm678_vm0, %v5117_v1  ;;  %v680_v2 = vsel %vm678_vm0, %v4890_v0, 0  ;;  %v6441_v3 = vsel %vm678_vm0, %v5117_v1, 0  ;;  %v175_v4 = vld [vmem:[%s8186_s1] sm:$0x3]  ;;  %v5182_v5 = vld [vmem:[%s8186_s1 + $0xa] sm:$0x3] }
  0x17   : > { %8203 = vst [vmem:[#allocation5_spill] sm:$0xff] %v6441_v3  ;;  %5584 = vmatpush3.bf16.msra.mxu1 %v680_v2  ;;  %5720 = vmatpush3.bf16.msra.mxu0 %v6441_v3  ;;  %s138_s25 = scalar_select %p137_p10, %s6403_s13, 1  ;;  %vm192_vm1 = vsmask.f32 3328  ;;  %vm193_vm2 = vsmask.f32 7440 }
  0x18   : > { %6148 = vmatprep.subr.msk.bf16.mxu1 %vm678_vm0, %v175_v4  ;;  %6153 = vmatprep.subr.msk.bf16.mxu0 %vm678_vm0, %v5182_v5  ;;  %vm629_vm3 = vcmask 31744   ;;  %v6469_v17 = vsel %vm678_vm0, %v175_v4, 0  ;;  %v6475_v26 = vld [vmem:[%s8186_s1 + $0xc] sm:$0x3]  ;;  %vm6482_vm4 = vmor %vm192_vm1, %vm193_vm2  ;;  %v6488_v37 = vsel %vm678_vm0, %v5182_v5, 0  ;;  %vm1183_vm5 = vcmask 1042432  }
  0x19   : > { %s6157_s30 = smul.u32 216, %s138_s25  ;;  %v6492_v41 = vsel %vm678_vm0, %v6475_v26, 0  ;;  %vm1184_vm6 = vcmask 1046532   ;;  %s134_s29 = sand.u32 1, %s6356_s10   ;;  %vm4808_vm8 = vcmask 1040384  }
  0x1a   : > { %vm6708_vm7 = vmor %vm1183_vm5, %vm1184_vm6  ;;  %s5427_s3 = sshll.u32 %s6403_s13, 5  ;;  %s4812_s14 = scalar_lea.sflag [#allocation3], %s134_s29 }
  0x1b   : > { %s6456_s5 = scalar_lea.vmem %s8185_s0, %s6157_s30  ;;  %s4888_s30 = sshll.u32 %s134_s29, 1 }
  0x1c   : > { %v143_v6 = vld [vmem:[%s6456_s5] sm:$0xf]  ;;  %v144_v7 = vld [vmem:[%s6456_s5 + $0x4] sm:$0xf]  ;;  %v176_v8 = vld [vmem:[%s6456_s5 + $0x8] sm:$0x1]  ;;  %s8143_s8 = scalar_lea.hbm %s8187_s2, %s5427_s3 }
  0x1d   : > { %v196_v9 = vshrl.u32 %v143_v6, 16  ;;  %v199_v10 = vshll.u32 %v143_v6, 16  ;;  %v205_v11 = vshll.u32 %v144_v7, 16  ;;  %v209_v12 = vshrl.u32 %v144_v7, 16  ;;  %v5069_v13 = vld [vmem:[%s6456_s5 + $0xc] sm:$0xf] }
  0x1e   : > { %v215_v14 = vshll.u32 %v176_v8, 16  ;;  %v6463_v15 = vld [vmem:[%s6456_s5 + $0x10] sm:$0xf]  ;;  %v6466_v16 = vld [vmem:[%s6456_s5 + $0x14] sm:$0x1]  ;;  %v2000_v23 = vshrl.u32 %v5069_v13, 16 }
  0x1f   : > { %v198_v18 = vrot.slane %v196_v9, 4  ;;  %v201_v19 = vrot.slane %v199_v10, 5  ;;  %v207_v20 = vrot.slane %v205_v11, 5  ;;  %v211_v21 = vrot.slane %v209_v12, 4  ;;  %v145_v31 = vld [vmem:[%s6456_s5 + $0xc] sm:$0xf] }
  0x20   : > { %v217_v22 = vrot.slane %v215_v14, 5  ;;  %v2003_v24 = vshll.u32 %v5069_v13, 16  ;;  %v2009_v25 = vshll.u32 %v6463_v15, 16  ;;  %v2013_v29 = vshrl.u32 %v6463_v15, 16  ;;  %v146_v36 = vld [vmem:[%s6456_s5 + $0x10] sm:$0xf] }
  0x21   : > { %v202_v27 = vor.u32 %v201_v19, %v198_v18  ;;  %v212_v28 = vor.u32 %v211_v21, %v207_v20  ;;  %v2019_v30 = vshll.u32 %v6466_v16, 16  ;;  %v2002_v33 = vrot.slane %v2000_v23, 4  ;;  %v177_v44 = vld [vmem:[%s6456_s5 + $0x14] sm:$0x1]  ;;  %v5072_v55 = vld [vmem:[%s6456_s5 + $0x18] sm:$0xf] }
  0x22   : > { %v2005_v34 = vrot.slane %v2003_v24, 5  ;;  %v2011_v35 = vrot.slane %v2009_v25, 5  ;;  %v2015_v40 = vrot.slane %v2013_v29, 4  ;;  %v220_v45 = vshrl.u32 %v145_v31, 16  ;;  %v6501_v60 = vld [vmem:[%s6456_s5 + $0x1c] sm:$0xf] }
  0x23   : > { %v203_v38 = vrot.slane %v202_v27, 4  ;;  %v213_v39 = vrot.slane %v212_v28, 4  ;;  %v2021_v43 = vrot.slane %v2019_v30, 5  ;;  %v223_v46 = vshll.u32 %v145_v31, 16  ;;  %v6509_v1 = vld [vmem:[%s6456_s5 + $0x20] sm:$0x1] }
  0x24   : > { %v2006_v42 = vor.u32 %v2005_v34, %v2002_v33  ;;  %v2016_v49 = vor.u32 %v2015_v40, %v2011_v35  ;;  %v229_v50 = vshll.u32 %v146_v36, 16  ;;  %v222_v53 = vrot.slane %v220_v45, 4  ;;  %v147_v18 = vld [vmem:[%s6456_s5 + $0x18] sm:$0xf]  ;;  %v148_v23 = vld [vmem:[%s6456_s5 + $0x1c] sm:$0xf] }
  0x25   : > { %v208_v47 = vsel %vm6482_vm4, %v203_v38, %v207_v20  ;;  %v218_v48 = vsel %vm6482_vm4, %v213_v39, %v217_v22  ;;  %v225_v54 = vrot.slane %v223_v46, 5  ;;  %v233_v58 = vshrl.u32 %v146_v36, 16  ;;  %v178_v31 = vld [vmem:[%s6456_s5 + $0x20] sm:$0x1]  ;;  %v5075_v40 = vld [vmem:[%s6456_s5 + $0x24] sm:$0xf] }
  0x26   : > { %v4891_v51 = vcombine.low %v208_v47, %v218_v48  ;;  %v2007_v52 = vrot.slane %v2006_v42, 4  ;;  %v2017_v56 = vrot.slane %v2016_v49, 4  ;;  %v231_v57 = vrot.slane %v229_v50, 5  ;;  %v6532_v46 = vld [vmem:[%s6456_s5 + $0x28] sm:$0xf]  ;;  %s136_s4 = scalar_lea.vmem [#allocation2], %s4888_s30 }
  0x27   : > { %v239_v59 = vshll.u32 %v177_v44, 16  ;;  %v2743_v62 = vrot.slane %v6463_v15, 5  ;;  %v2746_v63 = vrot.slane %v6466_v16, 5  ;;  %v226_v0 = vor.u32 %v225_v54, %v222_v53  ;;  %v6541_v54 = vld [vmem:[%s6456_s5 + $0x2c] sm:$0x1]  ;;  %s6366_s13 = smov [#allocation2]  }
  0x28   : > { %5585 = vmatprep.mubr.msk.bf16.mxu1 %vm629_vm3, %v4891_v51  ;;  %v2012_v61 = vsel %vm6482_vm4, %v2007_v52, %v2011_v35  ;;  %v2022_v2 = vsel %vm6482_vm4, %v2017_v56, %v2021_v43  ;;  %v235_v4 = vrot.slane %v233_v58, 4  ;;  %v2024_v6 = vshrl.u32 %v5072_v55, 16  ;;  %v4971_v51 = vld [vmem:[%s8186_s1 + $0x4] sm:$0x3]  ;;  %v6741_v16 = vld [vmem:[%s6456_s5 + $0x7c] sm:$0xf] }
  0x29   : > { %v241_v5 = vrot.slane %v239_v59, 5  ;;  %v5118_v7 = vcombine.low %v2012_v61, %v2022_v2  ;;  %v227_v8 = vrot.slane %v226_v0, 4  ;;  %v2027_v9 = vshll.u32 %v5072_v55, 16  ;;  %v149_v0 = vld [vmem:[%s6456_s5 + $0x24] sm:$0xf]  ;;  %s6306_s17 = sshll.u32 %s6366_s13, 4  ;;  %s6307_s17 = int_to_ptr.vmem [resolvable:$false] %s6306_s17 }
  0x2a   : > { %v2033_v10 = vshll.u32 %v6501_v60, 16  ;;  %v236_v11 = vor.u32 %v235_v4, %v231_v57  ;;  %v2026_v12 = vrot.slane %v2024_v6, 4  ;;  %v2037_v13 = vshrl.u32 %v6501_v60, 16  ;;  %s6308_s21 = scalar_lea.vmem %s6307_s17, 64 }
  0x2b   : > { %v2043_v14 = vshll.u32 %v6509_v1, 16  ;;  %5721 = vmatprep.mubr.msk.bf16.mxu0 %vm629_vm3, %v5118_v7  ;;  %v232_v19 = vsel %vm6482_vm4, %v227_v8, %v231_v57  ;;  %v2029_v20 = vrot.slane %v2027_v9, 5  ;;  %v2750_v22 = vrot.slane %v6501_v60, 5  ;;  %v150_v7 = vld [vmem:[%s6456_s5 + $0x28] sm:$0xf] }
  0x2c   : > { %v2035_v21 = vrot.slane %v2033_v10, 5  ;;  %v237_v24 = vrot.slane %v236_v11, 4  ;;  %v2039_v25 = vrot.slane %v2037_v13, 4  ;;  %v2753_v28 = vrot.slane %v6509_v1, 5  ;;  %v179_v13 = vld [vmem:[%s6456_s5 + $0x2c] sm:$0x1] }
  0x2d   : > { %v2045_v27 = vrot.slane %v2043_v14, 5  ;;  %v2030_v29 = vor.u32 %v2029_v20, %v2026_v12  ;;  %v6525_v30 = vrot.slane %v2750_v22, 4  ;;  %v244_v33 = vshrl.u32 %v147_v18, 16 }
  0x2e   : > { %v247_v34 = vshll.u32 %v147_v18, 16  ;;  %v242_v35 = vsel %vm6482_vm4, %v237_v24, %v241_v5  ;;  %v2040_v36 = vor.u32 %v2039_v25, %v2035_v21  ;;  %v253_v38 = vshll.u32 %v148_v23, 16  ;;  %v5078_v24 = vld [vmem:[%s6456_s5 + $0x30] sm:$0xf] }
  0x2f   : > { %v257_v39 = vshrl.u32 %v148_v23, 16  ;;  %v4892_v42 = vcombine.low %v232_v19, %v242_v35  ;;  %v2031_v43 = vrot.slane %v2030_v29, 4  ;;  %v246_v44 = vrot.slane %v244_v33, 4  ;;  %v6561_v33 = vld [vmem:[%s6456_s5 + $0x34] sm:$0xf] }
  0x30   : > { %v249_v45 = vrot.slane %v247_v34, 5  ;;  %v2041_v47 = vrot.slane %v2040_v36, 4  ;;  %v255_v48 = vrot.slane %v253_v38, 5  ;;  %v263_v50 = vshll.u32 %v178_v31, 16 }
  0x31   : > { %v259_v49 = vrot.slane %v257_v39, 4  ;;  %5586 = vmatmul.mubr.msk.bf16.vlgmr.msra.gmra.mrb[0].mxu1 %vm629_vm3, %v4892_v42  ;;  %v2036_v52 = vsel %vm6482_vm4, %v2031_v43, %v2035_v21  ;;  %v2048_v55 = vshrl.u32 %v5075_v40, 16  ;;  %v2051_v56 = vshll.u32 %v5075_v40, 16  ;;  %v6569_v40 = vld [vmem:[%s6456_s5 + $0x38] sm:$0x1] }
  0x32   : > { %v250_v53 = vor.u32 %v249_v45, %v246_v44  ;;  %5618 = vmatpush3.bf16.msra.mxu1 %v6469_v17  ;;  %v2046_v57 = vsel %vm6482_vm4, %v2041_v47, %v2045_v27  ;;  %v265_v59 = vrot.slane %v263_v50, 5  ;;  %v2057_v61 = vshll.u32 %v6532_v46, 16 }
  0x33   : > { %v260_v58 = vor.u32 %v259_v49, %v255_v48  ;;  %v5119_v2 = vcombine.low %v2036_v52, %v2046_v57  ;;  %v2050_v5 = vrot.slane %v2048_v55, 4  ;;  %v2053_v6 = vrot.slane %v2051_v56, 5  ;;  %6149 = vmatprep.subr.msk.bf16.mxu1 %vm678_vm0, %v4971_v51  ;;  %v151_v52 = vld [vmem:[%s6456_s5 + $0x30] sm:$0xf] }
  0x34   : > { %v251_v4 = vrot.slane %v250_v53, 4  ;;  %v2059_v9 = vrot.slane %v2057_v61, 5  ;;  %v2061_v17 = vshrl.u32 %v6532_v46, 16  ;;  %v2067_v10 = vshll.u32 %v6541_v54, 16 }
  0x35   : > { %v261_v8 = vrot.slane %v260_v58, 4  ;;  %5722 = vmatmul.mubr.msk.bf16.vlgmr.msra.gmra.mrb[0].mxu0 %vm629_vm3, %v5119_v2  ;;  %v2054_v12 = vor.u32 %v2053_v6, %v2050_v5  ;;  %v268_v14 = vshrl.u32 %v149_v0, 16  ;;  %v271_v18 = vshll.u32 %v149_v0, 16  ;;  %v152_v58 = vld [vmem:[%s6456_s5 + $0x34] sm:$0xf] }
  0x36   : > { %v256_v11 = vsel %vm6482_vm4, %v251_v4, %v255_v48  ;;  %5754 = vmatpush3.bf16.msra.mxu0 %v6488_v37  ;;  %v2063_v20 = vrot.slane %v2061_v17, 4  ;;  %v2069_v21 = vrot.slane %v2067_v10, 5  ;;  %v277_v23 = vshll.u32 %v150_v7, 16  ;;  %v180_v4 = vld [vmem:[%s6456_s5 + $0x38] sm:$0x1] }
  0x37   : > { %v266_v19 = vsel %vm6482_vm4, %v261_v8, %v265_v59  ;;  %v2055_v27 = vrot.slane %v2054_v12, 4  ;;  %v270_v29 = vrot.slane %v268_v14, 4  ;;  %v273_v31 = vrot.slane %v271_v18, 5  ;;  %6154 = vmatprep.subr.msk.bf16.mxu0 %vm678_vm0, %v6475_v26  ;;  %v5081_v12 = vld [vmem:[%s6456_s5 + $0x3c] sm:$0xf] }
  0x38   : > { %v4893_v25 = vcombine.low %v256_v11, %v266_v19  ;;  %v2064_v34 = vor.u32 %v2063_v20, %v2059_v9  ;;  %v279_v35 = vrot.slane %v277_v23, 5  ;;  %v281_v37 = vshrl.u32 %v150_v7, 16  ;;  %v6586_v20 = vld [vmem:[%s6456_s5 + $0x40] sm:$0xf] }
  0x39   : > { %v287_v36 = vshll.u32 %v179_v13, 16  ;;  %v2060_v38 = vsel %vm6482_vm4, %v2055_v27, %v2059_v9  ;;  %v274_v39 = vor.u32 %v273_v31, %v270_v29  ;;  %v2072_v42 = vshrl.u32 %v5078_v24, 16 }
  0x3a   : > { %5589 = vmatprep.mubr.msk.bf16.mxu1 %vm629_vm3, %v4893_v25  ;;  %v2075_v43 = vshll.u32 %v5078_v24, 16  ;;  %v2065_v44 = vrot.slane %v2064_v34, 4  ;;  %v283_v45 = vrot.slane %v281_v37, 4  ;;  %v2081_v26 = vshll.u32 %v6561_v33, 16  ;;  %v6591_v34 = vld [vmem:[%s6456_s5 + $0x44] sm:$0x1] }
  0x3b   : > { %v289_v47 = vrot.slane %v287_v36, 5  ;;  %v275_v48 = vrot.slane %v274_v39, 4  ;;  %v2074_v49 = vrot.slane %v2072_v42, 4  ;;  %v2085_v51 = vshrl.u32 %v6561_v33, 16  ;;  %v153_v42 = vld [vmem:[%s6456_s5 + $0x3c] sm:$0xf] }
  0x3c   : > { %v2077_v50 = vrot.slane %v2075_v43, 5  ;;  %v2070_v53 = vsel %vm6482_vm4, %v2065_v44, %v2069_v21  ;;  %v284_v55 = vor.u32 %v283_v45, %v279_v35  ;;  %v2083_v56 = vrot.slane %v2081_v26, 5  ;;  %v154_v26 = vld [vmem:[%s6456_s5 + $0x40] sm:$0xf] }
  0x3d   : > { %v2091_v57 = vshll.u32 %v6569_v40, 16  ;;  %v5120_v59 = vcombine.low %v2060_v38, %v2070_v53  ;;  %v280_v61 = vsel %vm6482_vm4, %v275_v48, %v279_v35  ;;  %v2087_v2 = vrot.slane %v2085_v51, 4 }
  0x3e   : > { %v2078_v0 = vor.u32 %v2077_v50, %v2074_v49  ;;  %v285_v5 = vrot.slane %v284_v55, 4  ;;  %v292_v7 = vshrl.u32 %v151_v52, 16  ;;  %v295_v8 = vshll.u32 %v151_v52, 16 }
  0x3f   : > { %v2093_v6 = vrot.slane %v2091_v57, 5  ;;  %5725 = vmatprep.mubr.msk.bf16.mxu0 %vm629_vm3, %v5120_v59  ;;  %v2088_v17 = vor.u32 %v2087_v2, %v2083_v56  ;;  %v301_v10 = vshll.u32 %v152_v58, 16  ;;  %v305_v11 = vshrl.u32 %v152_v58, 16  ;;  %v5084_v2 = vld [vmem:[%s6456_s5 + $0x48] sm:$0xf] }
  0x40   : > { %v2079_v9 = vrot.slane %v2078_v0, 4  ;;  %v290_v13 = vsel %vm6482_vm4, %v285_v5, %v289_v47  ;;  %v294_v14 = vrot.slane %v292_v7, 4  ;;  %v297_v18 = vrot.slane %v295_v8, 5  ;;  %v6609_v8 = vld [vmem:[%s6456_s5 + $0x4c] sm:$0xf] }
  0x41   : > { %v311_v19 = vshll.u32 %v180_v4, 16  ;;  %v4894_v21 = vcombine.low %v280_v61, %v290_v13  ;;  %v2089_v24 = vrot.slane %v2088_v17, 4  ;;  %v303_v25 = vrot.slane %v301_v10, 5  ;;  %v181_v61 = vld [vmem:[%s6456_s5 + $0x44] sm:$0x1] }
  0x42   : > { %v2084_v23 = vsel %vm6482_vm4, %v2079_v9, %v2083_v56  ;;  %v298_v27 = vor.u32 %v297_v18, %v294_v14  ;;  %v307_v29 = vrot.slane %v305_v11, 4  ;;  %v2096_v35 = vshrl.u32 %v5081_v12, 16 }
  0x43   : > { %v313_v31 = vrot.slane %v311_v19, 5  ;;  %5590 = vmatmul.mubr.msk.bf16.gmra.mrb[4].mxu1 %vm629_vm3, %v4894_v21  ;;  %v2094_v37 = vsel %vm6482_vm4, %v2089_v24, %v2093_v6  ;;  %v2099_v36 = vshll.u32 %v5081_v12, 16  ;;  %v2105_v38 = vshll.u32 %v6586_v20, 16 }
  0x44   : > { %v2109_v39 = vshrl.u32 %v6586_v20, 16  ;;  %v5121_v43 = vcombine.low %v2084_v23, %v2094_v37  ;;  %v299_v44 = vrot.slane %v298_v27, 4  ;;  %v308_v45 = vor.u32 %v307_v29, %v303_v25  ;;  %v6617_v23 = vld [vmem:[%s6456_s5 + $0x50] sm:$0x1]  ;;  %v6621_v27 = vld [vmem:[%s6456_s5 + $0x48] sm:$0xf] }
  0x45   : > { %v2098_v47 = vrot.slane %v2096_v35, 4  ;;  %v2101_v48 = vrot.slane %v2099_v36, 5  ;;  %v2107_v49 = vrot.slane %v2105_v38, 5  ;;  %v2115_v51 = vshll.u32 %v6591_v34, 16  ;;  %v6624_v36 = vld [vmem:[%s6456_s5 + $0x4c] sm:$0xf] }
  0x46   : > { %v2111_v50 = vrot.slane %v2109_v39, 4  ;;  %5726 = vmatmul.mubr.msk.bf16.gmra.mrb[4].mxu0 %vm629_vm3, %v5121_v43  ;;  %v304_v52 = vsel %vm6482_vm4, %v299_v44, %v303_v25  ;;  %v309_v53 = vrot.slane %v308_v45, 4  ;;  %v316_v55 = vshrl.u32 %v153_v42, 16 }
  0x47   : > { %v319_v56 = vshll.u32 %v153_v42, 16  ;;  %v2102_v57 = vor.u32 %v2101_v48, %v2098_v47  ;;  %v2117_v59 = vrot.slane %v2115_v51, 5  ;;  %v325_v0 = vshll.u32 %v154_v26, 16 }
  0x48   : > { %v2112_v58 = vor.u32 %v2111_v50, %v2107_v49  ;;  %v314_v4 = vsel %vm6482_vm4, %v309_v53, %v313_v31  ;;  %v318_v5 = vrot.slane %v316_v55, 4  ;;  %v329_v7 = vshrl.u32 %v154_v26, 16  ;;  %v182_v26 = vld [vmem:[%s6456_s5 + $0x50] sm:$0x1]  ;;  %v5087_v53 = vld [vmem:[%s6456_s5 + $0x54] sm:$0xf] }
  0x49   : > { %v321_v6 = vrot.slane %v319_v56, 5  ;;  %v4895_v9 = vcombine.low %v304_v52, %v314_v4  ;;  %v2103_v17 = vrot.slane %v2102_v57, 4  ;;  %v327_v11 = vrot.slane %v325_v0, 5  ;;  %v6640_v4 = vld [vmem:[%s6456_s5 + $0x58] sm:$0xf] }
  0x4a   : > { %v2113_v10 = vrot.slane %v2112_v58, 4  ;;  %v331_v13 = vrot.slane %v329_v7, 4  ;;  %v335_v14 = vshll.u32 %v181_v61, 16  ;;  %v2120_v18 = vshrl.u32 %v5084_v2, 16 }
  0x4b   : > { %v322_v12 = vor.u32 %v321_v6, %v318_v5  ;;  %5593 = vmatprep.mubr.msk.bf16.mxu1 %vm629_vm3, %v4895_v9  ;;  %v2108_v19 = vsel %vm6482_vm4, %v2103_v17, %v2107_v49  ;;  %v2123_v24 = vshll.u32 %v5084_v2, 16  ;;  %v2129_v25 = vshll.u32 %v6609_v8, 16 }
  0x4c   : > { %v2118_v21 = vsel %vm6482_vm4, %v2113_v10, %v2117_v59  ;;  %v332_v35 = vor.u32 %v331_v13, %v327_v11  ;;  %v337_v37 = vrot.slane %v335_v14, 5  ;;  %v2122_v38 = vrot.slane %v2120_v18, 4 }
  0x4d   : > { %v5122_v29 = vcombine.low %v2108_v19, %v2118_v21  ;;  %v323_v31 = vrot.slane %v322_v12, 4  ;;  %v2125_v39 = vrot.slane %v2123_v24, 5  ;;  %v2131_v42 = vrot.slane %v2129_v25, 5  ;;  %v6646_v12 = vld [vmem:[%s6456_s5 + $0x5c] sm:$0x1] }
  0x4e   : > { %v2133_v43 = vshrl.u32 %v6609_v8, 16  ;;  %v333_v45 = vrot.slane %v332_v35, 4  ;;  %v2139_v47 = vshll.u32 %v6617_v23, 16  ;;  %v340_v48 = vshrl.u32 %v6621_v27, 16  ;;  %v6650_v24 = vld [vmem:[%s6456_s5 + $0x54] sm:$0xf] }
  0x4f   : > { %5729 = vmatprep.mubr.msk.bf16.mxu0 %vm629_vm3, %v5122_v29  ;;  %v328_v44 = vsel %vm6482_vm4, %v323_v31, %v327_v11  ;;  %v2126_v49 = vor.u32 %v2125_v39, %v2122_v38  ;;  %v343_v51 = vshll.u32 %v6621_v27, 16  ;;  %v349_v52 = vshll.u32 %v6624_v36, 16 }
  0x50   : > { %v2135_v50 = vrot.slane %v2133_v43, 4  ;;  %v338_v55 = vsel %vm6482_vm4, %v333_v45, %v337_v37  ;;  %v2141_v56 = vrot.slane %v2139_v47, 5  ;;  %v342_v57 = vrot.slane %v340_v48, 4  ;;  %v6656_v37 = vld [vmem:[%s6456_s5 + $0x58] sm:$0xf] }
  0x51   : > { %v353_v58 = vshrl.u32 %v6624_v36, 16  ;;  %v4896_v59 = vcombine.low %v328_v44, %v338_v55  ;;  %v2127_v61 = vrot.slane %v2126_v49, 4  ;;  %v345_v2 = vrot.slane %v343_v51, 5 }
  0x52   : > { %v2136_v0 = vor.u32 %v2135_v50, %v2131_v42  ;;  %v351_v5 = vrot.slane %v349_v52, 5  ;;  %v359_v7 = vshll.u32 %v182_v26, 16  ;;  %v2144_v9 = vshrl.u32 %v5087_v53, 16  ;;  %v183_v26 = vld [vmem:[%s6456_s5 + $0x5c] sm:$0x1] }
  0x53   : > { %v355_v6 = vrot.slane %v353_v58, 4  ;;  %5594 = vmatmul.mubr.msk.bf16.gmra.mrb[8].mxu1 %vm629_vm3, %v4896_v59  ;;  %v2132_v17 = vsel %vm6482_vm4, %v2127_v61, %v2131_v42  ;;  %v346_v11 = vor.u32 %v345_v2, %v342_v57  ;;  %v2147_v13 = vshll.u32 %v5087_v53, 16  ;;  %v5090_v53 = vld [vmem:[%s6456_s5 + $0x60] sm:$0xf]  ;;  %v6670_v59 = vld [vmem:[%s6456_s5 + $0x64] sm:$0xf] }
  0x54   : > { %v2137_v10 = vrot.slane %v2136_v0, 4  ;;  %v361_v18 = vrot.slane %v359_v7, 5  ;;  %v2146_v19 = vrot.slane %v2144_v9, 4  ;;  %v2153_v21 = vshll.u32 %v6640_v4, 16  ;;  %v6677_v9 = vld [vmem:[%s6456_s5 + $0x68] sm:$0x1] }
  0x55   : > { %v356_v14 = vor.u32 %v355_v6, %v351_v5  ;;  %v347_v29 = vrot.slane %v346_v11, 4  ;;  %v2149_v31 = vrot.slane %v2147_v13, 5  ;;  %v2157_v35 = vshrl.u32 %v6640_v4, 16 }
  0x56   : > { %v2142_v25 = vsel %vm6482_vm4, %v2137_v10, %v2141_v56  ;;  %v2155_v42 = vrot.slane %v2153_v21, 5  ;;  %v2163_v43 = vshll.u32 %v6646_v12, 16  ;;  %v364_v48 = vshrl.u32 %v6650_v24, 16 }
  0x57   : > { %v5123_v38 = vcombine.low %v2132_v17, %v2142_v25  ;;  %v357_v39 = vrot.slane %v356_v14, 4  ;;  %v352_v44 = vsel %vm6482_vm4, %v347_v29, %v351_v5  ;;  %v2150_v45 = vor.u32 %v2149_v31, %v2146_v19  ;;  %v6681_v19 = vld [vmem:[%s6456_s5 + $0x60] sm:$0xf] }
  0x58   : > { %v2159_v47 = vrot.slane %v2157_v35, 4  ;;  %v2165_v50 = vrot.slane %v2163_v43, 5  ;;  %v367_v51 = vshll.u32 %v6650_v24, 16  ;;  %v373_v52 = vshll.u32 %v6656_v37, 16  ;;  %v6687_v35 = vld [vmem:[%s6456_s5 + $0x64] sm:$0xf] }
  0x59   : > { %5730 = vmatmul.mubr.msk.bf16.gmra.mrb[8].mxu0 %vm629_vm3, %v5123_v38  ;;  %v362_v49 = vsel %vm6482_vm4, %v357_v39, %v361_v18  ;;  %v2151_v56 = vrot.slane %v2150_v45, 4  ;;  %v366_v58 = vrot.slane %v364_v48, 4  ;;  %v377_v2 = vshrl.u32 %v6656_v37, 16 }
  0x5a   : > { %v4897_v55 = vcombine.low %v352_v44, %v362_v49  ;;  %v2160_v57 = vor.u32 %v2159_v47, %v2155_v42  ;;  %v369_v61 = vrot.slane %v367_v51, 5  ;;  %v375_v0 = vrot.slane %v373_v52, 5 }
  0x5b   : > { %v383_v5 = vshll.u32 %v183_v26, 16  ;;  %v2156_v6 = vsel %vm6482_vm4, %v2151_v56, %v2155_v42  ;;  %v2168_v17 = vshrl.u32 %v5090_v53, 16  ;;  %v2171_v10 = vshll.u32 %v5090_v53, 16 }
  0x5c   : > { %5597 = vmatprep.mubr.msk.bf16.mxu1 %vm629_vm3, %v4897_v55  ;;  %v2161_v7 = vrot.slane %v2160_v57, 4  ;;  %v370_v11 = vor.u32 %v369_v61, %v366_v58  ;;  %v379_v13 = vrot.slane %v377_v2, 4  ;;  %v2177_v18 = vshll.u32 %v6670_v59, 16  ;;  %v5150_v58 = vld [vmem:[%s6456_s5 + $0xc] sm:$0xe] }
  0x5d   : > { %v385_v14 = vrot.slane %v383_v5, 5  ;;  %v2170_v25 = vrot.slane %v2168_v17, 4  ;;  %v2173_v29 = vrot.slane %v2171_v10, 5  ;;  %v2181_v31 = vshrl.u32 %v6670_v59, 16 }
  0x5e   : > { %v2166_v21 = vsel %vm6482_vm4, %v2161_v7, %v2165_v50  ;;  %v371_v39 = vrot.slane %v370_v11, 4  ;;  %v380_v42 = vor.u32 %v379_v13, %v375_v0  ;;  %v2179_v43 = vrot.slane %v2177_v18, 5  ;;  %v184_v50 = vld [vmem:[%s6456_s5 + $0x68] sm:$0x1] }
  0x5f   : > { %v5124_v38 = vcombine.low %v2156_v6, %v2166_v21  ;;  %v2174_v44 = vor.u32 %v2173_v29, %v2170_v25  ;;  %v2183_v45 = vrot.slane %v2181_v31, 4  ;;  %v2187_v47 = vshll.u32 %v6677_v9, 16  ;;  %v6715_v29 = vld [vmem:[%s6456_s5 + $0x70] sm:$0xf] }
  0x60   : > { %v388_v26 = vshrl.u32 %v6681_v19, 16  ;;  %v376_v48 = vsel %vm6482_vm4, %v371_v39, %v375_v0  ;;  %v381_v49 = vrot.slane %v380_v42, 4  ;;  %v391_v51 = vshll.u32 %v6681_v19, 16  ;;  %v6702_v0 = vld [vmem:[%s6456_s5 + $0x6c] sm:$0xf] }
  0x61   : > { %5733 = vmatprep.mubr.msk.bf16.mxu0 %vm629_vm3, %v5124_v38  ;;  %v397_v52 = vshll.u32 %v6687_v35, 16  ;;  %v2175_v53 = vrot.slane %v2174_v44, 4  ;;  %v2184_v55 = vor.u32 %v2183_v45, %v2179_v43  ;;  %v2189_v56 = vrot.slane %v2187_v47, 5 }
  0x62   : > { %v390_v57 = vrot.slane %v388_v26, 4  ;;  %v386_v61 = vsel %vm6482_vm4, %v381_v49, %v385_v14  ;;  %v393_v2 = vrot.slane %v391_v51, 5  ;;  %v401_v6 = vshrl.u32 %v6687_v35, 16  ;;  %v185_v26 = vld [vmem:[%s6456_s5 + $0x74] sm:$0x1] }
  0x63   : > { %v399_v5 = vrot.slane %v397_v52, 5  ;;  %v4898_v7 = vcombine.low %v376_v48, %v386_v61  ;;  %v2180_v17 = vsel %vm6482_vm4, %v2175_v53, %v2179_v43  ;;  %v2185_v10 = vrot.slane %v2184_v55, 4  ;;  %v5151_v48 = vld [vmem:[%s6456_s5 + $0x18] sm:$0xe] }
  0x64   : > { %v407_v11 = vshll.u32 %v184_v50, 16  ;;  %v394_v14 = vor.u32 %v393_v2, %v390_v57  ;;  %v403_v18 = vrot.slane %v401_v6, 4  ;;  %v5166_v21 = vrot.slane %v5150_v58, 9  ;;  %v6734_v53 = vld [vmem:[%s6456_s5 + $0x78] sm:$0xf] }
  0x65   : > { %v2745_v25 = vrot.slane %v2743_v62, 4  ;;  %5598 = vmatmul.mubr.msk.bf16.gmra.mrb[12].mxu1 %vm629_vm3, %v4898_v7  ;;  %v2190_v31 = vsel %vm6482_vm4, %v2185_v10, %v2189_v56  ;;  %v412_v39 = vshrl.u32 %v6702_v0, 16  ;;  %v415_v42 = vshll.u32 %v6702_v0, 16  ;;  %v186_v57 = vld [vmem:[%s6456_s5 + $0x80] sm:$0x1] }
  0x66   : > { %v409_v38 = vrot.slane %v407_v11, 5  ;;  %v5125_v43 = vcombine.low %v2180_v17, %v2190_v31  ;;  %v395_v44 = vrot.slane %v394_v14, 4  ;;  %v404_v45 = vor.u32 %v403_v18, %v399_v5  ;;  %v5152_v10 = vld [vmem:[%s6456_s5 + $0x24] sm:$0xe] }
  0x67   : > { %v2744_v47 = vsel %vm6708_vm7, %v5166_v21, %v2743_v62  ;;  %v2747_v49 = vsel %vm6708_vm7, %v2745_v25, %v2746_v63  ;;  %v414_v50 = vrot.slane %v412_v39, 4  ;;  %v417_v51 = vrot.slane %v415_v42, 5  ;;  %v6760_v39 = vld [vmem:[%s6456_s5 + $0x84] sm:$0xf] }
  0x68   : > { %v421_v52 = vshll.u32 %v6715_v29, 16  ;;  %5734 = vmatmul.mubr.msk.bf16.gmra.mrb[12].mxu0 %vm629_vm3, %v5125_v43  ;;  %v400_v15 = vsel %vm6482_vm4, %v395_v44, %v399_v5  ;;  %v405_v62 = vrot.slane %v404_v45, 4  ;;  %v5183_v55 = vcombine.low %v2744_v47, %v2747_v49  ;;  %v6768_v43 = vld [vmem:[%s6456_s5 + $0x88] sm:$0xf] }
  0x69   : > { %v425_v56 = vshrl.u32 %v6715_v29, 16  ;;  %v418_v63 = vor.u32 %v417_v51, %v414_v50  ;;  %v431_v61 = vshll.u32 %v185_v26, 16  ;;  %v5167_v2 = vrot.slane %v5151_v48, 9 }
  0x6a   : > { %v423_v58 = vrot.slane %v421_v52, 5  ;;  %v410_v6 = vsel %vm6482_vm4, %v405_v62, %v409_v38  ;;  %5755 = vmatprep.mubr.msk.bf16.mxu0 %vm629_vm3, %v5183_v55  ;;  %v2754_v5 = vsel %vm6708_vm7, %v6525_v30, %v2753_v28  ;;  %v436_v17 = vshrl.u32 %v6734_v53, 16  ;;  %v187_v52 = vld [vmem:[%s6456_s5 + $0x8c] sm:$0x1] }
  0x6b   : > { %v427_v7 = vrot.slane %v425_v56, 4  ;;  %v4899_v11 = vcombine.low %v400_v15, %v410_v6  ;;  %v419_v14 = vrot.slane %v418_v63, 4  ;;  %v433_v18 = vrot.slane %v431_v61, 5 }
  0x6c   : > { %v2751_v21 = vsel %vm6708_vm7, %v5167_v2, %v2750_v22  ;;  %v438_v38 = vrot.slane %v436_v17, 4  ;;  %v439_v1 = vshll.u32 %v6734_v53, 16  ;;  %v445_v30 = vshll.u32 %v6741_v16, 16  ;;  %v6773_v22 = vld [vmem:[%s8186_s1 + $0xe] sm:$0x3] }
  0x6d   : > { %v428_v25 = vor.u32 %v427_v7, %v423_v58  ;;  %v5184_v31 = vcombine.low %v2751_v21, %v2754_v5  ;;  %5601 = vmatprep.mubr.msk.bf16.mxu1 %vm629_vm3, %v4899_v11  ;;  %v424_v28 = vsel %vm6482_vm4, %v419_v14, %v423_v58  ;;  %v449_v60 = vshrl.u32 %v6741_v16, 16  ;;  %v6792_v5 = vld [vmem:[%s6456_s5 + $0x90] sm:$0xf] }
  0x6e   : > { %v455_v42 = vshll.u32 %v186_v57, 16  ;;  %v441_v45 = vrot.slane %v439_v1, 5  ;;  %v5168_v47 = vrot.slane %v5152_v10, 9  ;;  %v2757_v26 = vrot.slane %v6532_v46, 5  ;;  %v5153_v57 = vld [vmem:[%s6456_s5 + $0x30] sm:$0xe] }
  0x6f   : > { %v429_v44 = vrot.slane %v428_v25, 4  ;;  %v447_v48 = vrot.slane %v445_v30, 5  ;;  %v451_v49 = vrot.slane %v449_v60, 4  ;;  %v2760_v51 = vrot.slane %v6541_v54, 5  ;;  %v6804_v30 = vld [vmem:[%s6456_s5 + $0x94] sm:$0xf] }
  0x70   : > { %v457_v50 = vrot.slane %v455_v42, 5  ;;  %5756 = vmatmul.mubr.msk.bf16.vlgmr.msra.gmra.mrb[0].mxu0 %vm629_vm3, %v5184_v31  ;;  %v442_v62 = vor.u32 %v441_v45, %v438_v38  ;;  %v2758_v55 = vsel %vm6708_vm7, %v5168_v47, %v2757_v26  ;;  %v2759_v56 = vrot.slane %v2757_v26, 4  ;;  %v188_v60 = vld [vmem:[%s6456_s5 + $0x98] sm:$0x1]  ;;  %v5154_v26 = vld [vmem:[%s6456_s5 + $0x3c] sm:$0xe] }
  0x71   : > { %v434_v15 = vsel %vm6482_vm4, %v429_v44, %v433_v18  ;;  %5788 = vmatpush3.bf16.msra.mxu0 %v6492_v41  ;;  %v452_v46 = vor.u32 %v451_v49, %v447_v48  ;;  %v460_v58 = vshrl.u32 %v6760_v39, 16  ;;  %v463_v54 = vshll.u32 %v6760_v39, 16 }
  0x72   : > { %v4900_v63 = vcombine.low %v424_v28, %v434_v15  ;;  %v443_v61 = vrot.slane %v442_v62, 4  ;;  %v2761_v2 = vsel %vm6708_vm7, %v2759_v56, %v2760_v51  ;;  %v469_v6 = vshll.u32 %v6768_v43, 16  ;;  %6155 = vmatprep.subr.msk.bf16.mxu0 %vm678_vm0, %v6773_v22 }
  0x73   : > { %v473_v7 = vshrl.u32 %v6768_v43, 16  ;;  %v453_v41 = vrot.slane %v452_v46, 4  ;;  %v5185_v17 = vcombine.low %v2758_v55, %v2761_v2  ;;  %v462_v10 = vrot.slane %v460_v58, 4  ;;  %v6824_v46 = vld [vmem:[%s6456_s5 + $0xa0] sm:$0xf] }
  0x74   : > { %5602 = vmatmul.mubr.msk.bf16.gmra.mrb[16].mxu1 %vm629_vm3, %v4900_v63  ;;  %v465_v11 = vrot.slane %v463_v54, 5  ;;  %v448_v14 = vsel %vm6482_vm4, %v443_v61, %v447_v48  ;;  %v471_v18 = vrot.slane %v469_v6, 5  ;;  %v479_v25 = vshll.u32 %v187_v52, 16  ;;  %v6813_v52 = vld [vmem:[%s6456_s5 + $0x9c] sm:$0xf] }
  0x75   : > { %v475_v21 = vrot.slane %v473_v7, 4  ;;  %v458_v31 = vsel %vm6482_vm4, %v453_v41, %v457_v50  ;;  %5759 = vmatprep.mubr.msk.bf16.mxu0 %vm629_vm3, %v5185_v17  ;;  %v5169_v1 = vrot.slane %v5153_v57, 9  ;;  %v2764_v28 = vrot.slane %v6561_v33, 5 }
  0x76   : > { %v466_v38 = vor.u32 %v465_v11, %v462_v10  ;;  %v4901_v42 = vcombine.low %v448_v14, %v458_v31  ;;  %v481_v45 = vrot.slane %v479_v25, 5  ;;  %v2767_v47 = vrot.slane %v6569_v40, 5  ;;  %v189_v10 = vld [vmem:[%s6456_s5 + $0xa4] sm:$0x1]  ;;  %v5155_v11 = vld [vmem:[%s6456_s5 + $0x48] sm:$0xe] }
  0x77   : > { %v476_v44 = vor.u32 %v475_v21, %v471_v18  ;;  %v2765_v49 = vsel %vm6708_vm7, %v5169_v1, %v2764_v28  ;;  %v2766_v50 = vrot.slane %v2764_v28, 4  ;;  %v484_v51 = vshrl.u32 %v6792_v5, 16 }
  0x78   : > { %v467_v48 = vrot.slane %v466_v38, 4  ;;  %5605 = vmatprep.mubr.msk.bf16.mxu1 %vm629_vm3, %v4901_v42  ;;  %v487_v15 = vshll.u32 %v6792_v5, 16  ;;  %v493_v62 = vshll.u32 %v6804_v30, 16  ;;  %v497_v40 = vshrl.u32 %v6804_v30, 16 }
  0x79   : > { %v477_v33 = vrot.slane %v476_v44, 4  ;;  %v2768_v56 = vsel %vm6708_vm7, %v2766_v50, %v2767_v47  ;;  %v486_v57 = vrot.slane %v484_v51, 4  ;;  %v503_v63 = vshll.u32 %v188_v60, 16 }
  0x7a   : > { %v472_v55 = vsel %vm6482_vm4, %v467_v48, %v471_v18  ;;  %v5186_v54 = vcombine.low %v2765_v49, %v2768_v56  ;;  %v489_v61 = vrot.slane %v487_v15, 5  ;;  %v495_v2 = vrot.slane %v493_v62, 5  ;;  %v6850_v56 = vld [vmem:[%s6456_s5 + $0xac] sm:$0xf] }
  0x7b   : > { %v482_v58 = vsel %vm6482_vm4, %v477_v33, %v481_v45  ;;  %v499_v7 = vrot.slane %v497_v40, 4  ;;  %v505_v41 = vrot.slane %v503_v63, 5  ;;  %v5170_v17 = vrot.slane %v5154_v26, 9  ;;  %v6845_v33 = vld [vmem:[%s6456_s5 + $0xa8] sm:$0xf] }
  0x7c   : > { %v4902_v6 = vcombine.low %v472_v55, %v482_v58  ;;  %5760 = vmatmul.mubr.msk.bf16.gmra.mrb[4].mxu0 %vm629_vm3, %v5186_v54  ;;  %v490_v14 = vor.u32 %v489_v61, %v486_v57  ;;  %v2771_v18 = vrot.slane %v6586_v20, 5  ;;  %v2774_v21 = vrot.slane %v6591_v34, 5  ;;  %v190_v61 = vld [vmem:[%s6456_s5 + $0xb0] sm:$0x1] }
  0x7d   : > { %v508_v25 = vshrl.u32 %v6813_v52, 16  ;;  %v500_v31 = vor.u32 %v499_v7, %v495_v2  ;;  %v511_v38 = vshll.u32 %v6813_v52, 16  ;;  %v517_v1 = vshll.u32 %v6824_v46, 16 }
  0x7e   : > { %5606 = vmatmul.mubr.msk.bf16.gmra.mrb[20].mxu1 %vm629_vm3, %v4902_v6  ;;  %v521_v28 = vshrl.u32 %v6824_v46, 16  ;;  %v491_v60 = vrot.slane %v490_v14, 4  ;;  %v2772_v42 = vsel %vm6708_vm7, %v5170_v17, %v2771_v18  ;;  %v2773_v20 = vrot.slane %v2771_v18, 4  ;;  %v6865_v14 = vld [vmem:[%s6456_s5 + $0xb4] sm:$0xf] }
  0x7f   : > { %v510_v44 = vrot.slane %v508_v25, 4  ;;  %v501_v34 = vrot.slane %v500_v31, 4  ;;  %v513_v45 = vrot.slane %v511_v38, 5  ;;  %v519_v47 = vrot.slane %v517_v1, 5 }
  0x80   : > { %v523_v26 = vrot.slane %v521_v28, 4  ;;  %v496_v48 = vsel %vm6482_vm4, %v491_v60, %v495_v2  ;;  %v2775_v49 = vsel %vm6708_vm7, %v2773_v20, %v2774_v21  ;;  %v527_v50 = vshll.u32 %v189_v10, 16  ;;  %v5156_v2 = vld [vmem:[%s6456_s5 + $0x54] sm:$0xe] }
  0x81   : > { %v5171_v51 = vrot.slane %v5155_v11, 9  ;;  %v506_v15 = vsel %vm6482_vm4, %v501_v34, %v505_v41  ;;  %v5187_v62 = vcombine.low %v2772_v42, %v2775_v49  ;;  %v514_v40 = vor.u32 %v513_v45, %v510_v44  ;;  %v6874_v42 = vld [vmem:[%s6456_s5 + $0xb8] sm:$0xf]  ;;  %v191_v49 = vld [vmem:[%s6456_s5 + $0xbc] sm:$0x1] }
  0x82   : > { %v524_v55 = vor.u32 %v523_v26, %v519_v47  ;;  %v4903_v57 = vcombine.low %v496_v48, %v506_v15  ;;  %v529_v63 = vrot.slane %v527_v50, 5  ;;  %v2778_v58 = vrot.slane %v6609_v8, 5 }
  0x83   : > { %v2781_v54 = vrot.slane %v6617_v23, 5  ;;  %5763 = vmatprep.mubr.msk.bf16.mxu0 %vm629_vm3, %v5187_v62  ;;  %v515_v6 = vrot.slane %v514_v40, 4  ;;  %v532_v41 = vshrl.u32 %v6845_v33, 16  ;;  %v535_v17 = vshll.u32 %v6845_v33, 16 }
  0x84   : > { %v525_v7 = vrot.slane %v524_v55, 4  ;;  %5609 = vmatprep.mubr.msk.bf16.mxu1 %vm629_vm3, %v4903_v57  ;;  %v2779_v10 = vsel %vm6708_vm7, %v5171_v51, %v2778_v58  ;;  %v2780_v11 = vrot.slane %v2778_v58, 4  ;;  %v541_v8 = vshll.u32 %v6850_v56, 16  ;;  %v5157_v55 = vld [vmem:[%s6456_s5 + $0x60] sm:$0xe] }
  0x85   : > { %v545_v23 = vshrl.u32 %v6850_v56, 16  ;;  %v520_v18 = vsel %vm6482_vm4, %v515_v6, %v519_v47  ;;  %v534_v25 = vrot.slane %v532_v41, 4  ;;  %v537_v31 = vrot.slane %v535_v17, 5  ;;  %v5158_v6 = vld [vmem:[%s6456_s5 + $0x6c] sm:$0xe] }
  0x86   : > { %v530_v21 = vsel %vm6482_vm4, %v525_v7, %v529_v63  ;;  %v2782_v1 = vsel %vm6708_vm7, %v2780_v11, %v2781_v54  ;;  %v543_v28 = vrot.slane %v541_v8, 5  ;;  %v551_v34 = vshll.u32 %v190_v61, 16  ;;  %v5094_v11 = vld [vmem:[%s6456_s5 + $0x70] sm:$0xf]  ;;  %v5095_v8 = vld [vmem:[%s6456_s5 + $0x74] sm:$0x1] }
  0x87   : > { %v4904_v38 = vcombine.low %v520_v18, %v530_v21  ;;  %v547_v60 = vrot.slane %v545_v23, 4  ;;  %v5188_v20 = vcombine.low %v2779_v10, %v2782_v1  ;;  %v538_v44 = vor.u32 %v537_v31, %v534_v25 }
  0x88   : > { %v5172_v45 = vrot.slane %v5156_v2, 9  ;;  %v2785_v26 = vrot.slane %v6640_v4, 5  ;;  %v2788_v48 = vrot.slane %v6646_v12, 5  ;;  %v556_v50 = vshrl.u32 %v6865_v14, 16 }
  0x89   : > { %5610 = vmatmul.mubr.msk.bf16.gmra.mrb[24].mxu1 %vm629_vm3, %v4904_v38  ;;  %v548_v47 = vor.u32 %v547_v60, %v543_v28  ;;  %5764 = vmatmul.mubr.msk.bf16.gmra.mrb[8].mxu0 %vm629_vm3, %v5188_v20  ;;  %v539_v51 = vrot.slane %v538_v44, 4  ;;  %v553_v15 = vrot.slane %v551_v34, 5  ;;  %v559_v62 = vshll.u32 %v6865_v14, 16 }
  0x8a   : > { %v565_v40 = vshll.u32 %v6874_v42, 16  ;;  %v2786_v4 = vsel %vm6708_vm7, %v5172_v45, %v2785_v26  ;;  %v2787_v12 = vrot.slane %v2785_v26, 4  ;;  %v558_v63 = vrot.slane %v556_v50, 4 }
  0x8b   : > { %v549_v57 = vrot.slane %v548_v47, 4  ;;  %v544_v58 = vsel %vm6482_vm4, %v539_v51, %v543_v28  ;;  %v561_v54 = vrot.slane %v559_v62, 5  ;;  %v569_v2 = vshrl.u32 %v6874_v42, 16  ;;  %v5159_v47 = vld [vmem:[%s6456_s5 + $0x78] sm:$0xe] }
  0x8c   : > { %v567_v61 = vrot.slane %v565_v40, 5  ;;  %v2789_v41 = vsel %vm6708_vm7, %v2787_v12, %v2788_v48  ;;  %v575_v17 = vshll.u32 %v191_v49, 16  ;;  %v5173_v10 = vrot.slane %v5157_v55, 9  ;;  %v6245_v51 = vld [vmem:[%s6456_s5] sm:$0xf] }
  0x8d   : > { %v554_v7 = vsel %vm6482_vm4, %v549_v57, %v553_v15  ;;  %v5189_v18 = vcombine.low %v2786_v4, %v2789_v41  ;;  %v562_v21 = vor.u32 %v561_v54, %v558_v63  ;;  %v571_v25 = vrot.slane %v569_v2, 4  ;;  %v6912_v15 = vld [vmem:[%s6456_s5 + $0x4] sm:$0xf]  ;;  %v6916_v40 = vld [vmem:[%s6456_s5 + $0x7c] sm:$0xf] }
  0x8e   : > { %v4905_v23 = vcombine.low %v544_v58, %v554_v7  ;;  %v577_v31 = vrot.slane %v575_v17, 5  ;;  %v2792_v38 = vrot.slane %v6670_v59, 5  ;;  %v2795_v1 = vrot.slane %v6677_v9, 5  ;;  %v6919_v55 = vld [vmem:[%s6456_s5 + $0x80] sm:$0x1] }
  0x8f   : > { %v5174_v28 = vrot.slane %v5158_v6, 9  ;;  %5767 = vmatprep.mubr.msk.bf16.mxu0 %vm629_vm3, %v5189_v18  ;;  %v563_v60 = vrot.slane %v562_v21, 4  ;;  %v572_v20 = vor.u32 %v571_v25, %v567_v61  ;;  %v2799_v44 = vrot.slane %v5094_v11, 5  ;;  %v5100_v57 = vld [vmem:[%s6456_s5 + $0x88] sm:$0xf] }
  0x90   : > { %5613 = vmatprep.mubr.msk.bf16.mxu1 %vm629_vm3, %v4905_v23  ;;  %v2802_v34 = vrot.slane %v5095_v8, 5  ;;  %v2793_v45 = vsel %vm6708_vm7, %v5173_v10, %v2792_v38  ;;  %v2794_v59 = vrot.slane %v2792_v38, 4  ;;  %v4923_v62 = vcombine.low %v6245_v51, %v6912_v15  ;;  %v5101_v54 = vld [vmem:[%s6456_s5 + $0x8c] sm:$0x1]  ;;  %v5103_v17 = vld [vmem:[%s6456_s5 + $0x94] sm:$0xf] }
  0x91   : > { %v568_v9 = vsel %vm6482_vm4, %v563_v60, %v567_v61  ;;  %v573_v26 = vrot.slane %v572_v20, 4  ;;  %v2800_v48 = vsel %vm6708_vm7, %v5174_v28, %v2799_v44  ;;  %v2801_v49 = vrot.slane %v2799_v44, 4  ;;  %v5160_v61 = vld [vmem:[%s6456_s5 + $0x84] sm:$0xe]  ;;  %v5161_v23 = vld [vmem:[%s6456_s5 + $0x90] sm:$0xe] }
  0x92   : > { %v2796_v50 = vsel %vm6708_vm7, %v2794_v59, %v2795_v1  ;;  %v5175_v58 = vrot.slane %v5159_v47, 9  ;;  %v2806_v7 = vrot.slane %v6916_v40, 5  ;;  %v2809_v41 = vrot.slane %v6919_v55, 5  ;;  %v5104_v25 = vld [vmem:[%s6456_s5 + $0x98] sm:$0x1] }
  0x93   : > { %v578_v4 = vsel %vm6482_vm4, %v573_v26, %v577_v31  ;;  %v5190_v12 = vcombine.low %v2793_v45, %v2796_v50  ;;  %v2803_v63 = vsel %vm6708_vm7, %v2801_v49, %v2802_v34  ;;  %v5176_v10 = vrot.slane %v5160_v61, 9  ;;  %v5106_v31 = vld [vmem:[%s6456_s5 + $0xa0] sm:$0xf]  ;;  %v5107_v60 = vld [vmem:[%s6456_s5 + $0xa4] sm:$0x1] }
  0x94   : > { %v4906_v2 = vcombine.low %v568_v9, %v578_v4  ;;  %v5191_v6 = vcombine.low %v2800_v48, %v2803_v63  ;;  %v2813_v11 = vrot.slane %v5100_v57, 5  ;;  %v2816_v8 = vrot.slane %v5101_v54, 5  ;;  %v5162_v20 = vld [vmem:[%s6456_s5 + $0x9c] sm:$0xe]  ;;  %v6247_v44 = vld [vmem:[%s6456_s5 + $0xc] sm:$0xf] }
  0x95   : > { %5768 = vmatmul.mubr.msk.bf16.gmra.mrb[12].mxu0 %vm629_vm3, %v5190_v12  ;;  %v2807_v18 = vsel %vm6708_vm7, %v5175_v58, %v2806_v7  ;;  %v2808_v21 = vrot.slane %v2806_v7, 4  ;;  %v2820_v28 = vrot.slane %v5103_v17, 5  ;;  %v6946_v34 = vld [vmem:[%s6456_s5 + $0x10] sm:$0xf]  ;;  %v6249_v47 = vld [vmem:[%s6456_s5 + $0x18] sm:$0xf] }
  0x96   : > { %5614 = vmatmul.mubr.msk.bf16.gmra.mrb[28].mxu1 %vm629_vm3, %v4906_v2  ;;  %5771 = vmatprep.mubr.msk.bf16.mxu0 %vm629_vm3, %v5191_v6  ;;  %v2814_v38 = vsel %vm6708_vm7, %v5176_v10, %v2813_v11  ;;  %v2815_v1 = vrot.slane %v2813_v11, 4  ;;  %v4924_v45 = vcombine.low %v6247_v44, %v6946_v34  ;;  %v6953_v9 = vld [vmem:[%s6456_s5 + $0x1c] sm:$0xf]  ;;  %v5177_v48 = vrot.slane %v5161_v23, 9  ;;  %v5109_v57 = vld [vmem:[%s6456_s5 + $0xac] sm:$0xf] }
  0x97   : > { %5619 = vmatprep.mubr.msk.bf16.mxu1 %vm629_vm3, %v4923_v62  ;;  %v2810_v59 = vsel %vm6708_vm7, %v2808_v21, %v2809_v41  ;;  %v4925_v26 = vcombine.low %v6249_v47, %v6953_v9  ;;  %v2822_v51 = vrot.slane %v2820_v28, 4  ;;  %v2823_v62 = vrot.slane %v5104_v25, 5  ;;  %v6251_v54 = vld [vmem:[%s8186_s1 + $0x4] sm:$0x3]  ;;  %v5112_v2 = vld [vmem:[%s6456_s5 + $0xb8] sm:$0xf] }
  0x98   : > { %v5192_v49 = vcombine.low %v2807_v18, %v2810_v59  ;;  %v2817_v50 = vsel %vm6708_vm7, %v2815_v1, %v2816_v8  ;;  %v5178_v12 = vrot.slane %v5162_v20, 9  ;;  %v2827_v63 = vrot.slane %v5106_v31, 5  ;;  %v6968_v7 = vld [vmem:[%s8186_s1 + $0x6] sm:$0x3]  ;;  %v5110_v10 = vld [vmem:[%s6456_s5 + $0xb0] sm:$0x1] }
  0x99   : > { %v5193_v4 = vcombine.low %v2814_v38, %v2817_v50  ;;  %v2830_v58 = vrot.slane %v5107_v60, 5  ;;  %v1397_v61 = vsel %vm678_vm0, %v6251_v54, 0  ;;  %v2821_v41 = vsel %vm6708_vm7, %v5177_v48, %v2820_v28  ;;  %v5163_v11 = vld [vmem:[%s6456_s5 + $0xa8] sm:$0xe]  ;;  %v5113_v25 = vld [vmem:[%s6456_s5 + $0xbc] sm:$0x1] }
  0x9a   : > { %v2829_v6 = vrot.slane %v2827_v63, 4  ;;  %v2824_v17 = vsel %vm6708_vm7, %v2822_v51, %v2823_v62  ;;  %v2834_v8 = vrot.slane %v5109_v57, 5  ;;  %v2828_v23 = vsel %vm6708_vm7, %v5178_v12, %v2827_v63  ;;  %v5164_v31 = vld [vmem:[%s6456_s5 + $0xb4] sm:$0xe]  ;;  %v6252_v38 = vld [vmem:[%s6456_s5 + $0x24] sm:$0xf] }
  0x9b   : > { %v2841_v21 = vrot.slane %v5112_v2, 5  ;;  %v6989_v1 = vld [vmem:[%s6456_s5 + $0x28] sm:$0xf]  ;;  %v5194_v60 = vcombine.low %v2821_v41, %v2824_v17  ;;  %v5179_v44 = vrot.slane %v5163_v11, 9  ;;  %v2837_v59 = vrot.slane %v5110_v10, 5 }
  0x9c   : > { %v2831_v18 = vsel %vm6708_vm7, %v2829_v6, %v2830_v58  ;;  %v4926_v28 = vcombine.low %v6252_v38, %v6989_v1  ;;  %v6254_v47 = vld [vmem:[%s6456_s5 + $0x30] sm:$0xf]  ;;  %v2844_v51 = vrot.slane %v5113_v25, 5  ;;  %v5115_v62 = vld [vmem:[%s6456_s5 + $0xc4] sm:$0xf]  ;;  %v2229_v25 = vshrl.u32 %v6916_v40, 16 }
  0x9d   : > { %5772 = vmatmul.mubr.msk.bf16.gmra.mrb[16].mxu0 %vm629_vm3, %v5192_v49  ;;  %v5195_v20 = vcombine.low %v2828_v23, %v2831_v18  ;;  %v5180_v49 = vrot.slane %v5164_v31, 9  ;;  %v2843_v50 = vrot.slane %v2841_v21, 4  ;;  %v2835_v57 = vsel %vm6708_vm7, %v5179_v44, %v2834_v8  ;;  %v5165_v12 = vld [vmem:[%s6456_s5 + $0xc0] sm:$0xe]  ;;  %v6256_v41 = vld [vmem:[%s6456_s5 + $0x3c] sm:$0xf] }
  0x9e   : > { %5620 = vmatmul.mubr.msk.bf16.vlgmr.msra.gmra.mrb[0].mxu1 %vm629_vm3, %v4924_v45  ;;  %5775 = vmatprep.mubr.msk.bf16.mxu0 %vm629_vm3, %v5193_v4  ;;  %v2836_v45 = vrot.slane %v2834_v8, 4  ;;  %v2848_v63 = vrot.slane %v5115_v62, 5  ;;  %v5181_v6 = vrot.slane %v5165_v12, 9  ;;  %v7014_v17 = vld [vmem:[%s6456_s5 + $0x40] sm:$0xf]  ;;  %v4929_v18 = vcombine.low %v6621_v27, %v6624_v36  ;;  %v6208_v62 = vld [vmem:[%s6456_s5 + $0x24] sm:$0xff]  }
  0x9f   : > { %5652 = vmatpush3.bf16.msra.mxu1 %v1397_v61  ;;  %5623 = vmatprep.mubr.msk.bf16.mxu1 %vm629_vm3, %v4925_v26  ;;  %v6994_v26 = vld [vmem:[%s6456_s5 + $0x34] sm:$0xf]  ;;  %v2842_v58 = vsel %vm6708_vm7, %v5180_v49, %v2841_v21  ;;  %v2845_v54 = vsel %vm6708_vm7, %v2843_v50, %v2844_v51  ;;  %v5116_v61 = vld [vmem:[%s6456_s5 + $0xc8] sm:$0x1]  ;;  %v4928_v10 = vcombine.low %v6256_v41, %v7014_v17  ;;  %v2225_v21 = vshll.u32 %v6916_v40, 16 }
  0xa0   : > { %6150 = vmatprep.subr.msk.bf16.mxu1 %vm678_vm0, %v6968_v7  ;;  %v4927_v48 = vcombine.low %v6254_v47, %v6994_v26  ;;  %v2838_v4 = vsel %vm6708_vm7, %v2836_v45, %v2837_v59  ;;  %v5197_v11 = vcombine.low %v2842_v58, %v2845_v54  ;;  %v2850_v8 = vrot.slane %v2848_v63, 4  ;;  %v1135_v45 = vld [vmem:[%s6456_s5] sm:$0xe]  ;;  %v1136_v59 = vld [vmem:[%s6456_s5 + $0xc] sm:$0xe] }
  0xa1   : > { %v5196_v2 = vcombine.low %v2835_v57, %v2838_v4  ;;  %v2851_v23 = vrot.slane %v5116_v61, 5  ;;  %v2849_v31 = vsel %vm6708_vm7, %v5181_v6, %v2848_v63  ;;  %v7029_v27 = vrot.slane %v2225_v21, 5  ;;  %v1139_v41 = vld [vmem:[%s6456_s5 + $0x30] sm:$0xe] }
  0xa2   : > { %v2231_v36 = vrot.slane %v2229_v25, 4  ;;  %v4931_v44 = vcombine.low %v6681_v19, %v6687_v35  ;;  %v2235_v47 = vshll.u32 %v6919_v55, 16  ;;  %v4955_v19 = vrot.slane %v1135_v45, 9 }
  0xa3   : > { %v2852_v38 = vsel %vm6708_vm7, %v2850_v8, %v2851_v23  ;;  %8208 = vst [vmem:[#allocation6_spill] sm:$0xff] %v7029_v27  ;;  %v4956_v35 = vrot.slane %v1136_v59, 9  ;;  %v1202_v4 = vrot.slane %v6953_v9, 5  ;;  %v1209_v12 = vrot.slane %v6989_v1, 5  ;;  %v1140_v8 = vld [vmem:[%s6456_s5 + $0x3c] sm:$0xe] }
  0xa4   : > { %v5198_v40 = vcombine.low %v2849_v31, %v2852_v38  ;;  %v2232_v49 = vor.u32 %v2231_v36, %v7029_v27  ;;  %v7049_v51 = vrot.slane %v2235_v47, 5  ;;  %v4932_v58 = vcombine.low %v6702_v0, %v6715_v29  ;;  %v1141_v31 = vld [vmem:[%s6456_s5 + $0x48] sm:$0xe]  ;;  %v6262_v59 = vld [vmem:[%s6456_s5 + $0x38] sm:$0x1] }
  0xa5   : > { %5776 = vmatmul.mubr.msk.bf16.gmra.mrb[20].mxu0 %vm629_vm3, %v5194_v60  ;;  %v4930_v60 = vcombine.low %v6650_v24, %v6656_v37  ;;  %v6259_v24 = vld [vmem:[%s6456_s5 + $0x14] sm:$0x1]  ;;  %v4037_v54 = vsel %vm678_vm0, %v6773_v22, 0  ;;  %v4933_v61 = vcombine.low %v6734_v53, %v6741_v16  ;;  %v4934_v6 = vcombine.low %v6760_v39, %v6768_v43  ;;  %v6260_v16 = vld [vmem:[%s6456_s5 + $0x20] sm:$0x1] }
  0xa6   : > { %5624 = vmatmul.mubr.msk.bf16.gmra.mrb[4].mxu1 %vm629_vm3, %v4926_v28  ;;  %5779 = vmatprep.mubr.msk.bf16.mxu0 %vm629_vm3, %v5195_v20  ;;  %v1195_v28 = vrot.slane %v6946_v34, 5  ;;  %v6206_v20 = vld [vmem:[%s6456_s5 + $0x18] sm:$0xff]   ;;  %v6258_v34 = vld [vmem:[%s6456_s5 + $0x8] sm:$0x1]  ;;  %v1198_v37 = vrot.slane %v6259_v24, 5  ;;  %8209 = vst [vmem:[#allocation7_spill] sm:$0xff] %v7049_v51  ;;  %v4935_v9 = vcombine.low %v6792_v5, %v6804_v30 }
  0xa7   : > { %5627 = vmatprep.mubr.msk.bf16.mxu1 %vm629_vm3, %v4927_v48  ;;  %v1188_v48 = vrot.slane %v6912_v15, 5  ;;  %v1191_v50 = vrot.slane %v6258_v34, 5  ;;  %v1137_v15 = vld [vmem:[%s6456_s5 + $0x18] sm:$0xe]  ;;  %v7054_v63 = vrot.slane %v2232_v49, 4  ;;  %v1205_v22 = vrot.slane %v6260_v16, 5 }
  0xa8   : > { %v1197_v55 = vrot.slane %v1195_v28, 4  ;;  %v4957_v1 = vrot.slane %v1137_v15, 9  ;;  %v7076_v29 = vsel %vm6708_vm7, %v4956_v35, %v1195_v28  ;;  %v1211_v25 = vrot.slane %v1209_v12, 4  ;;  %v5280_v24 = vld [vmem:[%s6456_s5 + $0x18] sm:$0xf] }
  0xa9   : > { %v1190_v57 = vrot.slane %v1188_v48, 4  ;;  %8210 = vst [vmem:[#allocation8_spill] sm:$0xff] %v7054_v63  ;;  %v7072_v0 = vsel %vm6708_vm7, %v4955_v19, %v1188_v48  ;;  %v1219_v47 = vrot.slane %v6262_v59, 5  ;;  %v7113_v49 = vsel %vm678_vm0, %v6968_v7, 0  ;;  %v5281_v7 = vld [vmem:[%s6456_s5 + $0x1c] sm:$0xf] }
  0xaa   : > { %v7080_v53 = vsel %vm6708_vm7, %v1197_v55, %v1198_v37  ;;  %v7117_v34 = vsel %vm6708_vm7, %v4957_v1, %v1202_v4  ;;  %v6212_v37 = vld [vmem:[%s6456_s5 + $0x3c] sm:$0xff]   ;;  %v4960_v35 = vrot.slane %v1140_v8, 9  ;;  %v6263_v55 = vld [vmem:[%s6456_s5 + $0x44] sm:$0x1]  ;;  %v3558_v8 = vshll.u32 %v5280_v24, 16 }
  0xab   : > { %v7091_v23 = vsel %vm6708_vm7, %v1190_v57, %v1191_v50  ;;  %v1142_v50 = vld [vmem:[%s6456_s5 + $0x54] sm:$0xe]  ;;  %v1226_v15 = vrot.slane %v6263_v55, 5  ;;  %v5284_v39 = vld [vmem:[%s6456_s5 + $0x28] sm:$0xf] }
  0xac   : > { %v6270_v5 = vld [vmem:[%s6456_s5 + $0x70] sm:$0xf] }
  0xad   : > { %5780 = vmatmul.mubr.msk.bf16.gmra.mrb[24].mxu0 %vm629_vm3, %v5196_v2  ;;  %v1138_v2 = vld [vmem:[%s6456_s5 + $0x24] sm:$0xe]  ;;  %v1251_v30 = vrot.slane %v6270_v5, 5 }
  0xae   : > { %5628 = vmatmul.mubr.msk.bf16.gmra.mrb[8].mxu1 %vm629_vm3, %v4928_v10  ;;  %5783 = vmatprep.mubr.msk.bf16.mxu0 %vm629_vm3, %v5197_v11  ;;  %v1216_v10 = vrot.slane %v6994_v26, 5  ;;  %v6210_v11 = vld [vmem:[%s6456_s5 + $0x30] sm:$0xff]   ;;  %v4958_v21 = vrot.slane %v1138_v2, 9 }
  0xaf   : > { %5631 = vmatprep.mubr.msk.bf16.mxu1 %vm629_vm3, %v4929_v18  ;;  %v7087_v26 = vld [vmem:[%s8186_s1 + $0x10] sm:$0x3]  ;;  %v1204_v18 = vrot.slane %v1202_v4, 4  ;;  %v1253_v48 = vrot.slane %v1251_v30, 4 }
  0xb0   : > { %v1218_v45 = vrot.slane %v1216_v10, 4  ;;  %v7124_v19 = vsel %vm6708_vm7, %v4958_v21, %v1209_v12  ;;  %v3568_v21 = vshrl.u32 %v5281_v7, 16 }
  0xb1   : > { %v7133_v4 = vsel %vm6708_vm7, %v1204_v18, %v1205_v22  ;;  %v3555_v22 = vshrl.u32 %v5280_v24, 16  ;;  %v3564_v18 = vshll.u32 %v5281_v7, 16  ;;  %v5283_v24 = vld [vmem:[%s6456_s5 + $0x24] sm:$0xf] }
  0xb2   : > { %v7146_v1 = vsel %vm6708_vm7, %v1218_v45, %v1219_v47 }
  0xb3   : > { %v3557_v43 = vrot.slane %v3555_v22, 4  ;;  %v7188_v7 = vrot.slane %v3564_v18, 5  ;;  %v3582_v22 = vshll.u32 %v5283_v24, 16  ;;  %v3592_v18 = vshrl.u32 %v5284_v39, 16 }
  0xb5   : > { %5784 = vmatmul.mubr.msk.bf16.gmra.mrb[28].mxu0 %vm629_vm3, %v5198_v40  ;;  %v6261_v40 = vld [vmem:[%s6456_s5 + $0x2c] sm:$0x1]  ;;  %v3584_v27 = vrot.slane %v3582_v22, 5 }
  0xb6   : > { %5632 = vmatmul.mubr.msk.bf16.gmra.mrb[12].mxu1 %vm629_vm3, %v4930_v60  ;;  %5789 = vmatprep.mubr.msk.bf16.mxu0 %vm629_vm3, %v6206_v20  ;;  %v1212_v28 = vrot.slane %v6261_v40, 5  ;;  %v1223_v60 = vrot.slane %v7014_v17, 5  ;;  %v6266_v40 = vld [vmem:[%s6456_s5 + $0x50] sm:$0x1]  ;;  %v6271_v17 = vld [vmem:[%s6456_s5 + $0x74] sm:$0x1] }
  0xb7   : > { %5635 = vmatprep.mubr.msk.bf16.mxu1 %vm629_vm3, %v4931_v44  ;;  %v4959_v44 = vrot.slane %v1139_v41, 9  ;;  %v4962_v41 = vrot.slane %v1142_v50, 9  ;;  %v1143_v50 = vld [vmem:[%s6456_s5 + $0x60] sm:$0xe]  ;;  %v5285_v20 = vld [vmem:[%s6456_s5 + $0x2c] sm:$0x1] }
  0xb8   : > { %v1225_v12 = vrot.slane %v1223_v60, 4  ;;  %v7159_v45 = vsel %vm6708_vm7, %v4960_v35, %v1223_v60  ;;  %v6267_v35 = vld [vmem:[%s6456_s5 + $0x5c] sm:$0x1] }
  0xb9   : > { %v7142_v2 = vsel %vm6708_vm7, %v4959_v44, %v1216_v10  ;;  %v1240_v55 = vrot.slane %v6267_v35, 5  ;;  %v1144_v35 = vld [vmem:[%s6456_s5 + $0x6c] sm:$0xe] }
  0xba   : > { %v7163_v59 = vsel %vm6708_vm7, %v1225_v12, %v1226_v15  ;;  %v6268_v15 = vld [vmem:[%s6456_s5 + $0x64] sm:$0xf]  ;;  %v3570_v12 = vrot.slane %v3568_v21, 4  ;;  %v4964_v5 = vrot.slane %v1144_v35, 9 }
  0xbb   : > { %v6218_v21 = vld [vmem:[%s6456_s5 + $0x60] sm:$0xff]  }
  0xbd   : > { %5790 = vmatmul.mubr.msk.bf16.vlgmr.msra.gmra.mrb[0].mxu0 %vm629_vm3, %v6208_v62  ;;  %v6264_v62 = vld [vmem:[%s6456_s5 + $0x4c] sm:$0xf] }
  0xbe   : > { %5636 = vmatmul.mubr.msk.bf16.gmra.mrb[16].mxu1 %vm629_vm3, %v4932_v58  ;;  %5822 = vmatpush3.bf16.msra.mxu0 %v4037_v54  ;;  %v1230_v57 = vrot.slane %v6264_v62, 5  ;;  %v7137_v58 = vsel %vm6708_vm7, %v1211_v25, %v1212_v28  ;;  %v4961_v54 = vrot.slane %v1141_v31, 9  ;;  %v1233_v28 = vrot.slane %v6266_v40, 5 }
  0xbf   : > { %5639 = vmatprep.mubr.msk.bf16.mxu1 %vm629_vm3, %v4933_v61  ;;  %5793 = vmatprep.mubr.msk.bf16.mxu0 %vm629_vm3, %v6210_v11  ;;  %v6214_v61 = vld [vmem:[%s6456_s5 + $0x48] sm:$0xff]   ;;  %v6265_v11 = vld [vmem:[%s6456_s5 + $0x58] sm:$0xf]  ;;  %v1244_v62 = vrot.slane %v6268_v15, 5  ;;  %v5287_v15 = vld [vmem:[%s6456_s5 + $0x34] sm:$0xf] }
  0xc0   : > { %6156 = vmatprep.subr.msk.bf16.mxu0 %vm678_vm0, %v7087_v26  ;;  %v1237_v16 = vrot.slane %v6265_v11, 5  ;;  %v1232_v31 = vrot.slane %v1230_v57, 4  ;;  %v7167_v47 = vsel %vm6708_vm7, %v4961_v54, %v1230_v57  ;;  %v5282_v57 = vld [vmem:[%s6456_s5 + $0x20] sm:$0x1]  ;;  %v5286_v54 = vld [vmem:[%s6456_s5 + $0x30] sm:$0xf] }
  0xc1   : > { %v4963_v11 = vrot.slane %v1143_v50, 9  ;;  %v3606_v50 = vshll.u32 %v5286_v54, 16  ;;  %v3574_v25 = vshll.u32 %v5282_v57, 16  ;;  %v3612_v36 = vshll.u32 %v5287_v15, 16 }
  0xc2   : > { %v7178_v60 = vsel %vm6708_vm7, %v4962_v41, %v1237_v16  ;;  %v7194_v41 = vsel %vm6708_vm7, %v1232_v31, %v1233_v28  ;;  %v1246_v31 = vrot.slane %v1244_v62, 4  ;;  %v3603_v28 = vshrl.u32 %v5286_v54, 16 }
  0xc3   : > { %v7236_v35 = vrot.slane %v3612_v36, 5 }
  0xc5   : > { %5794 = vmatmul.mubr.msk.bf16.gmra.mrb[4].mxu0 %vm629_vm3, %v6212_v37  ;;  %v1239_v37 = vrot.slane %v1237_v16, 4  ;;  %v6269_v16 = vld [vmem:[%s6456_s5 + $0x68] sm:$0x1] }
  0xc6   : > { %5640 = vmatmul.mubr.msk.bf16.gmra.mrb[20].mxu1 %vm629_vm3, %v4934_v6  ;;  %5797 = vmatprep.mubr.msk.bf16.mxu0 %vm629_vm3, %v6214_v61  ;;  %v3560_v6 = vrot.slane %v3558_v8, 5  ;;  %v6216_v61 = vld [vmem:[%s6456_s5 + $0x54] sm:$0xff]   ;;  %v1247_v40 = vrot.slane %v6269_v16, 5  ;;  %v3588_v8 = vshll.u32 %v5284_v39, 16  ;;  %v3571_v16 = vor.u32 %v3570_v12, %v7188_v7 }
  0xc7   : > { %5643 = vmatprep.mubr.msk.bf16.mxu1 %vm629_vm3, %v4935_v9  ;;  %v3579_v9 = vshrl.u32 %v5283_v24, 16  ;;  %v7203_v44 = vsel %vm6708_vm7, %v1239_v37, %v1240_v55  ;;  %v1254_v24 = vrot.slane %v6271_v17, 5  ;;  %v3616_v39 = vshrl.u32 %v5287_v15, 16 }
  0xc8   : > { %v3561_v10 = vor.u32 %v3560_v6, %v3557_v43  ;;  %v7209_v37 = vrot.slane %v3588_v8, 5  ;;  %v3594_v55 = vrot.slane %v3592_v18, 4  ;;  %v8211_v43 = vcombine.low %v6813_v52, %v6824_v46  ;;  %v6272_v8 = vld [vmem:[%s6456_s5 + $0x7c] sm:$0xf]  ;;  %v7245_v18 = vld [vmem:[%s6456_s5 + $0x38] sm:$0x1] }
  0xc9   : > { %v3581_v38 = vrot.slane %v3579_v9, 4  ;;  %v7218_v17 = vsel %vm6708_vm7, %v4963_v11, %v1244_v62  ;;  %v7222_v57 = vsel %vm6708_vm7, %v1246_v31, %v1247_v40  ;;  %v3605_v6 = vrot.slane %v3603_v28, 4  ;;  %8213 = vst [vmem:[#allocation9_spill] sm:$0xff] %v7245_v18 }
  0xca   : > { %v3608_v12 = vrot.slane %v3606_v50, 5  ;;  %v8212_v52 = vcombine.low %v6845_v33, %v6850_v56  ;;  %v3562_v46 = vrot.slane %v3561_v10, 4  ;;  %v3572_v54 = vrot.slane %v3571_v16, 4  ;;  %v6220_v33 = vld [vmem:[%s6456_s5 + $0x6c] sm:$0xff]   ;;  %v1146_v16 = vld [vmem:[%s6456_s5 + $0x84] sm:$0xe] }
  0xcb   : > { %v3598_v62 = vshll.u32 %v5285_v20, 16  ;;  %v7230_v11 = vsel %vm6708_vm7, %v4964_v5, %v1251_v30  ;;  %v7234_v40 = vsel %vm6708_vm7, %v1253_v48, %v1254_v24  ;;  %v3618_v9 = vrot.slane %v3616_v39, 4  ;;  %v6221_v48 = vld [vmem:[%s6456_s5 + $0x78] sm:$0xff]  }
  0xcc   : > { %v3585_v10 = vor.u32 %v3584_v27, %v3581_v38  ;;  %v3595_v20 = vor.u32 %v3594_v55, %v7209_v37  ;;  %v1258_v30 = vrot.slane %v6272_v8, 5  ;;  %v3609_v38 = vor.u32 %v3608_v12, %v3605_v6  ;;  %v5289_v5 = vld [vmem:[%s6456_s5 + $0x3c] sm:$0xf] }
  0xcd   : > { %5798 = vmatmul.mubr.msk.bf16.gmra.mrb[8].mxu0 %vm629_vm3, %v6216_v61  ;;  %v3576_v61 = vrot.slane %v3574_v25, 5  ;;  %v1145_v25 = vld [vmem:[%s6456_s5 + $0x78] sm:$0xe]  ;;  %v7261_v50 = vrot.slane %v3598_v62, 5  ;;  %v3619_v39 = vor.u32 %v3618_v9, %v7236_v35  ;;  %v3622_v55 = vshll.u32 %v7245_v18, 16 }
  0xce   : > { %5644 = vmatmul.mubr.msk.bf16.gmra.mrb[24].mxu1 %vm629_vm3, %v8211_v43  ;;  %5801 = vmatprep.mubr.msk.bf16.mxu0 %vm629_vm3, %v6218_v21  ;;  %v3567_v21 = vsel %vm6482_vm4, %v3562_v46, %v7188_v7  ;;  %v4965_v24 = vrot.slane %v1145_v25, 9  ;;  %v6273_v43 = vld [vmem:[%s6456_s5 + $0x88] sm:$0xf]  ;;  %v7269_v7 = vld [vmem:[%s6456_s5 + $0x40] sm:$0xf]  ;;  %v3586_v12 = vrot.slane %v3585_v10, 4  ;;  %v8215_v62 = vcombine.low %v6865_v14, %v6874_v42 }
  0xcf   : > { %5647 = vmatprep.mubr.msk.bf16.mxu1 %vm629_vm3, %v8212_v52  ;;  %v3577_v31 = vsel %vm6482_vm4, %v3572_v54, %v3576_v61  ;;  %v1265_v6 = vrot.slane %v6273_v43, 5  ;;  %8214 = vst [vmem:[#allocation10_spill] sm:$0xff] %v7269_v7  ;;  %v3596_v52 = vrot.slane %v3595_v20, 4  ;;  %v1260_v46 = vrot.slane %v1258_v30, 4  ;;  %v6274_v54 = vld [vmem:[%s6456_s5 + $0x80] sm:$0x1] }
  0xd0   : > { %v1261_v61 = vrot.slane %v6274_v54, 5  ;;  %v3610_v9 = vrot.slane %v3609_v38, 4  ;;  %v4966_v25 = vrot.slane %v1146_v16, 9  ;;  %v3627_v8 = vshrl.u32 %v5289_v5, 16  ;;  %v6222_v10 = vld [vmem:[%s6456_s5 + $0x84] sm:$0xff]  }
  0xd1   : > { %v3630_v43 = vshll.u32 %v5289_v5, 16  ;;  %v7283_v20 = vcombine.low %v3567_v21, %v3577_v31  ;;  %v7287_v14 = vsel %vm678_vm0, %v7087_v26, 0  ;;  %v3640_v38 = vshrl.u32 %v7269_v7, 16  ;;  %v6223_v21 = vld [vmem:[%s6456_s5 + $0x90] sm:$0xff]   ;;  %v6279_v18 = vld [vmem:[%s6456_s5 + $0xa0] sm:$0xf] }
  0xd2   : > { %v3620_v16 = vrot.slane %v3619_v39, 4  ;;  %v3624_v5 = vrot.slane %v3622_v55, 5  ;;  %v1267_v54 = vrot.slane %v1265_v6, 4  ;;  %v3591_v31 = vsel %vm6482_vm4, %v3586_v12, %v7209_v37 }
  0xd3   : > { %v3601_v26 = vsel %vm6482_vm4, %v3596_v52, %v7261_v50  ;;  %v7302_v39 = vsel %vm6708_vm7, %v4965_v24, %v1258_v30  ;;  %v7306_v55 = vsel %vm6708_vm7, %v1260_v46, %v1261_v61  ;;  %v3615_v37 = vsel %vm6482_vm4, %v3610_v9, %v7236_v35  ;;  %v5295_v30 = vld [vmem:[%s6456_s5 + $0x54] sm:$0xf]  ;;  %v7323_v24 = vld [vmem:[%s6456_s5 + $0x58] sm:$0xf]  ;;  %v7328_v61 = vld [vmem:[%s6456_s5 + $0x90] sm:$0xe] }
  0xd4   : > { %v7319_v12 = vsel %vm6708_vm7, %v4966_v25, %v1265_v6  ;;  %v3629_v50 = vrot.slane %v3627_v8, 4  ;;  %v3632_v52 = vrot.slane %v3630_v43, 5  ;;  %v3642_v46 = vrot.slane %v3640_v38, 4 }
  0xd5   : > { %5802 = vmatmul.mubr.msk.bf16.gmra.mrb[12].mxu0 %vm629_vm3, %v6220_v33  ;;  %v8216_v33 = vcombine.low %v7072_v0, %v7091_v23  ;;  %v6275_v0 = vld [vmem:[%s6456_s5 + $0x8c] sm:$0x1]  ;;  %v3625_v36 = vsel %vm6482_vm4, %v3620_v16, %v3624_v5  ;;  %v3675_v25 = vshrl.u32 %v5295_v30, 16  ;;  %v3678_v8 = vshll.u32 %v5295_v30, 16 }
  0xd6   : > { %5648 = vmatmul.mubr.msk.bf16.gmra.mrb[28].mxu1 %vm629_vm3, %v8215_v62  ;;  %5805 = vmatprep.mubr.msk.bf16.mxu0 %vm629_vm3, %v6221_v48  ;;  %v3636_v48 = vshll.u32 %v7269_v7, 16  ;;  %v1268_v23 = vrot.slane %v6275_v0, 5  ;;  %v5292_v62 = vld [vmem:[%s6456_s5 + $0x48] sm:$0xf]  ;;  %v7312_v0 = vld [vmem:[%s6456_s5 + $0x4c] sm:$0xf]  ;;  %v8218_v38 = vcombine.low %v7076_v29, %v7080_v53  ;;  %v7346_v16 = vcombine.low %v3591_v31, %v3601_v26 }
  0xd7   : > { %5653 = vmatprep.mubr.msk.bf16.mxu1 %vm629_vm3, %v8216_v33  ;;  %v7309_v33 = vld [vmem:[%s6456_s5 + $0x44] sm:$0x1]  ;;  %v3651_v27 = vshrl.u32 %v5292_v62, 16  ;;  %v3654_v15 = vshll.u32 %v5292_v62, 16  ;;  %v3660_v6 = vshll.u32 %v7312_v0, 16  ;;  %v3664_v9 = vshrl.u32 %v7312_v0, 16 }
  0xd8   : > { %8217 = vst [vmem:[#allocation11_spill] sm:$0xff] %v7309_v33  ;;  %v7325_v28 = vrot.slane %v3636_v48, 5  ;;  %v7334_v35 = vsel %vm6708_vm7, %v1267_v54, %v1268_v23  ;;  %v3684_v43 = vshll.u32 %v7323_v24, 16  ;;  %v3688_v48 = vshrl.u32 %v7323_v24, 16  ;;  %v5298_v31 = vld [vmem:[%s6456_s5 + $0x60] sm:$0xf] }
  0xd9   : > { %v3646_v5 = vshll.u32 %v7309_v33, 16  ;;  %v4967_v54 = vrot.slane %v7328_v61, 9  ;;  %v8219_v23 = vcombine.low %v7117_v34, %v7133_v4  ;;  %v7357_v29 = vcombine.low %v3615_v37, %v3625_v36  ;;  %v6224_v26 = vld [vmem:[%s6456_s5 + $0x9c] sm:$0xff]   ;;  %v6225_v30 = vld [vmem:[%s6456_s5 + $0xa8] sm:$0xff]  }
  0xda   : > { %v3633_v53 = vor.u32 %v3632_v52, %v3629_v50  ;;  %v3653_v62 = vrot.slane %v3651_v27, 4  ;;  %v7368_v34 = vrot.slane %v3660_v6, 5  ;;  %v3666_v4 = vrot.slane %v3664_v9, 4  ;;  %v6276_v36 = vld [vmem:[%s8186_s1 + $0x8] sm:$0x3] }
  0xdb   : > { %v3677_v27 = vrot.slane %v3675_v25, 4  ;;  %v3680_v37 = vrot.slane %v3678_v8, 5  ;;  %v7377_v50 = vrot.slane %v3684_v43, 5  ;;  %v3690_v52 = vrot.slane %v3688_v48, 4  ;;  %v6277_v6 = vld [vmem:[%s6456_s5 + $0x94] sm:$0xf] }
  0xdc   : > { %v7383_v9 = vld [vmem:[%s6456_s5 + $0x64] sm:$0xf]  ;;  %v3699_v61 = vshrl.u32 %v5298_v31, 16  ;;  %v7385_v22 = vrot.slane %v3633_v53, 4  ;;  %v1279_v25 = vrot.slane %v6279_v18, 5  ;;  %v3667_v43 = vor.u32 %v3666_v4, %v7368_v34 }
  0xdd   : > { %5806 = vmatmul.mubr.msk.bf16.gmra.mrb[16].mxu0 %vm629_vm3, %v6222_v10  ;;  %8220 = vst [vmem:[#allocation12_spill] sm:$0xff] %v7383_v9  ;;  %v3702_v10 = vshll.u32 %v5298_v31, 16  ;;  %v3681_v31 = vor.u32 %v3680_v37, %v3677_v27  ;;  %v3691_v53 = vor.u32 %v3690_v52, %v7377_v50  ;;  %v8221_v18 = vcombine.low %v7124_v19, %v7137_v58  ;;  %v6226_v37 = vld [vmem:[%s6456_s5 + $0xb4] sm:$0xff]  }
  0xde   : > { %5654 = vmatmul.mubr.msk.bf16.vlgmr.msra.gmra.mrb[0].mxu1 %vm629_vm3, %v8218_v38  ;;  %5809 = vmatprep.mubr.msk.bf16.mxu0 %vm629_vm3, %v6223_v21  ;;  %v3656_v21 = vrot.slane %v3654_v15, 5  ;;  %v7366_v38 = vld [vmem:[%s6456_s5 + $0x50] sm:$0x1]  ;;  %v7375_v15 = vld [vmem:[%s6456_s5 + $0x5c] sm:$0x1]  ;;  %v8222_v27 = vcombine.low %v7142_v2, %v7146_v1  ;;  %v1281_v52 = vrot.slane %v1279_v25, 4 }
  0xdf   : > { %5686 = vmatpush3.bf16.msra.mxu1 %v7113_v49  ;;  %5657 = vmatprep.mubr.msk.bf16.mxu1 %vm629_vm3, %v8219_v23  ;;  %v3643_v49 = vor.u32 %v3642_v46, %v7325_v28  ;;  %v7379_v46 = vrot.slane %v3646_v5, 5  ;;  %v1272_v23 = vrot.slane %v6277_v6, 5  ;;  %v3670_v48 = vshll.u32 %v7366_v38, 16  ;;  %v1148_v5 = vld [vmem:[%s6456_s5 + $0x9c] sm:$0xe] }
  0xe0   : > { %6152 = vmatprep.subr.msk.bf16.mxu1 %vm678_vm0, %v6276_v36  ;;  %v6278_v36 = vld [vmem:[%s6456_s5 + $0x98] sm:$0x1]  ;;  %v3657_v7 = vor.u32 %v3656_v21, %v3653_v62  ;;  %v3694_v6 = vshll.u32 %v7375_v15, 16  ;;  %v3712_v62 = vshrl.u32 %v7383_v9, 16  ;;  %v3704_v4 = vrot.slane %v3702_v10, 5 }
  0xe1   : > { %v1275_v33 = vrot.slane %v6278_v36, 5  ;;  %v3644_v8 = vrot.slane %v3643_v49, 4  ;;  %v3708_v36 = vshll.u32 %v7383_v9, 16  ;;  %v7404_v21 = vsel %vm6708_vm7, %v4967_v54, %v1272_v23  ;;  %v7415_v2 = vld [vmem:[%s6456_s5 + $0x68] sm:$0x1] }
  0xe2   : > { %v3701_v49 = vrot.slane %v3699_v61, 4  ;;  %v3658_v19 = vrot.slane %v3657_v7, 4  ;;  %v4968_v58 = vrot.slane %v1148_v5, 9  ;;  %v3668_v3 = vrot.slane %v3667_v43, 4  ;;  %8223 = vst [vmem:[#allocation13_spill] sm:$0xff] %v7415_v2  ;;  %v6227_v5 = vld [vmem:[%s6456_s5 + $0xc0] sm:$0xff]  }
  0xe3   : > { %v3672_v54 = vrot.slane %v3670_v48, 5  ;;  %v3696_v63 = vrot.slane %v3694_v6, 5  ;;  %v1286_v61 = vrot.slane %v6850_v56, 5  ;;  %v3682_v10 = vrot.slane %v3681_v31, 4  ;;  %v1150_v31 = vld [vmem:[%s6456_s5 + $0xb4] sm:$0xe] }
  0xe4   : > { %v3692_v51 = vrot.slane %v3691_v53, 4  ;;  %v7417_v1 = vrot.slane %v3708_v36, 5  ;;  %v3714_v7 = vrot.slane %v3712_v62, 4  ;;  %v3639_v43 = vsel %vm6482_vm4, %v7385_v22, %v7325_v28  ;;  %v6281_v62 = vld [vmem:[%s6456_s5 + $0xb0] sm:$0x1] }
  0xe5   : > { %5810 = vmatmul.mubr.msk.bf16.gmra.mrb[20].mxu0 %vm629_vm3, %v6224_v26  ;;  %v1274_v26 = vrot.slane %v1272_v23, 4  ;;  %v1149_v23 = vld [vmem:[%s6456_s5 + $0xa8] sm:$0xe]  ;;  %v3649_v48 = vsel %vm6482_vm4, %v3644_v8, %v7379_v46  ;;  %v3705_v6 = vor.u32 %v3704_v4, %v3701_v49  ;;  %v3663_v53 = vsel %vm6482_vm4, %v3658_v19, %v7368_v34  ;;  %v5301_v46 = vld [vmem:[%s6456_s5 + $0x6c] sm:$0xf] }
  0xe6   : > { %5658 = vmatmul.mubr.msk.bf16.gmra.mrb[4].mxu1 %vm629_vm3, %v8221_v18  ;;  %5813 = vmatprep.mubr.msk.bf16.mxu0 %vm629_vm3, %v6225_v30  ;;  %v6280_v18 = vld [vmem:[%s6456_s5 + $0xa4] sm:$0x1]  ;;  %v7437_v36 = vsel %vm6708_vm7, %v4968_v58, %v1279_v25  ;;  %v4969_v28 = vrot.slane %v1149_v23, 9  ;;  %v1288_v8 = vrot.slane %v1286_v61, 4  ;;  %v3718_v49 = vshll.u32 %v7415_v2, 16 }
  0xe7   : > { %5661 = vmatprep.mubr.msk.bf16.mxu1 %vm629_vm3, %v8222_v27  ;;  %v1282_v30 = vrot.slane %v6280_v18, 5  ;;  %v7429_v56 = vsel %vm6708_vm7, %v1274_v26, %v1275_v33  ;;  %v3673_v33 = vsel %vm6482_vm4, %v3668_v3, %v3672_v54  ;;  %v1289_v26 = vrot.slane %v6281_v62, 5  ;;  %v5304_v18 = vld [vmem:[%s6456_s5 + $0x78] sm:$0xf]  ;;  %v7492_v54 = vld [vmem:[%s6456_s5 + $0xbc] sm:$0x1] }
  0xe8   : > { %v3687_v34 = vsel %vm6482_vm4, %v3682_v10, %v7377_v50  ;;  %v3697_v25 = vsel %vm6482_vm4, %v3692_v51, %v3696_v63  ;;  %v3715_v4 = vor.u32 %v3714_v7, %v7417_v1  ;;  %v4970_v27 = vrot.slane %v1150_v31, 9  ;;  %v7466_v51 = vld [vmem:[%s6456_s5 + $0x70] sm:$0xf]  ;;  %v7496_v10 = vld [vmem:[%s6456_s5 + $0x7c] sm:$0xf] }
  0xe9   : > { %v7441_v22 = vsel %vm6708_vm7, %v1281_v52, %v1282_v30  ;;  %v8225_v3 = vcombine.low %v7159_v45, %v7163_v59  ;;  %v7462_v19 = vrot.slane %v3705_v6, 4  ;;  %v1293_v50 = vrot.slane %v6874_v42, 5  ;;  %8226 = vst [vmem:[#allocation15_spill] sm:$0xff] %v7466_v51  ;;  %8228 = vst [vmem:[#allocation16_spill] sm:$0xff] %v7496_v10  ;;  %v5307_v7 = vld [vmem:[%s6456_s5 + $0x84] sm:$0xf] }
  0xea   : > { %8224 = vst [vmem:[#allocation14_spill] sm:$0xff] %v7441_v22  ;;  %v3723_v63 = vshrl.u32 %v5301_v46, 16  ;;  %v8227_v45 = vcombine.low %v7167_v47, %v7194_v41  ;;  %v7474_v58 = vcombine.low %v3663_v53, %v3673_v33  ;;  %v7480_v42 = vsel %vm6708_vm7, %v4969_v28, %v1286_v61  ;;  %v6228_v61 = vld [vmem:[%s6456_s5 + $0xcc] sm:$0xff]   ;;  %v7508_v31 = vld [vmem:[%s6456_s5 + $0x88] sm:$0xf] }
  0xeb   : > { %v7483_v30 = vcombine.low %v3687_v34, %v3697_v25  ;;  %v7487_v47 = vsel %vm6708_vm7, %v1288_v8, %v1289_v26  ;;  %v7489_v41 = vrot.slane %v3718_v49, 5  ;;  %v3732_v6 = vshll.u32 %v7466_v51, 16  ;;  %8229 = vst [vmem:[#allocation17_spill] sm:$0xff] %v7508_v31  ;;  %v5310_v62 = vld [vmem:[%s6456_s5 + $0x90] sm:$0xf] }
  0xec   : > { %v7514_v28 = vrot.slane %v1293_v50, 4  ;;  %v7516_v33 = vrot.slane %v3723_v63, 4  ;;  %v3736_v8 = vshrl.u32 %v7466_v51, 16  ;;  %v3747_v26 = vshrl.u32 %v5304_v18, 16  ;;  %v7523_v25 = vld [vmem:[%s6456_s5 + $0x94] sm:$0xf] }
  0xed   : > { %5814 = vmatmul.mubr.msk.bf16.gmra.mrb[24].mxu0 %vm629_vm3, %v6226_v37  ;;  %v7460_v37 = vcombine.low %v3639_v43, %v3649_v48  ;;  %v7504_v43 = vsel %vm6708_vm7, %v4970_v27, %v1293_v50  ;;  %v3726_v48 = vshll.u32 %v5301_v46, 16  ;;  %v3750_v49 = vshll.u32 %v5304_v18, 16  ;;  %8230 = vst [vmem:[#allocation18_spill] sm:$0xff] %v7523_v25  ;;  %v7561_v2 = vld [vmem:[%s6456_s5 + $0x8c] sm:$0x1] }
  0xee   : > { %5662 = vmatmul.mubr.msk.bf16.gmra.mrb[8].mxu1 %vm629_vm3, %v8225_v3  ;;  %5817 = vmatprep.mubr.msk.bf16.mxu0 %vm629_vm3, %v6227_v5  ;;  %v7500_v5 = vrot.slane %v3715_v4, 4  ;;  %v3756_v46 = vshll.u32 %v7496_v10, 16  ;;  %v3760_v34 = vshrl.u32 %v7496_v10, 16  ;;  %v3771_v4 = vshrl.u32 %v5307_v7, 16 }
  0xef   : > { %5665 = vmatprep.mubr.msk.bf16.mxu1 %vm629_vm3, %v8227_v45  ;;  %v3774_v27 = vshll.u32 %v5307_v7, 16  ;;  %v3780_v3 = vshll.u32 %v7508_v31, 16  ;;  %v3784_v50 = vshrl.u32 %v7508_v31, 16  ;;  %v7533_v45 = vld [vmem:[%s6456_s5 + $0x74] sm:$0x1]  ;;  %v3728_v18 = vrot.slane %v3726_v48, 5 }
  0xf0   : > { %v3795_v52 = vshrl.u32 %v5310_v62, 16  ;;  %v3798_v53 = vshll.u32 %v5310_v62, 16  ;;  %v8231_v7 = vcombine.low %v7178_v60, %v7203_v44  ;;  %v3738_v59 = vrot.slane %v3736_v8, 4  ;;  %v5313_v48 = vld [vmem:[%s6456_s5 + $0x9c] sm:$0xf] }
  0xf1   : > { %v3804_v63 = vshll.u32 %v7523_v25, 16  ;;  %v3808_v23 = vshrl.u32 %v7523_v25, 16  ;;  %v8232_v62 = vcombine.low %v7218_v17, %v7222_v57  ;;  %v7551_v44 = vld [vmem:[%s6456_s5 + $0x80] sm:$0x1]  ;;  %v3749_v60 = vrot.slane %v3747_v26, 4 }
  0xf2   : > { %8233 = vst [vmem:[#allocation19_spill] sm:$0xff] %v7551_v44  ;;  %v3773_v31 = vrot.slane %v3771_v4, 4  ;;  %v3776_v8 = vrot.slane %v3774_v27, 5  ;;  %v7555_v10 = vrot.slane %v3780_v3, 5  ;;  %v3786_v51 = vrot.slane %v3784_v50, 4 }
  0xf3   : > { %v7558_v25 = vld [vmem:[%s6456_s5 + $0xa0] sm:$0xf]  ;;  %v3797_v17 = vrot.slane %v3795_v52, 4  ;;  %v3800_v57 = vrot.slane %v3798_v53, 5  ;;  %v3822_v9 = vshll.u32 %v5313_v48, 16  ;;  %v3729_v26 = vor.u32 %v3728_v18, %v7516_v33 }
  0xf4   : > { %v3766_v27 = vshll.u32 %v7551_v44, 16  ;;  %v7570_v3 = vld [vmem:[%s6456_s5 + $0x98] sm:$0x1]  ;;  %v3828_v50 = vshll.u32 %v7558_v25, 16  ;;  %v3832_v52 = vshrl.u32 %v7558_v25, 16  ;;  %v3777_v22 = vor.u32 %v3776_v8, %v3773_v31 }
  0xf5   : > { %5818 = vmatmul.mubr.msk.bf16.gmra.mrb[28].mxu0 %vm629_vm3, %v6228_v61  ;;  %v7541_v61 = vrot.slane %v3732_v6, 5  ;;  %v3762_v6 = vrot.slane %v3760_v34, 4  ;;  %v3810_v34 = vrot.slane %v3808_v23, 4  ;;  %v3790_v33 = vshll.u32 %v7561_v2, 16 }
  0xf6   : > { %5666 = vmatmul.mubr.msk.bf16.gmra.mrb[12].mxu1 %vm629_vm3, %v8231_v7  ;;  %5823 = vmatprep.mubr.msk.bf16.mxu0 %vm629_vm3, %v7283_v20  ;;  %v3752_v7 = vrot.slane %v3750_v49, 5  ;;  %v7553_v20 = vrot.slane %v3756_v46, 5  ;;  %v3742_v49 = vshll.u32 %v7533_v45, 16  ;;  %v7565_v46 = vrot.slane %v3804_v63, 5 }
  0xf7   : > { %5669 = vmatprep.mubr.msk.bf16.mxu1 %vm629_vm3, %v8232_v62  ;;  %v3819_v62 = vshrl.u32 %v5313_v48, 16  ;;  %v3739_v4 = vor.u32 %v3738_v59, %v7541_v61  ;;  %v3787_v23 = vor.u32 %v3786_v51, %v7555_v10  ;;  %v3801_v59 = vor.u32 %v3800_v57, %v3797_v17  ;;  %v7603_v57 = vld [vmem:[%s6456_s5 + $0xa4] sm:$0x1] }
  0xf8   : > { %v3753_v53 = vor.u32 %v3752_v7, %v3749_v60  ;;  %v3763_v48 = vor.u32 %v3762_v6, %v7553_v20  ;;  %v3824_v18 = vrot.slane %v3822_v9, 5  ;;  %v8234_v44 = vcombine.low %v7230_v11, %v7234_v40 }
  0xf9   : > { %v3821_v63 = vrot.slane %v3819_v62, 4  ;;  %v8235_v31 = vrot.slane %v7492_v54, 5  ;;  %v3744_v51 = vrot.slane %v3742_v49, 5  ;;  %v3811_v60 = vor.u32 %v3810_v34, %v7565_v46  ;;  %v7606_v34 = vld [vmem:[%s6456_s5 + $0xac] sm:$0xf] }
  0xfa   : > { %v3814_v9 = vshll.u32 %v7570_v3, 16  ;;  %v8236_v11 = vcombine.low %v7302_v39, %v7306_v55  ;;  %v3730_v40 = vrot.slane %v3729_v26, 4  ;;  %v7599_v54 = vrot.slane %v3828_v50, 5 }
  0xfb   : > { %v3754_v7 = vrot.slane %v3753_v53, 4  ;;  %v3764_v6 = vrot.slane %v3763_v48, 4  ;;  %v3768_v8 = vrot.slane %v3766_v27, 5  ;;  %v3792_v17 = vrot.slane %v3790_v33, 5  ;;  %v7616_v48 = vld [vmem:[%s6456_s5 + $0xb0] sm:$0x1] }
  0xfc   : > { %v3778_v39 = vrot.slane %v3777_v22, 4  ;;  %v3788_v55 = vrot.slane %v3787_v23, 4  ;;  %v3802_v62 = vrot.slane %v3801_v59, 4  ;;  %v3825_v49 = vor.u32 %v3824_v18, %v3821_v63 }
  0xfd   : > { %5824 = vmatmul.mubr.msk.bf16.vlgmr.msra.gmra.mrb[0].mxu0 %vm629_vm3, %v7346_v16  ;;  %v7589_v16 = vsel %vm6708_vm7, %v7514_v28, %v8235_v31  ;;  %v3834_v28 = vrot.slane %v3832_v52, 4  ;;  %v3816_v26 = vrot.slane %v3814_v9, 5  ;;  %v3735_v52 = vsel %vm6482_vm4, %v3730_v40, %v7541_v61 }
  0xfe   : > { %5670 = vmatmul.mubr.msk.bf16.gmra.mrb[16].mxu1 %vm629_vm3, %v8234_v44  ;;  %5856 = vmatpush3.bf16.msra.mxu0 %v7287_v14  ;;  %v3740_v14 = vrot.slane %v3739_v4, 4  ;;  %v5316_v44 = vld [vmem:[%s6456_s5 + $0xa8] sm:$0xf]  ;;  %v3838_v22 = vshll.u32 %v7603_v57, 16  ;;  %v3759_v33 = vsel %vm6482_vm4, %v3754_v7, %v7553_v20  ;;  %v3769_v23 = vsel %vm6482_vm4, %v3764_v6, %v3768_v8 }
  0xff   : > { %5673 = vmatprep.mubr.msk.bf16.mxu1 %vm629_vm3, %v8236_v11  ;;  %5827 = vmatprep.mubr.msk.bf16.mxu0 %vm629_vm3, %v7357_v29  ;;  %v3812_v29 = vrot.slane %v3811_v60, 4  ;;  %v3843_v4 = vshrl.u32 %v5316_v44, 16  ;;  %v3846_v50 = vshll.u32 %v5316_v44, 16  ;;  %v3835_v53 = vor.u32 %v3834_v28, %v7599_v54  ;;  %v5365_v11 = vld [vmem:[%s6456_s5 + $0x48] sm:$0xe] }
 0x100   : > { %v3745_v27 = vsel %vm6482_vm4, %v3740_v14, %v3744_v51  ;;  %v3852_v59 = vshll.u32 %v7606_v34, 16  ;;  %v3856_v61 = vshrl.u32 %v7606_v34, 16  ;;  %v3783_v63 = vsel %vm6482_vm4, %v3778_v39, %v7555_v10  ;;  %v7681_v39 = vld [vmem:[%s6456_s5 + $0xb8] sm:$0xf] }
 0x101   : > { %v3793_v18 = vsel %vm6482_vm4, %v3788_v55, %v3792_v17  ;;  %v3807_v20 = vsel %vm6482_vm4, %v3802_v62, %v7565_v46  ;;  %v3826_v31 = vrot.slane %v3825_v49, 4  ;;  %v8237_v51 = vcombine.low %v7319_v12, %v7334_v35 }
 0x102   : > { %v3845_v10 = vrot.slane %v3843_v4, 4  ;;  %v3848_v60 = vrot.slane %v3846_v50, 5  ;;  %v3862_v9 = vshll.u32 %v7616_v48, 16  ;;  %v8238_v46 = vcombine.low %v7404_v21, %v7429_v56  ;;  %v5319_v21 = vld [vmem:[%s6456_s5 + $0xb4] sm:$0xf] }
 0x103   : > { %v4986_v12 = vcombine.low %v7480_v42, %v7487_v47  ;;  %v8239_v35 = vsel %vm6482_vm4, %v7500_v5, %v7489_v41  ;;  %v3836_v14 = vrot.slane %v3835_v53, 4  ;;  %v3840_v28 = vrot.slane %v3838_v22, 5  ;;  %v5367_v4 = vld [vmem:[%s6456_s5 + $0x60] sm:$0xe]  ;;  %v5368_v53 = vld [vmem:[%s6456_s5 + $0x6c] sm:$0xe] }
 0x104   : > { %v4987_v56 = vcombine.low %v7504_v43, %v7589_v16  ;;  %v7664_v44 = vcombine.low %v3735_v52, %v3745_v27  ;;  %v7666_v42 = vrot.slane %v3852_v59, 5  ;;  %v3858_v47 = vrot.slane %v3856_v61, 4  ;;  %v8248_v16 = vld [vmem:[#allocation7_spill] sm:$0xff] }
 0x105   : > { %5828 = vmatmul.mubr.msk.bf16.gmra.mrb[4].mxu0 %vm629_vm3, %v7460_v37  ;;  %v3817_v37 = vsel %vm6482_vm4, %v3812_v29, %v3816_v26  ;;  %v7668_v41 = vcombine.low %v3759_v33, %v3769_v23  ;;  %v7670_v5 = vcombine.low %v3783_v63, %v3793_v18  ;;  %v3831_v6 = vsel %vm6482_vm4, %v3826_v31, %v7599_v54  ;;  %v8241_v23 = vld [vmem:[#allocation14_spill] sm:$0xff]  ;;  %v5322_v63 = vld [vmem:[%s6456_s5 + $0xc0] sm:$0xf]  ;;  %v8244_v31 = vld [vmem:[#allocation13_spill] sm:$0xff] }
 0x106   : > { %5674 = vmatmul.mubr.msk.bf16.gmra.mrb[20].mxu1 %vm629_vm3, %v8237_v51  ;;  %5831 = vmatprep.mubr.msk.bf16.mxu0 %vm629_vm3, %v7474_v58  ;;  %v8240_v58 = vsel %vm6482_vm4, %v7462_v19, %v7417_v1  ;;  %v7672_v7 = vcombine.low %v3807_v20, %v3817_v37  ;;  %v5381_v1 = vrot.slane %v5365_v11, 9  ;;  %v5366_v19 = vld [vmem:[%s6456_s5 + $0x54] sm:$0xe]  ;;  %v3849_v8 = vor.u32 %v3848_v60, %v3845_v10  ;;  %v8243_v18 = vld [vmem:[#allocation12_spill] sm:$0xff] }
 0x107   : > { %5677 = vmatprep.mubr.msk.bf16.mxu1 %vm629_vm3, %v8238_v46  ;;  %v5335_v40 = vcombine.low %v8240_v58, %v8239_v35  ;;  %v7678_v17 = vrot.slane %v3862_v9, 5  ;;  %v3867_v55 = vshrl.u32 %v5319_v21, 16  ;;  %v3841_v62 = vsel %vm6482_vm4, %v3836_v14, %v3840_v28  ;;  %v8245_v9 = vld [vmem:[#allocation15_spill] sm:$0xff]  ;;  %v7730_v35 = vld [vmem:[%s6456_s5 + $0xbc] sm:$0x1] }
 0x108   : > { %v3870_v49 = vshll.u32 %v5319_v21, 16  ;;  %v4326_v29 = vrot.slane %v7312_v0, 5  ;;  %v4329_v26 = vrot.slane %v7366_v38, 5  ;;  %v3859_v50 = vor.u32 %v3858_v47, %v7666_v42  ;;  %v7733_v58 = vld [vmem:[%s6456_s5 + $0xc4] sm:$0xf] }
 0x109   : > { %v5382_v52 = vrot.slane %v5366_v19, 9  ;;  %v4333_v54 = vrot.slane %v7323_v24, 5  ;;  %v4336_v27 = vrot.slane %v7375_v15, 5  ;;  %v3876_v22 = vshll.u32 %v7681_v39, 16  ;;  %v5369_v19 = vld [vmem:[%s6456_s5 + $0x78] sm:$0xe] }
 0x10a   : > { %v3880_v33 = vshrl.u32 %v7681_v39, 16  ;;  %v7698_v0 = vsel %vm6708_vm7, %v5381_v1, %v4326_v29  ;;  %v4328_v38 = vrot.slane %v4326_v29, 4  ;;  %v8242_v59 = vcombine.low %v7437_v36, %v8241_v23  ;;  %v8246_v23 = vld [vmem:[#allocation16_spill] sm:$0xff] }
 0x10b   : > { %v7705_v24 = vcombine.low %v3831_v6, %v3841_v62  ;;  %v7709_v15 = vsel %vm6708_vm7, %v5382_v52, %v4333_v54  ;;  %v5383_v61 = vrot.slane %v5367_v4, 9  ;;  %v4340_v20 = vrot.slane %v8243_v18, 5  ;;  %v6229_v6 = vld [vmem:[%s6456_s5 + $0xc] sm:$0xff]  }
 0x10c   : > { %v7715_v36 = vsel %vm6708_vm7, %v4328_v38, %v4329_v26  ;;  %v4343_v51 = vrot.slane %v8244_v31, 5  ;;  %v5384_v37 = vrot.slane %v5368_v53, 9  ;;  %v4347_v11 = vrot.slane %v8245_v9, 5 }
 0x10d   : > { %5832 = vmatmul.mubr.msk.bf16.gmra.mrb[8].mxu0 %vm629_vm3, %v7483_v30  ;;  %v4335_v30 = vrot.slane %v4333_v54, 4  ;;  %v5398_v10 = vcombine.low %v7698_v0, %v7715_v36  ;;  %v4350_v46 = vrot.slane %v7533_v45, 5  ;;  %v7739_v14 = vsel %vm6708_vm7, %v5383_v61, %v4340_v20 }
 0x10e   : > { %5678 = vmatmul.mubr.msk.bf16.gmra.mrb[24].mxu1 %vm629_vm3, %v8242_v59  ;;  %5835 = vmatprep.mubr.msk.bf16.mxu0 %vm629_vm3, %v5335_v40  ;;  %v4342_v28 = vrot.slane %v4340_v20, 4  ;;  %v7741_v21 = vrot.slane %v3867_v55, 4  ;;  %v3891_v47 = vshrl.u32 %v5322_v63, 16  ;;  %v7745_v45 = vsel %vm6708_vm7, %v5384_v37, %v4347_v11  ;;  %v5096_v55 = vld [vmem:[%s6456_s5 + $0x78] sm:$0xf] }
 0x10f   : > { %5681 = vmatprep.mubr.msk.bf16.mxu1 %vm629_vm3, %v4986_v12  ;;  %v7723_v60 = vsel %vm6708_vm7, %v4335_v30, %v4336_v27  ;;  %v7727_v12 = vrot.slane %v3849_v8, 4  ;;  %v4349_v1 = vrot.slane %v4347_v11, 4  ;;  %v7749_v8 = vrot.slane %v3859_v50, 4  ;;  %v8247_v59 = vld [vmem:[#allocation19_spill] sm:$0xff] }
 0x110   : > { %v5399_v40 = vcombine.low %v7709_v15, %v7723_v60  ;;  %v7751_v62 = vrot.slane %v3870_v49, 5  ;;  %v3894_v29 = vshll.u32 %v5322_v63, 16  ;;  %v7755_v26 = vsel %vm6708_vm7, %v4342_v28, %v4343_v51  ;;  %v8250_v28 = vld [vmem:[#allocation17_spill] sm:$0xff]  ;;  %v6292_v60 = vld [vmem:[%s6456_s5 + $0xa0] sm:$0xf] }
 0x111   : > { %v7758_v4 = vrot.slane %v3876_v22, 5  ;;  %v7760_v52 = vrot.slane %v3880_v33, 4  ;;  %v5400_v54 = vcombine.low %v7739_v14, %v7755_v26  ;;  %v7766_v27 = vsel %vm6708_vm7, %v4349_v1, %v4350_v46  ;;  %v5370_v33 = vld [vmem:[%s6456_s5 + $0x84] sm:$0xe]  ;;  %v6230_v1 = vld [vmem:[%s6456_s5 + $0x18] sm:$0xff]  }
 0x112   : > { %v3886_v49 = vshll.u32 %v7730_v35, 16  ;;  %v3900_v50 = vshll.u32 %v7733_v58, 16  ;;  %v5401_v53 = vcombine.low %v7745_v45, %v7766_v27  ;;  %v5385_v22 = vrot.slane %v5369_v19, 9  ;;  %v6296_v27 = vld [vmem:[%s6456_s5 + $0xac] sm:$0xf] }
 0x113   : > { %v3893_v38 = vrot.slane %v3891_v47, 4  ;;  %v4357_v30 = vrot.slane %v8247_v59, 5  ;;  %v2216_v61 = vshrl.u32 %v5096_v55, 16  ;;  %v3896_v63 = vrot.slane %v3894_v29, 5  ;;  %v5325_v29 = vld [vmem:[%s6456_s5 + $0xcc] sm:$0xf] }
 0x114   : > { %v3904_v18 = vshrl.u32 %v7733_v58, 16  ;;  %v2219_v43 = vshll.u32 %v5096_v55, 16  ;;  %v5386_v37 = vrot.slane %v5370_v33, 9  ;;  %v3855_v9 = vsel %vm6482_vm4, %v7727_v12, %v7666_v42  ;;  %v7809_v55 = vld [vmem:[%s6456_s5 + $0xd0] sm:$0xf] }
 0x115   : > { %5836 = vmatmul.mubr.msk.bf16.gmra.mrb[12].mxu0 %vm629_vm3, %v7664_v44  ;;  %v4354_v44 = vrot.slane %v8246_v23, 5  ;;  %v2218_v51 = vrot.slane %v2216_v61, 4  ;;  %v3873_v11 = vor.u32 %v7751_v62, %v7741_v21  ;;  %v4361_v47 = vrot.slane %v8250_v28, 5  ;;  %v6231_v21 = vld [vmem:[%s6456_s5 + $0x24] sm:$0xff]  }
 0x116   : > { %5682 = vmatmul.mubr.msk.bf16.gmra.mrb[28].mxu1 %vm629_vm3, %v4987_v56  ;;  %5839 = vmatprep.mubr.msk.bf16.mxu0 %vm629_vm3, %v7668_v41  ;;  %v8249_v56 = vld [vmem:[#allocation8_spill] sm:$0xff]  ;;  %v2221_v46 = vrot.slane %v2219_v43, 5  ;;  %v3865_v19 = vsel %vm6482_vm4, %v7749_v8, %v7678_v17  ;;  %v4364_v12 = vrot.slane %v7561_v2, 5  ;;  %v7817_v62 = vrot.slane %v3900_v50, 5  ;;  %v5371_v8 = vld [vmem:[%s6456_s5 + $0x90] sm:$0xe] }
 0x117   : > { %5687 = vmatprep.mubr.msk.bf16.mxu1 %vm629_vm3, %v6229_v6  ;;  %v2238_v41 = vsel %vm6482_vm4, %v8249_v56, %v8248_v16  ;;  %v7791_v20 = vsel %vm6708_vm7, %v5385_v22, %v4354_v44  ;;  %v4356_v31 = vrot.slane %v4354_v44, 4  ;;  %v3883_v6 = vor.u32 %v7760_v52, %v7758_v4  ;;  %v7823_v52 = vld [vmem:[%s6456_s5 + $0xc8] sm:$0x1] }
 0x118   : > { %v3906_v22 = vrot.slane %v3904_v18, 4  ;;  %v2222_v17 = vor.u32 %v2221_v46, %v2218_v51  ;;  %v3888_v23 = vrot.slane %v3886_v49, 5  ;;  %v3897_v44 = vor.u32 %v3896_v63, %v3893_v38  ;;  %v8252_v16 = vld [vmem:[#allocation5_spill] sm:$0xff]  ;;  %v8253_v51 = vld [vmem:[#allocation6_spill] sm:$0xff] }
 0x119   : > { %v7813_v42 = vsel %vm6708_vm7, %v4356_v31, %v4357_v30  ;;  %v7827_v59 = vsel %vm6708_vm7, %v5386_v37, %v4361_v47  ;;  %v4363_v30 = vrot.slane %v4361_v47, 4  ;;  %v3915_v2 = vshrl.u32 %v5325_v29, 16 }
 0x11a   : > { %v5402_v33 = vcombine.low %v7791_v20, %v7813_v42  ;;  %v3918_v50 = vshll.u32 %v5325_v29, 16  ;;  %v3924_v61 = vshll.u32 %v7809_v55, 16  ;;  %v2223_v18 = vrot.slane %v2222_v17, 4  ;;  %v6232_v29 = vld [vmem:[%s6456_s5 + $0x30] sm:$0xff]  }
 0x11b   : > { %v3928_v49 = vshrl.u32 %v7809_v55, 16  ;;  %v7838_v38 = vsel %vm6708_vm7, %v4363_v30, %v4364_v12  ;;  %v5387_v63 = vrot.slane %v5371_v8, 9  ;;  %v3907_v56 = vor.u32 %v3906_v22, %v7817_v62 }
 0x11c   : > { %v3910_v31 = vshll.u32 %v7823_v52, 16  ;;  %v5403_v37 = vcombine.low %v7827_v59, %v7838_v38  ;;  %v5341_v46 = vcombine.low %v3855_v9, %v3865_v19  ;;  %v3874_v28 = vrot.slane %v3873_v11, 4  ;;  %v5372_v11 = vld [vmem:[%s6456_s5 + $0x9c] sm:$0xe] }
 0x11d   : > { %5840 = vmatmul.mubr.msk.bf16.gmra.mrb[16].mxu0 %vm629_vm3, %v7670_v5  ;;  %v8251_v5 = vld [vmem:[#allocation18_spill] sm:$0xff]  ;;  %v3884_v47 = vrot.slane %v3883_v6, 4  ;;  %v3898_v12 = vrot.slane %v3897_v44, 4  ;;  %v4371_v8 = vrot.slane %v7570_v3, 5  ;;  %v3917_v30 = vrot.slane %v3915_v2, 4  ;;  %v6233_v19 = vld [vmem:[%s6456_s5 + $0x3c] sm:$0xff]  }
 0x11e   : > { %5688 = vmatmul.mubr.msk.bf16.vlgmr.msra.gmra.mrb[0].mxu1 %vm629_vm3, %v6230_v1  ;;  %5843 = vmatprep.mubr.msk.bf16.mxu0 %vm629_vm3, %v7672_v7  ;;  %v4368_v43 = vrot.slane %v8251_v5, 5  ;;  %v2228_v7 = vsel %vm6482_vm4, %v2223_v18, %v8253_v51  ;;  %v3920_v18 = vrot.slane %v3918_v50, 5  ;;  %v7861_v5 = vrot.slane %v3924_v61, 5 }
 0x11f   : > { %5890 = vmatpush3.bf16.msra.mxu1 %v8252_v16  ;;  %5691 = vmatprep.mubr.msk.bf16.mxu1 %vm629_vm3, %v6231_v21  ;;  %v7850_v1 = vcombine.low %v2228_v7, %v2238_v41  ;;  %v7854_v21 = vld [vmem:[%s6456_s5 + $0xd4] sm:$0x1]  ;;  %v3930_v9 = vrot.slane %v3928_v49, 4  ;;  %v3908_v41 = vrot.slane %v3907_v56, 4  ;;  %v3912_v6 = vrot.slane %v3910_v31, 5 }
 0x120   : > { %v7858_v22 = vsel %vm6708_vm7, %v5387_v63, %v4368_v43  ;;  %v4370_v17 = vrot.slane %v4368_v43, 4  ;;  %v3879_v63 = vsel %vm6482_vm4, %v3874_v28, %v7758_v4  ;;  %v3889_v2 = vsel %vm6482_vm4, %v3884_v47, %v3888_v23  ;;  %v6283_v16 = vld [vmem:[%s6456_s5 + $0x1c] sm:$0xf]  ;;  %v5373_v28 = vld [vmem:[%s6456_s5 + $0xa8] sm:$0xe] }
 0x121   : > { %v3934_v50 = vshll.u32 %v7854_v21, 16  ;;  %v5388_v61 = vrot.slane %v5372_v11, 9  ;;  %v4375_v49 = vrot.slane %v7558_v25, 5  ;;  %v3903_v4 = vsel %vm6482_vm4, %v3898_v12, %v7817_v62  ;;  %v5361_v62 = vld [vmem:[%s6456_s5 + $0x18] sm:$0xe]  ;;  %v6234_v47 = vld [vmem:[%s6456_s5 + $0x48] sm:$0xff]  }
 0x122   : > { %v7867_v44 = vsel %vm6708_vm7, %v4370_v17, %v4371_v8  ;;  %v3931_v43 = vor.u32 %v3930_v9, %v7861_v5  ;;  %v4378_v23 = vrot.slane %v7603_v57, 5  ;;  %v3913_v25 = vsel %vm6482_vm4, %v3908_v41, %v3912_v6  ;;  %v6284_v11 = vld [vmem:[%s6456_s5 + $0x20] sm:$0x1] }
 0x123   : > { %v5404_v3 = vcombine.low %v7858_v22, %v7867_v44  ;;  %v4298_v56 = vrot.slane %v6283_v16, 5  ;;  %v7893_v31 = vsel %vm6708_vm7, %v5388_v61, %v4375_v49  ;;  %v4377_v51 = vrot.slane %v4375_v49, 4  ;;  %v5374_v49 = vld [vmem:[%s6456_s5 + $0xb4] sm:$0xe] }
 0x124   : > { %v5342_v7 = vcombine.low %v3879_v63, %v3889_v2  ;;  %v3932_v17 = vrot.slane %v3931_v43, 4  ;;  %v5389_v41 = vrot.slane %v5373_v28, 9  ;;  %v4382_v6 = vrot.slane %v7606_v34, 5  ;;  %v5362_v2 = vld [vmem:[%s6456_s5 + $0x24] sm:$0xe] }
 0x125   : > { %5844 = vmatmul.mubr.msk.bf16.gmra.mrb[20].mxu0 %vm629_vm3, %v7705_v24  ;;  %v3921_v24 = vor.u32 %v3920_v18, %v3917_v30  ;;  %v7898_v57 = vsel %vm6708_vm7, %v4377_v51, %v4378_v23  ;;  %v6235_v30 = vld [vmem:[%s6456_s5 + $0x54] sm:$0xff]   ;;  %v5377_v18 = vrot.slane %v5361_v62, 9  ;;  %v4300_v9 = vrot.slane %v4298_v56, 4  ;;  %v6287_v28 = vld [vmem:[%s6456_s5 + $0x2c] sm:$0x1] }
 0x126   : > { %5692 = vmatmul.mubr.msk.bf16.gmra.mrb[4].mxu1 %vm629_vm3, %v6232_v29  ;;  %5847 = vmatprep.mubr.msk.bf16.mxu0 %vm629_vm3, %v5341_v46  ;;  %v3936_v46 = vrot.slane %v3934_v50, 5  ;;  %v5343_v29 = vcombine.low %v3903_v4, %v3913_v25  ;;  %v5405_v8 = vcombine.low %v7893_v31, %v7898_v57  ;;  %v4385_v63 = vrot.slane %v7616_v48, 5  ;;  %v6285_v50 = vld [vmem:[%s6456_s5 + $0x28] sm:$0xf]  ;;  %v5363_v25 = vld [vmem:[%s6456_s5 + $0x30] sm:$0xe] }
 0x127   : > { %5695 = vmatprep.mubr.msk.bf16.mxu1 %vm629_vm3, %v6233_v19  ;;  %v3922_v12 = vrot.slane %v3921_v24, 4  ;;  %v4301_v19 = vrot.slane %v6284_v11, 5  ;;  %v4305_v61 = vrot.slane %v6285_v50, 5  ;;  %v7921_v48 = vsel %vm6708_vm7, %v5389_v41, %v4382_v6  ;;  %v6237_v11 = vld [vmem:[%s6456_s5 + $0x6c] sm:$0xff]   ;;  %v8254_v41 = vld [vmem:[#allocation9_spill] sm:$0xff] }
 0x128   : > { %v3937_v34 = vsel %vm6482_vm4, %v3932_v17, %v3936_v46  ;;  %v4384_v24 = vrot.slane %v4382_v6, 4  ;;  %v4299_v43 = vsel %vm6708_vm7, %v5377_v18, %v4298_v56  ;;  %v5378_v51 = vrot.slane %v5362_v2, 9  ;;  %v5375_v50 = vld [vmem:[%s6456_s5 + $0xc0] sm:$0xe]  ;;  %v6301_v31 = vld [vmem:[%s6456_s5 + $0xc8] sm:$0x1] }
 0x129   : > { %v3927_v4 = vsel %vm6482_vm4, %v3922_v12, %v7861_v5  ;;  %v4302_v23 = vsel %vm6708_vm7, %v4300_v9, %v4301_v19  ;;  %v6286_v5 = vld [vmem:[%s6456_s5 + $0x34] sm:$0xf]  ;;  %v6236_v12 = vld [vmem:[%s6456_s5 + $0x60] sm:$0xff]   ;;  %v5379_v18 = vrot.slane %v5363_v25, 9  ;;  %v4392_v9 = vrot.slane %v7730_v35, 5 }
 0x12a   : > { %v4312_v16 = vrot.slane %v6286_v5, 5  ;;  %v7932_v62 = vsel %vm6708_vm7, %v4384_v24, %v4385_v63  ;;  %v5344_v46 = vcombine.low %v3927_v4, %v3937_v34  ;;  %v5394_v17 = vcombine.low %v4299_v43, %v4302_v23  ;;  %v5364_v24 = vld [vmem:[%s6456_s5 + $0x3c] sm:$0xe] }
 0x12b   : > { %v5406_v56 = vcombine.low %v7921_v48, %v7932_v62  ;;  %v4315_v6 = vrot.slane %v8254_v41, 5  ;;  %v4306_v35 = vsel %vm6708_vm7, %v5378_v51, %v4305_v61  ;;  %v5391_v5 = vrot.slane %v5375_v50, 9 }
 0x12c   : > { %v4314_v19 = vrot.slane %v4312_v16, 4  ;;  %v4313_v23 = vsel %vm6708_vm7, %v5379_v18, %v4312_v16  ;;  %v4399_v51 = vrot.slane %v7823_v52, 5  ;;  %v2379_v57 = vshll.u32 %v6301_v31, 16 }
 0x12d   : > { %5848 = vmatmul.mubr.msk.bf16.gmra.mrb[24].mxu0 %vm629_vm3, %v5342_v7  ;;  %v5390_v7 = vrot.slane %v5374_v49, 9 }
 0x12e   : > { %5696 = vmatmul.mubr.msk.bf16.gmra.mrb[8].mxu1 %vm629_vm3, %v6234_v47  ;;  %5851 = vmatprep.mubr.msk.bf16.mxu0 %vm629_vm3, %v5343_v29  ;;  %v4308_v47 = vrot.slane %v6287_v28, 5  ;;  %v4389_v29 = vrot.slane %v7681_v39, 5  ;;  %v8255_v39 = vld [vmem:[#allocation10_spill] sm:$0xff]  ;;  %v4316_v25 = vsel %vm6708_vm7, %v4314_v19, %v4315_v6  ;;  %v5380_v28 = vrot.slane %v5364_v24, 9 }
 0x12f   : > { %5699 = vmatprep.mubr.msk.bf16.mxu1 %vm629_vm3, %v6235_v30  ;;  %v4307_v30 = vrot.slane %v4305_v61, 4  ;;  %v4319_v49 = vrot.slane %v8255_v39, 5  ;;  %v4396_v61 = vrot.slane %v7733_v58, 5  ;;  %v6288_v39 = vld [vmem:[%s6456_s5 + $0x70] sm:$0xf]  ;;  %v4403_v24 = vrot.slane %v7809_v55, 5 }
 0x130   : > { %v7944_v63 = vsel %vm6708_vm7, %v5390_v7, %v4389_v29  ;;  %v4391_v2 = vrot.slane %v4389_v29, 4  ;;  %v5093_v7 = vld [vmem:[%s6456_s5 + $0x6c] sm:$0xf]  ;;  %v8256_v29 = vld [vmem:[#allocation11_spill] sm:$0xff] }
 0x131   : > { %v4309_v34 = vsel %vm6708_vm7, %v4307_v30, %v4308_v47  ;;  %v4321_v47 = vrot.slane %v4319_v49, 4  ;;  %v6238_v30 = vld [vmem:[%s6456_s5 + $0x78] sm:$0xff]   ;;  %v7975_v16 = vsel %vm6708_vm7, %v5391_v5, %v4396_v61  ;;  %v4398_v18 = vrot.slane %v4396_v61, 4 }
 0x132   : > { %v7951_v4 = vsel %vm6708_vm7, %v4391_v2, %v4392_v9  ;;  %v5396_v9 = vcombine.low %v4313_v23, %v4316_v25  ;;  %v2192_v19 = vshrl.u32 %v5093_v7, 16  ;;  %v2195_v41 = vshll.u32 %v5093_v7, 16 }
 0x133   : > { %v5407_v43 = vcombine.low %v7944_v63, %v7951_v4  ;;  %v7980_v58 = vsel %vm6708_vm7, %v4398_v18, %v4399_v51  ;;  %v4320_v6 = vsel %vm6708_vm7, %v5380_v28, %v4319_v49  ;;  %v4406_v49 = vrot.slane %v7854_v21, 5  ;;  %v6240_v51 = vld [vmem:[%s6456_s5 + $0x90] sm:$0xff]   ;;  %v6241_v21 = vld [vmem:[%s6456_s5 + $0x9c] sm:$0xff]  }
 0x134   : > { %v5408_v50 = vcombine.low %v7975_v16, %v7980_v58  ;;  %v2194_v23 = vrot.slane %v2192_v19, 4  ;;  %v2197_v25 = vrot.slane %v2195_v41, 5  ;;  %v4405_v7 = vrot.slane %v4403_v24, 4 }
 0x135   : > { %5852 = vmatmul.mubr.msk.bf16.gmra.mrb[28].mxu0 %vm629_vm3, %v5344_v46  ;;  %v5395_v46 = vcombine.low %v4306_v35, %v4309_v34  ;;  %v2201_v35 = vshll.u32 %v6288_v39, 16  ;;  %v2205_v34 = vshrl.u32 %v6288_v39, 16 }
 0x136   : > { %5700 = vmatmul.mubr.msk.bf16.gmra.mrb[12].mxu1 %vm629_vm3, %v6236_v12  ;;  %5857 = vmatprep.mubr.msk.bf16.mxu0 %vm629_vm3, %v5394_v17  ;;  %v4322_v12 = vrot.slane %v8256_v29, 5  ;;  %v5376_v17 = vld [vmem:[%s6456_s5 + $0xcc] sm:$0xe]  ;;  %v8002_v55 = vsel %vm6708_vm7, %v4405_v7, %v4406_v49 }
 0x137   : > { %5703 = vmatprep.mubr.msk.bf16.mxu1 %vm629_vm3, %v6237_v11  ;;  %v6239_v11 = vld [vmem:[%s6456_s5 + $0x84] sm:$0xff]   ;;  %v5392_v52 = vrot.slane %v5376_v17, 9  ;;  %v2207_v28 = vrot.slane %v2205_v34, 4  ;;  %v6289_v17 = vld [vmem:[%s6456_s5 + $0x74] sm:$0x1] }
 0x138   : > { %v4323_v2 = vsel %vm6708_vm7, %v4321_v47, %v4322_v12  ;;  %v5099_v47 = vld [vmem:[%s6456_s5 + $0x84] sm:$0xf]  ;;  %v2198_v12 = vor.u32 %v2197_v25, %v2194_v23  ;;  %v6243_v34 = vld [vmem:[%s6456_s5 + $0xb4] sm:$0xff]  }
 0x139   : > { %v7997_v5 = vsel %vm6708_vm7, %v5392_v52, %v4403_v24  ;;  %v5397_v61 = vcombine.low %v4320_v6, %v4323_v2  ;;  %v2243_v18 = vshll.u32 %v5099_v47, 16  ;;  %v5102_v6 = vld [vmem:[%s6456_s5 + $0x90] sm:$0xf]  ;;  %v6242_v2 = vld [vmem:[%s6456_s5 + $0xa8] sm:$0xff]  }
 0x13a   : > { %v5409_v29 = vcombine.low %v7997_v5, %v8002_v55  ;;  %v2199_v52 = vrot.slane %v2198_v12, 4  ;;  %v2264_v23 = vshrl.u32 %v5102_v6, 16  ;;  %v2267_v25 = vshll.u32 %v5102_v6, 16 }
 0x13b   : > { %v2297_v12 = vshll.u32 %v6292_v60, 16 }
 0x13c   : > { %v2269_v14 = vrot.slane %v2267_v25, 5  ;;  %v6295_v25 = vld [vmem:[%s6456_s5 + $0xa4] sm:$0x1] }
 0x13d   : > { %5858 = vmatmul.mubr.msk.bf16.vlgmr.msra.gmra.mrb[0].mxu0 %vm629_vm3, %v5395_v46  ;;  %v2203_v46 = vrot.slane %v2201_v35, 5  ;;  %v5105_v35 = vld [vmem:[%s6456_s5 + $0x9c] sm:$0xf]  ;;  %v8044_v6 = vrot.slane %v2297_v12, 5 }
 0x13e   : > { %5704 = vmatmul.mubr.msk.bf16.gmra.mrb[16].mxu1 %vm629_vm3, %v6238_v30  ;;  %5861 = vmatprep.mubr.msk.bf16.mxu0 %vm629_vm3, %v5396_v9  ;;  %v2211_v30 = vshll.u32 %v6289_v17, 16  ;;  %v2240_v9 = vshrl.u32 %v5099_v47, 16  ;;  %v2291_v47 = vshll.u32 %v5105_v35, 16  ;;  %v6293_v17 = vld [vmem:[%s6456_s5 + $0x8c] sm:$0x1] }
 0x13f   : > { %5707 = vmatprep.mubr.msk.bf16.mxu1 %vm629_vm3, %v6239_v11  ;;  %v2208_v13 = vor.u32 %v2207_v28, %v2203_v46  ;;  %v6290_v11 = vld [vmem:[%s6456_s5 + $0x88] sm:$0xf]  ;;  %v2204_v7 = vsel %vm6482_vm4, %v2199_v52, %v2203_v46 }
 0x140   : > { %v2249_v19 = vshll.u32 %v6290_v11, 16  ;;  %v2253_v41 = vshrl.u32 %v6290_v11, 16  ;;  %v2213_v0 = vrot.slane %v2211_v30, 5  ;;  %v2242_v36 = vrot.slane %v2240_v9, 4 }
 0x141   : > { %v2209_v39 = vrot.slane %v2208_v13, 4  ;;  %v2259_v30 = vshll.u32 %v6293_v17, 16  ;;  %v2266_v9 = vrot.slane %v2264_v23, 4  ;;  %v2293_v11 = vrot.slane %v2291_v47, 5 }
 0x142   : > { %v8021_v24 = vrot.slane %v2249_v19, 5  ;;  %v2255_v49 = vrot.slane %v2253_v41, 4  ;;  %v6244_v19 = vld [vmem:[%s6456_s5 + $0xc0] sm:$0xff]  }
 0x143   : > { %v2214_v46 = vsel %vm6482_vm4, %v2209_v39, %v2213_v0  ;;  %v5108_v39 = vld [vmem:[%s6456_s5 + $0xa8] sm:$0xf] }
 0x144   : > { %v2256_v13 = vor.u32 %v2255_v49, %v8021_v24  ;;  %v5126_v41 = vcombine.low %v2204_v7, %v2214_v46  ;;  %v2307_v7 = vshll.u32 %v6295_v25, 16  ;;  %v2315_v45 = vshll.u32 %v5108_v39, 16 }
 0x145   : > { %5862 = vmatmul.mubr.msk.bf16.gmra.mrb[4].mxu0 %vm629_vm3, %v5397_v61  ;;  %v6291_v61 = vld [vmem:[%s6456_s5 + $0x94] sm:$0xf] }
 0x146   : > { %5708 = vmatmul.mubr.msk.bf16.gmra.mrb[20].mxu1 %vm629_vm3, %v6240_v51  ;;  %5865 = vmatprep.mubr.msk.bf16.mxu0 %vm629_vm3, %v5398_v10  ;;  %v2245_v10 = vrot.slane %v2243_v18, 5  ;;  %v2273_v51 = vshll.u32 %v6291_v61, 16  ;;  %v2277_v28 = vshrl.u32 %v6291_v61, 16  ;;  %v2257_v0 = vrot.slane %v2256_v13, 4 }
 0x147   : > { %5711 = vmatprep.mubr.msk.bf16.mxu1 %vm629_vm3, %v6241_v21  ;;  %v2288_v21 = vshrl.u32 %v5105_v35, 16  ;;  %v6294_v35 = vld [vmem:[%s6456_s5 + $0x98] sm:$0x1]  ;;  %v2312_v61 = vshrl.u32 %v5108_v39, 16  ;;  %v5114_v39 = vld [vmem:[%s6456_s5 + $0xc0] sm:$0xf] }
 0x148   : > { %v2246_v15 = vor.u32 %v2245_v10, %v2242_v36  ;;  %v8041_v26 = vrot.slane %v2273_v51, 5  ;;  %v2261_v36 = vrot.slane %v2259_v30, 5  ;;  %v2270_v10 = vor.u32 %v2269_v14, %v2266_v9  ;;  %v5111_v51 = vld [vmem:[%s6456_s5 + $0xb4] sm:$0xf] }
 0x149   : > { %v2290_v18 = vrot.slane %v2288_v21, 4  ;;  %v2325_v21 = vshrl.u32 %v6296_v27, 16  ;;  %v2336_v20 = vshrl.u32 %v5111_v51, 16  ;;  %v2339_v42 = vshll.u32 %v5111_v51, 16 }
 0x14a   : > { %v2247_v52 = vrot.slane %v2246_v15, 4  ;;  %v2262_v46 = vsel %vm6482_vm4, %v2257_v0, %v2261_v36  ;;  %v2271_v15 = vrot.slane %v2270_v10, 4  ;;  %v2309_v30 = vrot.slane %v2307_v7, 5 }
 0x14b   : > { %v2294_v23 = vor.u32 %v2293_v11, %v2290_v18  ;;  %v2314_v9 = vrot.slane %v2312_v61, 4  ;;  %v2327_v11 = vrot.slane %v2325_v21, 4  ;;  %v6300_v61 = vld [vmem:[%s6456_s5 + $0xbc] sm:$0x1] }
 0x14c   : > { %v2252_v47 = vsel %vm6482_vm4, %v2247_v52, %v8021_v24  ;;  %v2276_v0 = vsel %vm6482_vm4, %v2271_v15, %v8041_v26  ;;  %v2355_v22 = vshll.u32 %v6300_v61, 16 }
 0x14d   : > { %5866 = vmatmul.mubr.msk.bf16.gmra.mrb[8].mxu0 %vm629_vm3, %v5399_v40  ;;  %v2301_v40 = vshrl.u32 %v6292_v60, 16  ;;  %v2295_v17 = vrot.slane %v2294_v23, 4  ;;  %v5128_v24 = vcombine.low %v2252_v47, %v2262_v46 }
 0x14e   : > { %5712 = vmatmul.mubr.msk.bf16.gmra.mrb[24].mxu1 %vm629_vm3, %v6242_v2  ;;  %5869 = vmatprep.mubr.msk.bf16.mxu0 %vm629_vm3, %v5400_v54  ;;  %v2279_v54 = vrot.slane %v2277_v28, 4 }
 0x14f   : > { %5715 = vmatprep.mubr.msk.bf16.mxu1 %vm629_vm3, %v6243_v34  ;;  %v2303_v2 = vrot.slane %v2301_v40, 4  ;;  %v2283_v34 = vshll.u32 %v6294_v35, 16  ;;  %v2300_v10 = vsel %vm6482_vm4, %v2295_v17, %v8044_v6  ;;  %v2381_v17 = vrot.slane %v2379_v57, 5 }
 0x150   : > { %v2280_v49 = vor.u32 %v2279_v54, %v8041_v26  ;;  %v2317_v54 = vrot.slane %v2315_v45, 5  ;;  %v6298_v26 = vld [vmem:[%s6456_s5 + $0xb0] sm:$0x1] }
 0x151   : > { %v2304_v28 = vor.u32 %v2303_v2, %v8044_v6  ;;  %v2285_v60 = vrot.slane %v2283_v34, 5  ;;  %v2331_v35 = vshll.u32 %v6298_v26, 16  ;;  %v2360_v34 = vshrl.u32 %v5114_v39, 16 }
 0x152   : > { %v2281_v13 = vrot.slane %v2280_v49, 4  ;;  %v2318_v38 = vor.u32 %v2317_v54, %v2314_v9  ;;  %v2363_v6 = vshll.u32 %v5114_v39, 16  ;;  %v6299_v49 = vld [vmem:[%s6456_s5 + $0xc4] sm:$0xf] }
 0x153   : > { %v2305_v14 = vrot.slane %v2304_v28, 4  ;;  %v2369_v23 = vshll.u32 %v6299_v49, 16  ;;  %v2373_v25 = vshrl.u32 %v6299_v49, 16  ;;  %v2333_v45 = vrot.slane %v2331_v35, 5 }
 0x154   : > { %v2286_v36 = vsel %vm6482_vm4, %v2281_v13, %v2285_v60  ;;  %v2319_v51 = vrot.slane %v2318_v38, 4  ;;  %v2357_v60 = vrot.slane %v2355_v22, 5 }
 0x155   : > { %5870 = vmatmul.mubr.msk.bf16.gmra.mrb[12].mxu0 %vm629_vm3, %v5401_v53  ;;  %v2321_v53 = vshll.u32 %v6296_v27, 16  ;;  %v2310_v59 = vsel %vm6482_vm4, %v2305_v14, %v2309_v30  ;;  %v5129_v44 = vcombine.low %v2276_v0, %v2286_v36  ;;  %v2362_v27 = vrot.slane %v2360_v34, 4 }
 0x156   : > { %5716 = vmatmul.mubr.msk.bf16.gmra.mrb[28].mxu1 %vm629_vm3, %v6244_v19  ;;  %5873 = vmatprep.mubr.msk.bf16.mxu0 %vm629_vm3, %v5402_v33  ;;  %v6297_v33 = vld [vmem:[%s6456_s5 + $0xb8] sm:$0xf]  ;;  %v2338_v19 = vrot.slane %v2336_v20, 4  ;;  %v2371_v21 = vrot.slane %v2369_v23, 5  ;;  %v2375_v47 = vrot.slane %v2373_v25, 4  ;;  %s4825_s5 = sshll.u32 %s136_s4, 4  ;;  %s8145_s5 = int_to_ptr.vmem [resolvable:$true] %s4825_s5 }
 0x157   : > { %5737 = vmatprep.mubr.msk.bf16.mxu1 %vm629_vm3, %v5126_v41  ;;  %v2345_v12 = vshll.u32 %v6297_v33, 16  ;;  %v2349_v40 = vshrl.u32 %v6297_v33, 16  ;;  %v2323_v18 = vrot.slane %v2321_v53, 5  ;;  %v2341_v41 = vrot.slane %v2339_v42, 5  ;;  %s6302_s16 = scalar_lea.vmem %s8145_s5, 32  ;;  %p6309_p0 = scmp.lt.s32.totalorder %s8145_s5, %s6307_s17 }
 0x158   : > { %v2365_v53 = vrot.slane %v2363_v6, 5  ;;  %p6303_p11 = scmp.ne.s32.totalorder %s8145_s5, %s6302_s16  ;;  %p6310_p1 = scmp.lt.s32.totalorder %s6308_s21, %s6302_s16 }
 0x159   : > { %v2347_v52 = vrot.slane %v2345_v12, 5  ;;  %v2351_v2 = vrot.slane %v2349_v40, 4  ;;  %v2324_v20 = vsel %vm6482_vm4, %v2319_v51, %v2323_v18  ;;  %v2376_v12 = vor.u32 %v2375_v47, %v2371_v21 }
 0x15a   : > { %v2366_v33 = vor.u32 %v2365_v53, %v2362_v27  ;;  %p6304_p12 = pnand %p6303_p11, %p6420_p5  ;;  %p6311_p2 = por %p6310_p1, %p6309_p0 }
 0x15b   : > { %v2352_v7 = vor.u32 %v2351_v2, %v2347_v52  ;;  %v2377_v13 = vrot.slane %v2376_v12, 4 }
 0x15c   : > { %v2367_v40 = vrot.slane %v2366_v33, 4  ;;  %p6305_p13 = pneg %p6304_p12 }
 0x15d   : > { %5874 = vmatmul.mubr.msk.bf16.gmra.mrb[16].mxu0 %vm629_vm3, %v5403_v37  ;;  %v2328_v37 = vor.u32 %v2327_v11, %v2323_v18  ;;  %v2353_v15 = vrot.slane %v2352_v7, 4  ;;  %v2382_v9 = vsel %vm6482_vm4, %v2377_v13, %v2381_v17 }
 0x15e   : > { %5738 = vmatmul.mubr.msk.bf16.vlgmr.msra.gmra.mrb[16].mxu1 %vm629_vm3, %v7850_v1  ;;  %5877 = vmatprep.mubr.msk.bf16.mxu0 %vm629_vm3, %v5404_v3  ;;  %v2342_v1 = vor.u32 %v2341_v41, %v2338_v19  ;;  %v5130_v3 = vcombine.low %v2300_v10, %v2310_v59  ;;  %v2372_v30 = vsel %vm6482_vm4, %v2367_v40, %v2371_v21  ;;  %p6312_p3 = pnand %p6311_p2, %p6305_p13 }
 0x15f   : > { %5741 = vmatprep.mubr.msk.bf16.mxu1 %vm629_vm3, %v5128_v24  ;;  %v2329_v28 = vrot.slane %v2328_v37, 4  ;;  %v2358_v48 = vsel %vm6482_vm4, %v2353_v15, %v2357_v60  ;;  %v5133_v14 = vcombine.low %v2372_v30, %v2382_v9 }
 0x160   : > { %v2343_v46 = vrot.slane %v2342_v1, 4 }
 0x161   : > { %v2334_v42 = vsel %vm6482_vm4, %v2329_v28, %v2333_v45 }
 0x162   : > { %v5131_v62 = vcombine.low %v2324_v20, %v2334_v42 }
 0x165   : > { %5878 = vmatmul.mubr.msk.bf16.gmra.mrb[20].mxu0 %vm629_vm3, %v5405_v8  ;;  %v2348_v8 = vsel %vm6482_vm4, %v2343_v46, %v2347_v52 }
 0x166   : > { %5742 = vmatmul.mubr.msk.bf16.gmra.mrb[20].mxu1 %vm629_vm3, %v5129_v44  ;;  %5881 = vmatprep.mubr.msk.bf16.mxu0 %vm629_vm3, %v5406_v56  ;;  %v5132_v56 = vcombine.low %v2348_v8, %v2358_v48 }
 0x167   : > { %5745 = vmatprep.mubr.msk.bf16.mxu1 %vm629_vm3, %v5130_v3 }
 0x16d   : > { %5882 = vmatmul.mubr.msk.bf16.gmra.mrb[24].mxu0 %vm629_vm3, %v5407_v43 }
 0x16e   : > { %5746 = vmatmul.mubr.msk.bf16.gmra.mrb[24].mxu1 %vm629_vm3, %v5131_v62  ;;  %5885 = vmatprep.mubr.msk.bf16.mxu0 %vm629_vm3, %v5408_v50 }
 0x16f   : > { %5749 = vmatprep.mubr.msk.bf16.mxu1 %vm629_vm3, %v5132_v56 }
 0x175   : > { %5886 = vmatmul.mubr.msk.bf16.gmra.mrb[28].mxu0 %vm629_vm3, %v5409_v29 }
 0x176   : > { %5750 = vmatmul.mubr.msk.bf16.gmra.mrb[28].mxu1 %vm629_vm3, %v5133_v14 }
 0x1f1   : > { %v5689_v63 = vpop.f32.mrb[0].mxu1 }
 0x1f2   : > { %v1792_v4 = vpop.f32.mrb[1].mxu1 }
 0x1f3   : > { %v5690_v43 = vpop.f32.mrb[2].mxu1 }
 0x1f4   : > { %v1795_v16 = vpop.f32.mrb[3].mxu1 }
 0x1f9   : > { %v5693_v58 = vpop.f32.mrb[4].mxu1 }
 0x1fa   : > { %v1808_v50 = vpop.f32.mrb[5].mxu1 }
 0x1fb   : > { %v5694_v54 = vpop.f32.mrb[6].mxu1 }
 0x1fc   : > { %v1811_v18 = vpop.f32.mrb[7].mxu1 }
 0x201   : > { %v5697_v11 = vpop.f32.mrb[8].mxu1 }
 0x202   : > { %v1824_v24 = vpop.f32.mrb[9].mxu1 }
 0x203   : > { %v5698_v32 = vpop.f32.mrb[10].mxu1 }
 0x204   : > { %v1827_v19 = vpop.f32.mrb[11].mxu1 }
 0x209   : > { %v5701_v41 = vpop.f32.mrb[12].mxu1 }
 0x20a   : > { %v1840_v52 = vpop.f32.mrb[13].mxu1 }
 0x20b   : > { %v8132_v2 = vpop.f32.mrb[14].mxu1 }
 0x20c   : > { %v8134_v5 = vpop.f32.mrb[15].mxu1 }
 0x210   : > { %v5859_v55 = vpop.f32.mrb[0].mxu0 }
 0x211   : > { %v5891_v29 = vadd.f32 %v5859_v55, %v5689_v63  ;;  %v4543_v39 = vpop.f32.mrb[1].mxu0 }
 0x212   : > { %v5892_v0 = vadd.f32 %v4543_v39, %v1792_v4  ;;  %v5860_v36 = vpop.f32.mrb[2].mxu0 }
 0x213   : > { %v5893_v10 = vadd.f32 %v5860_v36, %v5690_v43  ;;  %v4546_v59 = vpop.f32.mrb[3].mxu0  ;;  %v4741_v34 = vmul.f32 %v5891_v29, %v5891_v29 }
 0x214   : > { %v5894_v38 = vadd.f32 %v4546_v59, %v1795_v16  ;;  %v4739_v37 = vmul.f32 %v5892_v0, %v5892_v0 }
 0x215   : > { %v4742_v7 = vmul.f32 %v5893_v10, %v5893_v10 }
 0x216   : > { %v4702_v26 = vadd.f32 %v5894_v38, %v5892_v0  ;;  %v4740_v35 = vmul.f32 %v5894_v38, %v5894_v38 }
 0x218   : > { %v4703_v6 = vadd.f32 %v5891_v29, %v4702_v26  ;;  %v4771_v49 = vadd.f32 %v4740_v35, %v4739_v37  ;;  %v5863_v23 = vpop.f32.mrb[4].mxu0 }
 0x219   : > { %v5895_v25 = vadd.f32 %v5863_v23, %v5693_v58  ;;  %v4559_v1 = vpop.f32.mrb[5].mxu0 }
 0x21a   : > { %v4772_v61 = vadd.f32 %v4771_v49, %v4741_v34  ;;  %v5896_v22 = vadd.f32 %v4559_v1, %v1808_v50  ;;  %v4704_v44 = vadd.f32 %v5893_v10, %v4703_v6  ;;  %v5864_v3 = vpop.f32.mrb[6].mxu0 }
 0x21b   : > { %v5897_v51 = vadd.f32 %v5864_v3, %v5694_v54  ;;  %v4562_v28 = vpop.f32.mrb[7].mxu0  ;;  %v4745_v60 = vmul.f32 %v5895_v25, %v5895_v25 }
 0x21c   : > { %v4705_v45 = vadd.f32 %v5896_v22, %v4704_v44  ;;  %v4743_v27 = vmul.f32 %v5896_v22, %v5896_v22  ;;  %v4773_v53 = vadd.f32 %v4772_v61, %v4742_v7  ;;  %v5898_v21 = vadd.f32 %v4562_v28, %v1811_v18 }
 0x21d   : > { %v4746_v57 = vmul.f32 %v5897_v51, %v5897_v51 }
 0x21e   : > { %v4774_v47 = vadd.f32 %v4773_v53, %v4743_v27  ;;  %v4706_v46 = vadd.f32 %v5898_v21, %v4705_v45  ;;  %v4744_v15 = vmul.f32 %v5898_v21, %v5898_v21 }
 0x220   : > { %v4707_v20 = vadd.f32 %v5895_v25, %v4706_v46  ;;  %v4775_v42 = vadd.f32 %v4774_v47, %v4744_v15  ;;  %v5867_v33 = vpop.f32.mrb[8].mxu0 }
 0x221   : > { %v5899_v12 = vadd.f32 %v5867_v33, %v5697_v11  ;;  %v4575_v31 = vpop.f32.mrb[9].mxu0 }
 0x222   : > { %v4776_v8 = vadd.f32 %v4775_v42, %v4745_v60  ;;  %v5900_v48 = vadd.f32 %v4575_v31, %v1824_v24  ;;  %v4708_v62 = vadd.f32 %v5897_v51, %v4707_v20  ;;  %v5868_v56 = vpop.f32.mrb[10].mxu0 }
 0x223   : > { %v5901_v40 = vadd.f32 %v5868_v56, %v5698_v32  ;;  %v4578_v13 = vpop.f32.mrb[11].mxu0  ;;  %v4749_v16 = vmul.f32 %v5899_v12, %v5899_v12 }
 0x224   : > { %v4709_v17 = vadd.f32 %v5900_v48, %v4708_v62  ;;  %v4747_v30 = vmul.f32 %v5900_v48, %v5900_v48  ;;  %v4777_v9 = vadd.f32 %v4776_v8, %v4746_v57  ;;  %v5902_v14 = vadd.f32 %v4578_v13, %v1827_v19 }
 0x225   : > { %v4750_v55 = vmul.f32 %v5901_v40, %v5901_v40 }
 0x226   : > { %v4778_v63 = vadd.f32 %v4777_v9, %v4747_v30  ;;  %v4710_v4 = vadd.f32 %v5902_v14, %v4709_v17  ;;  %v4748_v43 = vmul.f32 %v5902_v14, %v5902_v14 }
 0x228   : > { %v4711_v58 = vadd.f32 %v5899_v12, %v4710_v4  ;;  %v4779_v50 = vadd.f32 %v4778_v63, %v4748_v43  ;;  %v5871_v54 = vpop.f32.mrb[12].mxu0 }
 0x229   : > { %v5903_v18 = vadd.f32 %v5871_v54, %v5701_v41  ;;  %v4591_v11 = vpop.f32.mrb[13].mxu0 }
 0x22a   : > { %v4780_v29 = vadd.f32 %v4779_v50, %v4749_v16  ;;  %v5904_v24 = vadd.f32 %v4591_v11, %v1840_v52  ;;  %v4712_v39 = vadd.f32 %v5901_v40, %v4711_v58  ;;  %v5872_v0 = vpop.f32.mrb[14].mxu0 }
 0x22b   : > { %v5905_v32 = vadd.f32 %v5872_v0, %v8132_v2  ;;  %v4594_v36 = vpop.f32.mrb[15].mxu0  ;;  %v4753_v34 = vmul.f32 %v5903_v18, %v5903_v18 }
 0x22c   : > { %v4713_v10 = vadd.f32 %v5904_v24, %v4712_v39  ;;  %v4751_v59 = vmul.f32 %v5904_v24, %v5904_v24  ;;  %v4781_v19 = vadd.f32 %v4780_v29, %v4750_v55  ;;  %v5906_v38 = vadd.f32 %v4594_v36, %v8134_v5 }
 0x22d   : > { %v4754_v52 = vmul.f32 %v5905_v32, %v5905_v32 }
 0x22e   : > { %v4782_v37 = vadd.f32 %v4781_v19, %v4751_v59  ;;  %v4714_v26 = vadd.f32 %v5906_v38, %v4713_v10  ;;  %v4752_v35 = vmul.f32 %v5906_v38, %v5906_v38 }
 0x230   : > { %v4715_v6 = vadd.f32 %v5903_v18, %v4714_v26  ;;  %v4783_v41 = vadd.f32 %v4782_v37, %v4752_v35  ;;  %v5875_v49 = vpop.f32.mrb[16].mxu0 }
 0x231   : > { %v5739_v23 = vpop.f32.mrb[16].mxu1  ;;  %v4607_v25 = vpop.f32.mrb[17].mxu0 }
 0x232   : > { %v4784_v1 = vadd.f32 %v4783_v41, %v4753_v34  ;;  %v5907_v7 = vadd.f32 %v5875_v49, %v5739_v23  ;;  %v2582_v61 = vpop.f32.mrb[17].mxu1  ;;  %v4716_v2 = vadd.f32 %v5905_v32, %v4715_v6  ;;  %v5876_v22 = vpop.f32.mrb[18].mxu0 }
 0x233   : > { %v5908_v44 = vadd.f32 %v4607_v25, %v2582_v61  ;;  %v5740_v3 = vpop.f32.mrb[18].mxu1  ;;  %v4610_v51 = vpop.f32.mrb[19].mxu0 }
 0x234   : > { %v4785_v28 = vadd.f32 %v4784_v1, %v4754_v52  ;;  %v5909_v5 = vadd.f32 %v5876_v22, %v5740_v3  ;;  %v2585_v45 = vpop.f32.mrb[19].mxu1  ;;  %v4757_v20 = vmul.f32 %v5907_v7, %v5907_v7 }
 0x235   : > { %v4717_v27 = vadd.f32 %v5908_v44, %v4716_v2  ;;  %v4755_v53 = vmul.f32 %v5908_v44, %v5908_v44  ;;  %v5910_v21 = vadd.f32 %v4610_v51, %v2585_v45 }
 0x236   : > { %v4758_v62 = vmul.f32 %v5909_v5, %v5909_v5 }
 0x237   : > { %v4786_v47 = vadd.f32 %v4785_v28, %v4755_v53  ;;  %v4718_v46 = vadd.f32 %v5910_v21, %v4717_v27  ;;  %v4756_v15 = vmul.f32 %v5910_v21, %v5910_v21 }
 0x238   : > { %v5879_v60 = vpop.f32.mrb[20].mxu0 }
 0x239   : > { %v4719_v42 = vadd.f32 %v5907_v7, %v4718_v46  ;;  %v4787_v33 = vadd.f32 %v4786_v47, %v4756_v15  ;;  %v5743_v12 = vpop.f32.mrb[20].mxu1  ;;  %v4623_v31 = vpop.f32.mrb[21].mxu0 }
 0x23a   : > { %v5911_v57 = vadd.f32 %v5879_v60, %v5743_v12  ;;  %v2598_v8 = vpop.f32.mrb[21].mxu1  ;;  %v5880_v48 = vpop.f32.mrb[22].mxu0 }
 0x23b   : > { %v4788_v56 = vadd.f32 %v4787_v33, %v4757_v20  ;;  %v5912_v40 = vadd.f32 %v4623_v31, %v2598_v8  ;;  %v4720_v13 = vadd.f32 %v5909_v5, %v4719_v42  ;;  %v5744_v17 = vpop.f32.mrb[22].mxu1  ;;  %v4626_v30 = vpop.f32.mrb[23].mxu0 }
 0x23c   : > { %v5913_v9 = vadd.f32 %v5880_v48, %v5744_v17  ;;  %v2601_v14 = vpop.f32.mrb[23].mxu1  ;;  %v4761_v11 = vmul.f32 %v5911_v57, %v5911_v57 }
 0x23d   : > { %v4721_v63 = vadd.f32 %v5912_v40, %v4720_v13  ;;  %v4759_v4 = vmul.f32 %v5912_v40, %v5912_v40  ;;  %v4789_v43 = vadd.f32 %v4788_v56, %v4758_v62  ;;  %v5914_v16 = vadd.f32 %v4626_v30, %v2601_v14 }
 0x23e   : > { %v4762_v10 = vmul.f32 %v5913_v9, %v5913_v9 }
 0x23f   : > { %v4790_v58 = vadd.f32 %v4789_v43, %v4759_v4  ;;  %v4722_v50 = vadd.f32 %v5914_v16, %v4721_v63  ;;  %v4760_v54 = vmul.f32 %v5914_v16, %v5914_v16 }
 0x240   : > { %v5883_v18 = vpop.f32.mrb[24].mxu0 }
 0x241   : > { %v4723_v55 = vadd.f32 %v5911_v57, %v4722_v50  ;;  %v4791_v29 = vadd.f32 %v4790_v58, %v4760_v54  ;;  %v5747_v24 = vpop.f32.mrb[24].mxu1  ;;  %v4639_v39 = vpop.f32.mrb[25].mxu0 }
 0x242   : > { %v5915_v0 = vadd.f32 %v5883_v18, %v5747_v24  ;;  %v2614_v32 = vpop.f32.mrb[25].mxu1  ;;  %v5884_v36 = vpop.f32.mrb[26].mxu0 }
 0x243   : > { %v4792_v59 = vadd.f32 %v4791_v29, %v4761_v11  ;;  %v5916_v19 = vadd.f32 %v4639_v39, %v2614_v32  ;;  %v4724_v38 = vadd.f32 %v5913_v9, %v4723_v55  ;;  %v5748_v37 = vpop.f32.mrb[26].mxu1  ;;  %v4642_v26 = vpop.f32.mrb[27].mxu0 }
 0x244   : > { %v5917_v35 = vadd.f32 %v5884_v36, %v5748_v37  ;;  %v2617_v34 = vpop.f32.mrb[27].mxu1  ;;  %v4765_v61 = vmul.f32 %v5915_v0, %v5915_v0 }
 0x245   : > { %v4725_v6 = vadd.f32 %v5916_v19, %v4724_v38  ;;  %v4763_v41 = vmul.f32 %v5916_v19, %v5916_v19  ;;  %v4793_v49 = vadd.f32 %v4792_v59, %v4762_v10  ;;  %v5918_v23 = vadd.f32 %v4642_v26, %v2617_v34 }
 0x246   : > { %v4766_v45 = vmul.f32 %v5917_v35, %v5917_v35 }
 0x247   : > { %v4794_v25 = vadd.f32 %v4793_v49, %v4763_v41  ;;  %v4726_v52 = vadd.f32 %v5918_v23, %v4725_v6  ;;  %v4764_v1 = vmul.f32 %v5918_v23, %v5918_v23 }
 0x248   : > { %v5887_v7 = vpop.f32.mrb[28].mxu0 }
 0x249   : > { %v4727_v2 = vadd.f32 %v5915_v0, %v4726_v52  ;;  %v4795_v22 = vadd.f32 %v4794_v25, %v4764_v1  ;;  %v5751_v44 = vpop.f32.mrb[28].mxu1  ;;  %v4655_v3 = vpop.f32.mrb[29].mxu0 }
 0x24a   : > { %v5919_v51 = vadd.f32 %v5887_v7, %v5751_v44  ;;  %v2630_v28 = vpop.f32.mrb[29].mxu1  ;;  %v5888_v5 = vpop.f32.mrb[30].mxu0 }
 0x24b   : > { %v4796_v27 = vadd.f32 %v4795_v22, %v4765_v61  ;;  %v5920_v53 = vadd.f32 %v4655_v3, %v2630_v28  ;;  %v4728_v21 = vadd.f32 %v5917_v35, %v4727_v2  ;;  %v5752_v47 = vpop.f32.mrb[30].mxu1  ;;  %v4658_v46 = vpop.f32.mrb[31].mxu0 }
 0x24c   : > { %v5921_v15 = vadd.f32 %v5888_v5, %v5752_v47  ;;  %v2633_v60 = vpop.f32.mrb[31].mxu1  ;;  %v4769_v48 = vmul.f32 %v5919_v51, %v5919_v51 }
 0x24d   : > { %v4729_v20 = vadd.f32 %v5920_v53, %v4728_v21  ;;  %v4767_v42 = vmul.f32 %v5920_v53, %v5920_v53  ;;  %v4797_v33 = vadd.f32 %v4796_v27, %v4766_v45  ;;  %v5922_v12 = vadd.f32 %v4658_v46, %v2633_v60 }
 0x24e   : > { %v4770_v40 = vmul.f32 %v5921_v15, %v5921_v15 }
 0x24f   : > { %v4798_v31 = vadd.f32 %v4797_v33, %v4767_v42  ;;  %v4730_v57 = vadd.f32 %v5922_v12, %v4729_v20  ;;  %v4768_v8 = vmul.f32 %v5922_v12, %v5922_v12 }
 0x251   : > { %v4731_v62 = vadd.f32 %v5919_v51, %v4730_v57  ;;  %v4799_v56 = vadd.f32 %v4798_v31, %v4768_v8 }
 0x253   : > { %v4732_v13 = vadd.f32 %v5921_v15, %v4731_v62  ;;  %v4800_v17 = vadd.f32 %v4799_v56, %v4769_v48 }
 0x255   : > { %v4733_v30 = vrot.slane %v4732_v13, 4  ;;  %v4801_v9 = vadd.f32 %v4800_v17, %v4770_v40 }
 0x257   : > { %v4734_v14 = vadd.f32 %v4733_v30, %v4732_v13  ;;  %v4802_v63 = vrot.slane %v4801_v9, 4 }
 0x259   : > { %v4735_v4 = vrot.slane %v4734_v14, 2  ;;  %v4803_v43 = vadd.f32 %v4802_v63, %v4801_v9 }
 0x25b   : > { %v4736_v16 = vadd.f32 %v4735_v4, %v4734_v14  ;;  %v4804_v58 = vrot.slane %v4803_v43, 2 }
 0x25d   : > { %v4737_v50 = vrot.slane %v4736_v16, 1  ;;  %v4805_v54 = vadd.f32 %v4804_v58, %v4803_v43 }
 0x25f   : > { %v4806_v18 = vrot.slane %v4805_v54, 1  ;;  %v4738_v11 = vadd.f32 %v4737_v50, %v4736_v16 }
 0x261   : > { %v4807_v55 = vadd.f32 %v4806_v18, %v4805_v54 }
 0x263   : > { %v4809_v29 = vsel %vm4808_vm8, %v4738_v11, %v4807_v55 }
 0x264   : > { %4810 = vst [vmem:[%s136_s4] sm:$0x3] %v4809_v29 }
 0x265   : > { %6315 = shalt.err (!%p6312_p3)
}
 0x266   : > { %s6316_s22 = scalar_lea.hbm %s8143_s8, 32  ;;  %s6320_s25 = scalar_lea.hbm %s8187_s2, 64 }
 0x267   : > { %p6317_p4 = scmp.ne.s32.totalorder %s8143_s8, %s6316_s22  ;;  %p6321_p9 = scmp.lt.u32.totalorder %s8143_s8, %s8187_s2 }
 0x268   : > { %p6322_p10 = scmp.lt.u32.totalorder %s6320_s25, %s6316_s22  ;;  %p6324_p12 = scmp.lt.u32.totalorder %s6316_s22, %s8143_s8 }
 0x269   : > { %p6318_p7 = pnand %p6317_p4, %p6420_p5 }
 0x26a   : > { %p6323_p11 = por %p6322_p10, %p6321_p9 }
 0x26b   : > { %p6319_p8 = pneg %p6318_p7 }
 0x26c   : > { %p6325_p13 = por %p6324_p12, %p6323_p11 }
 0x26e   : > { %p6326_p0 = pnand %p6325_p13, %p6319_p8 }
 0x270   : > { %6329 = shalt.err (!%p6326_p0)
}
 0x271   : > { %6158 = dma.vmem_to_hbm [thread:$0]  (%p6420_p5), %s8145_s5, 32, %s8143_s8, %s4812_s14  }
 0x272 PF: > { %p6164_p1 = scmp.ge.s32.totalorder %s6364_s12, 2  ;;  %s4837_s28 = sand.u32 1, %s6352_s9  }
 0x273   : > { %s4838_s29 = scalar_lea.sflag [#allocation3], %s4837_s28 }
 0x274   : > { %p6161_p2 = pnand %p6164_p1, %p6424_p6 }
 0x276   : > { %6347 = dma.done.wait (!%p6161_p2), %s4838_s29, 32  }
 0x277   : > { %6349 = vsyncadd (!%p6161_p2), %s4838_s29, 4294967264  ;;  %p12_p3 = scmp.ge.s32.totalorder %s6407_s15, 4   ;;  %s8257_s9 = smov %s6356_s10 }
 0x278   : > { %s8258_s10 = smov %s6360_s11  ;;  %s8259_s11 = smov %s6418_s18 }
 0x279   : > { %s8260_s12 = smov %s6407_s15  ;;  %14 = sbr.rel (!%p12_p3) target bundleno = 3 (0x3), region = 73 }
 0x280   :  { %4843 = vsyncpa [#allocation3], 1 }
 0x281   :  { %4845 = vsyncpa [#allocation3 + $0x1], 1 }

</bundles_post_ra>
